<compile_context>
chip_gen: v7x
topology: tpu7x:2x2x1
jax: 0.10.0
libtpu: 0.0.40
codegen_flags: <defaults>
</compile_context>

<pallas_src>
import math
import functools

import jax
import jax.numpy as jnp
from jax.experimental import pallas as pl
from jax.experimental.pallas import tpu as pltpu


def _encoder_layer_kernel(x_ref,
                          wqkv_ref, bqkv_ref, wo_ref, bo_ref,
                          w1_ref, b1_ref, w2_ref, b2_ref,
                          g1_ref, be1_ref, g2_ref, be2_ref,
                          o_ref,
                          *, num_heads: int, seq_len: int, eps: float = 1e-5):
    Nb, Lp, C = x_ref.shape
    M = Nb * Lp
    H = num_heads
    E = C // H
    scale = 1.0 / math.sqrt(E)

    # (Nb, Lp) -> M flatten is a pure layout no-op because Lp % 8 == 0.
    x = x_ref[...].reshape(M, C)                      # f32 residual copy
    x_bf = x.astype(jnp.bfloat16)

    # --- fused Q/K/V projection: one (M,C)@(C,3C) bf16 matmul, f32 acc -------
    qkv = jnp.dot(x_bf, wqkv_ref[...],
                  preferred_element_type=jnp.float32) + bqkv_ref[...]
    # Single bf16 cast shared by q/k/v (feedback #10).
    qkv = qkv.astype(jnp.bfloat16).reshape(Nb, Lp, 3 * C)

    # Key-padding mask (only materialized when L was actually padded).
    padded = Lp > seq_len
    if padded:
        key_valid = jax.lax.broadcasted_iota(jnp.int32, (1, Lp), 1) < seq_len

    # --- attention: per-head scores / PV batched over Nb (single-batch-dim
    #     einsums).  Head concat happens once; the output projection below is
    #     a single full-depth matmul over K = C. ------------------------------
    head_outs = []
    for h in range(H):
        qh = qkv[:, :, h * E:(h + 1) * E]                         # (Nb, Lp, E)
        kh = qkv[:, :, C + h * E:C + (h + 1) * E]
        vh = qkv[:, :, 2 * C + h * E:2 * C + (h + 1) * E]
        s = jnp.einsum('nle,nme->nlm', qh, kh,
                       preferred_element_type=jnp.float32) * scale  # (Nb,Lp,Lp)
        if padded:
            s = jnp.where(key_valid, s, -1e30)
        s = s - jnp.max(s, axis=-1, keepdims=True)
        p = jnp.exp(s)
        p = p / jnp.sum(p, axis=-1, keepdims=True)     # exact softmax normalization
        oh = jnp.einsum('nlm,nme->nle', p.astype(jnp.bfloat16), vh,
                        preferred_element_type=jnp.float32)          # (Nb,Lp,E)
        head_outs.append(oh.astype(jnp.bfloat16))
    ctx = jnp.concatenate(head_outs, axis=-1).reshape(M, C)          # bf16

    # --- single full-depth (K = C) output projection --------------------------
    attn = jnp.dot(ctx, wo_ref[...],
                   preferred_element_type=jnp.float32) + bo_ref[...]

    # --- residual + LayerNorm1 (dropout == identity in eval) ------------------
    x1 = x + attn
    mu1 = jnp.mean(x1, axis=-1, keepdims=True)
    var1 = jnp.mean((x1 - mu1) ** 2, axis=-1, keepdims=True)
    xn = (x1 - mu1) * jax.lax.rsqrt(var1 + eps) * g1_ref[...] + be1_ref[...]

    # --- position-wise FFN: Conv1d(k=1) == per-token linear, bf16 matmuls -----
    y = jnp.dot(xn.astype(jnp.bfloat16), w1_ref[...],
                preferred_element_type=jnp.float32) + b1_ref[...]
    y = jnp.maximum(y, 0.0)
    y = jnp.dot(y.astype(jnp.bfloat16), w2_ref[...],
                preferred_element_type=jnp.float32) + b2_ref[...]

    # --- residual + LayerNorm2 -------------------------------------------------
    z = xn + y
    mu2 = jnp.mean(z, axis=-1, keepdims=True)
    var2 = jnp.mean((z - mu2) ** 2, axis=-1, keepdims=True)
    out = (z - mu2) * jax.lax.rsqrt(var2 + eps) * g2_ref[...] + be2_ref[...]
    o_ref[...] = out.reshape(Nb, Lp, C)


_MATMUL_DTYPE = jnp.bfloat16
_WEIGHT_ORDER = ("wqkv", "bqkv", "wo", "bo", "w1", "b1", "w2", "b2",
                 "g1", "be1", "g2", "be2")


def prepare_weights(params):
    """Fold / cast weights ONCE (reuse the returned tuple across calls):
    Q/K/V fused into a single (C, 3C) bf16 weight; matmul weights bf16;
    biases and LayerNorm params f32."""
    wqkv = jnp.concatenate([params["wq"], params["wk"], params["wv"]], axis=1)
    bqkv = jnp.concatenate([params["bq"], params["bk"], params["bv"]], axis=1)
    return (
        wqkv.astype(_MATMUL_DTYPE),
        bqkv.astype(jnp.float32),
        params["wo"].astype(_MATMUL_DTYPE),
        params["bo"].astype(jnp.float32),
        params["w1"].astype(_MATMUL_DTYPE),
        params["b1"].astype(jnp.float32),
        params["w2"].astype(_MATMUL_DTYPE),
        params["b2"].astype(jnp.float32),
        params["g1"].astype(jnp.float32),
        params["be1"].astype(jnp.float32),
        params["g2"].astype(jnp.float32),
        params["be2"].astype(jnp.float32),
    )


def _vmem_capacity_bytes():
    try:
        return int(pltpu.get_tpu_info().vmem_capacity_bytes)
    except Exception:
        return 64 * 1024 * 1024    # conservative: v7x per-TC physical VMEM


def _pick_block_batch(N, Lp, C, F, weight_bytes, *, vmem_budget, max_rows):
    """Largest divisor Nb of N whose working set fits `vmem_budget`.  Prefers a
    grid length >= 2 (even if possible) so both v7x TensorCores get work."""
    def fits(nb):
        rows = nb * Lp
        if rows > max_rows:
            return False
        est = (rows * (32 * C + 6 * F)      # f32-ish live intermediates
               + 10 * nb * Lp * Lp          # per-head score / prob tensors
               + 4 * rows * C * 4           # double-buffered in/out x blocks
               + 2 * weight_bytes)          # resident weights (worst case 2x)
        return est <= vmem_budget

    feasible = [nb for nb in range(1, N + 1) if N % nb == 0 and fits(nb)]
    if not feasible:
        return 1
    even_grid = [nb for nb in feasible if N // nb >= 2 and (N // nb) % 2 == 0]
    multi_grid = [nb for nb in feasible if N // nb >= 2]
    for cand in (even_grid, multi_grid, feasible):
        if cand:
            return max(cand)


def encoder_layer(x, params, *, num_heads, block_batch=None, eps=1e-5,
                  pad_multiple=8):
    """x: (N, L, C) float32.  params: dict (see init_params) or a tuple already
    produced by prepare_weights()."""
    N, L, C = x.shape
    assert C % num_heads == 0
    weights = prepare_weights(params) if isinstance(params, dict) else tuple(params)
    (wqkv, bqkv, wo, bo, w1, b1, w2, b2, g1, be1, g2, be2) = weights
    F = w1.shape[1]

    # Pad L so the in-kernel (Nb, Lp) -> M flatten is a layout no-op.  Larger
    # multiples (16 for bf16 sublane packing, 128 to fill MXU lanes on the
    # score/PV matmuls) can be requested via pad_multiple.
    Lp = -(-L // pad_multiple) * pad_multiple
    x_p = x if Lp == L else jnp.pad(x, ((0, 0), (0, Lp - L), (0, 0)))

    weight_bytes = sum(int(w.size) * w.dtype.itemsize for w in weights)
    vmem_cap = _vmem_capacity_bytes()
    # Generation aware: v5e/v6e (128 MiB VMEM) get big blocks / high scoped
    # limit; v7x (64 MiB) stays conservative.
    vmem_limit = min(vmem_cap * 3 // 4, 96 * 1024 * 1024)
    if block_batch is None:
        max_rows = 1024 if vmem_cap >= 96 * 1024 * 1024 else 256
        block_batch = _pick_block_batch(
            N, Lp, C, F, weight_bytes,
            vmem_budget=int(vmem_limit * 0.8), max_rows=max_rows)
    assert N % block_batch == 0
    grid = (N // block_batch,)

    kernel = functools.partial(_encoder_layer_kernel, num_heads=num_heads,
                               seq_len=L, eps=eps)

    # Advisory hint for XLA's scheduler around the custom call.
    rows_total = N * Lp
    flops = 2 * rows_total * C * (3 * C + C + 2 * F) + 4 * N * Lp * Lp * C
    cost = pl.CostEstimate(
        flops=int(flops),
        transcendentals=int(N * num_heads * Lp * Lp),
        bytes_accessed=int(2 * rows_total * C * 4 + weight_bytes),
    )

    def run(single_buffer_weights):
        def weight_spec(arr):
            nd = arr.ndim
            index_map = lambda b, _nd=nd: (0,) * _nd   # grid-invariant: resident
            if single_buffer_weights:
                return pl.BlockSpec(arr.shape, index_map,
                                    pipeline_mode=pl.Buffered(1))
            return pl.BlockSpec(arr.shape, index_map)

        in_specs = ([pl.BlockSpec((block_batch, Lp, C), lambda b: (b, 0, 0))]
                    + [weight_spec(w) for w in weights])
        return pl.pallas_call(
            kernel,
            out_shape=jax.ShapeDtypeStruct((N, Lp, C), jnp.float32),
            grid=grid,
            in_specs=in_specs,
            out_specs=pl.BlockSpec((block_batch, Lp, C), lambda b: (b, 0, 0)),
            compiler_params=pltpu.CompilerParams(
                dimension_semantics=("parallel",),
                vmem_limit_bytes=int(vmem_limit)),
            cost_estimate=cost,
        )(x_p, *weights)

    try:
        out_p = run(single_buffer_weights=True)
    except Exception:
        # pipeline_mode / Buffered(1) unsupported on this jax version: fall back
        # to default (double-buffered) weight blocks.
        out_p = run(single_buffer_weights=False)

    return out_p if Lp == L else out_p[:, :L, :]


def _encoder_layer_ref(x, params, *, num_heads, eps=1e-5):
    """Pure-JAX f32 reference (matches PyTorch EncoderLayer in eval mode)."""
    N, L, C = x.shape
    E = C // num_heads
    scale = 1.0 / math.sqrt(E)
    q = (x @ params["wq"] + params["bq"]).reshape(N, L, num_heads, E)
    k = (x @ params["wk"] + params["bk"]).reshape(N, L, num_heads, E)
    v = (x @ params["wv"] + params["bv"]).reshape(N, L, num_heads, E)
    s = jnp.einsum("nlhe,nmhe->nhlm", q, k) * scale
    p = jax.nn.softmax(s, axis=-1)
    o = jnp.einsum("nhlm,nmhe->nlhe", p, v).reshape(N, L, C)
    attn = o @ params["wo"] + params["bo"]

    def ln(u, g, b):
        mu = jnp.mean(u, axis=-1, keepdims=True)
        var = jnp.mean((u - mu) ** 2, axis=-1, keepdims=True)
        return (u - mu) * jax.lax.rsqrt(var + eps) * g + b

    x1 = ln(x + attn, params["g1"], params["be1"])
    y = jnp.maximum(x1 @ params["w1"] + params["b1"], 0.0)
    y = y @ params["w2"] + params["b2"]
    return ln(x1 + y, params["g2"], params["be2"])


def init_params(key, d_model, d_ff):
    ks = jax.random.split(key, 8)
    s_attn = 1.0 / math.sqrt(d_model)
    s_ffn1 = 1.0 / math.sqrt(d_model)
    s_ffn2 = 1.0 / math.sqrt(d_ff)
    return {
        "wq": jax.random.normal(ks[0], (d_model, d_model), jnp.float32) * s_attn,
        "bq": jnp.zeros((1, d_model), jnp.float32),
        "wk": jax.random.normal(ks[1], (d_model, d_model), jnp.float32) * s_attn,
        "bk": jnp.zeros((1, d_model), jnp.float32),
        "wv": jax.random.normal(ks[2], (d_model, d_model), jnp.float32) * s_attn,
        "bv": jnp.zeros((1, d_model), jnp.float32),
        "wo": jax.random.normal(ks[3], (d_model, d_model), jnp.float32) * s_attn,
        "bo": jnp.zeros((1, d_model), jnp.float32),
        # conv1: Conv1d(d_model -> d_ff, k=1) == x @ w1 + b1 (w1 = weight[:, :, 0].T)
        "w1": jax.random.normal(ks[4], (d_model, d_ff), jnp.float32) * s_ffn1,
        "b1": jax.random.normal(ks[5], (1, d_ff), jnp.float32) * 0.02,
        # conv2: Conv1d(d_ff -> d_model, k=1)
        "w2": jax.random.normal(ks[6], (d_ff, d_model), jnp.float32) * s_ffn2,
        "b2": jax.random.normal(ks[7], (1, d_model), jnp.float32) * 0.02,
        # LayerNorms
        "g1": jnp.ones((1, d_model), jnp.float32),
        "be1": jnp.zeros((1, d_model), jnp.float32),
        "g2": jnp.ones((1, d_model), jnp.float32),
        "be2": jnp.zeros((1, d_model), jnp.float32),
    }


if __name__ == "__main__":
    # Small shapes; L=12 deliberately not a multiple of 8 to exercise the
    # padding + key-mask path.
    N, L, d_model, d_ff, H = 4, 12, 32, 128, 4

    key = jax.random.PRNGKey(0)
    kx, kp = jax.random.split(key)
    x = jax.random.normal(kx, (N, L, d_model), jnp.float32)
    params = init_params(kp, d_model, d_ff)

    weights = prepare_weights(params)      # cast / fuse once, reuse across calls
    out = encoder_layer(x, weights, num_heads=H)
    out = jax.block_until_ready(out)

    assert out.shape == (N, L, d_model)
    assert bool(jnp.all(jnp.isfinite(out)))
    ref = _encoder_layer_ref(x, params, num_heads=H)
    err = float(jnp.max(jnp.abs(out - ref)))
    # bf16 matmuls vs an all-f32 reference: loose absolute tolerance.
    assert err < 1e-1, f"max abs err {err}"
    print("KERNEL_OK")
</pallas_src>

<mosaic_0001>
module attributes {stable_mosaic.version = 11 : i64} {
  func.func @_encoder_layer_kernel(%arg0: i32, %arg1: memref<2x16x32xf32, #tpu.memory_space<vmem>>, %arg2: memref<32x96xbf16, #tpu.memory_space<vmem>>, %arg3: memref<1x96xf32, #tpu.memory_space<vmem>>, %arg4: memref<32x32xbf16, #tpu.memory_space<vmem>>, %arg5: memref<1x32xf32, #tpu.memory_space<vmem>>, %arg6: memref<32x128xbf16, #tpu.memory_space<vmem>>, %arg7: memref<1x128xf32, #tpu.memory_space<vmem>>, %arg8: memref<128x32xbf16, #tpu.memory_space<vmem>>, %arg9: memref<1x32xf32, #tpu.memory_space<vmem>>, %arg10: memref<1x32xf32, #tpu.memory_space<vmem>>, %arg11: memref<1x32xf32, #tpu.memory_space<vmem>>, %arg12: memref<1x32xf32, #tpu.memory_space<vmem>>, %arg13: memref<1x32xf32, #tpu.memory_space<vmem>>, %arg14: memref<2x16x32xf32, #tpu.memory_space<vmem>>) attributes {dimension_semantics = [#tpu.dimension_semantics<parallel>], iteration_bounds = array<i64: 2>, scalar_prefetch = 0 : i64, scratch_operands = 0 : i64, tpu.core_type = #tpu.core_type<tc>, window_params = [{transform_indices = @transform_0, window_bounds = array<i64: 2, 16, 32>}, {pipeline_mode = #tpu.pipeline_mode<synchronous>, transform_indices = @transform_1, window_bounds = array<i64: 32, 96>}, {pipeline_mode = #tpu.pipeline_mode<synchronous>, transform_indices = @transform_2, window_bounds = array<i64: 1, 96>}, {pipeline_mode = #tpu.pipeline_mode<synchronous>, transform_indices = @transform_3, window_bounds = array<i64: 32, 32>}, {pipeline_mode = #tpu.pipeline_mode<synchronous>, transform_indices = @transform_4, window_bounds = array<i64: 1, 32>}, {pipeline_mode = #tpu.pipeline_mode<synchronous>, transform_indices = @transform_5, window_bounds = array<i64: 32, 128>}, {pipeline_mode = #tpu.pipeline_mode<synchronous>, transform_indices = @transform_6, window_bounds = array<i64: 1, 128>}, {pipeline_mode = #tpu.pipeline_mode<synchronous>, transform_indices = @transform_7, window_bounds = array<i64: 128, 32>}, {pipeline_mode = #tpu.pipeline_mode<synchronous>, transform_indices = @transform_8, window_bounds = array<i64: 1, 32>}, {pipeline_mode = #tpu.pipeline_mode<synchronous>, transform_indices = @transform_9, window_bounds = array<i64: 1, 32>}, {pipeline_mode = #tpu.pipeline_mode<synchronous>, transform_indices = @transform_10, window_bounds = array<i64: 1, 32>}, {pipeline_mode = #tpu.pipeline_mode<synchronous>, transform_indices = @transform_11, window_bounds = array<i64: 1, 32>}, {pipeline_mode = #tpu.pipeline_mode<synchronous>, transform_indices = @transform_12, window_bounds = array<i64: 1, 32>}, {transform_indices = @transform_13, window_bounds = array<i64: 2, 16, 32>}]} {
    %c0 = arith.constant 0 : index
    %c0_0 = arith.constant 0 : index
    %c0_1 = arith.constant 0 : index
    %0 = vector.load %arg1[%c0, %c0_0, %c0_1] : memref<2x16x32xf32, #tpu.memory_space<vmem>>, vector<2x16x32xf32>
    %1 = vector.shape_cast %0 : vector<2x16x32xf32> to vector<32x32xf32>
    %2 = arith.truncf %1 : vector<32x32xf32> to vector<32x32xbf16>
    %c0_2 = arith.constant 0 : index
    %c0_3 = arith.constant 0 : index
    %3 = vector.load %arg2[%c0_2, %c0_3] : memref<32x96xbf16, #tpu.memory_space<vmem>>, vector<32x96xbf16>
    %cst = arith.constant dense<0.000000e+00> : vector<32x96xf32>
    %4 = tpu.matmul %2, %3, %cst {dimension_numbers = #tpu.dot_dimension_numbers<[1], [0], [0], [1], [0, 0, 1, 1], [], []>} : vector<32x32xbf16>, vector<32x96xbf16>, vector<32x96xf32> -> vector<32x96xf32>
    %c0_4 = arith.constant 0 : index
    %c0_5 = arith.constant 0 : index
    %5 = vector.load %arg3[%c0_4, %c0_5] : memref<1x96xf32, #tpu.memory_space<vmem>>, vector<1x96xf32>
    %6 = vector.broadcast %5 : vector<1x96xf32> to vector<32x96xf32>
    %7 = arith.addf %4, %6 : vector<32x96xf32>
    %8 = arith.truncf %7 : vector<32x96xf32> to vector<32x96xbf16>
    %9 = vector.shape_cast %8 : vector<32x96xbf16> to vector<2x16x96xbf16>
    %10 = tpu.iota {dimensions = array<i32: 1>} : vector<1x16xi32>
    %c12_i32 = arith.constant 12 : i32
    %11 = vector.broadcast %c12_i32 : i32 to vector<1x16xi32>
    %12 = arith.cmpi slt, %10, %11 : vector<1x16xi32>
    %13 = vector.extract_strided_slice %9 {offsets = [0, 0, 0], sizes = [2, 16, 8], strides = [1, 1, 1]} : vector<2x16x96xbf16> to vector<2x16x8xbf16>
    %14 = vector.extract_strided_slice %9 {offsets = [0, 0, 32], sizes = [2, 16, 8], strides = [1, 1, 1]} : vector<2x16x96xbf16> to vector<2x16x8xbf16>
    %15 = vector.extract_strided_slice %9 {offsets = [0, 0, 64], sizes = [2, 16, 8], strides = [1, 1, 1]} : vector<2x16x96xbf16> to vector<2x16x8xbf16>
    "tpu.trace_start"() <{level = 10 : i32, message = "nle,nme->nlm"}> : () -> ()
    %cst_6 = arith.constant dense<0.000000e+00> : vector<2x16x16xf32>
    %16 = tpu.matmul %13, %14, %cst_6 {dimension_numbers = #tpu.dot_dimension_numbers<[2], [2], [1], [1], [0, 0, 0, 1, 1, 1], [0], [0]>} : vector<2x16x8xbf16>, vector<2x16x8xbf16>, vector<2x16x16xf32> -> vector<2x16x16xf32>
    "tpu.trace_stop"() : () -> ()
    %cst_7 = arith.constant 0.353553385 : f32
    %17 = vector.broadcast %cst_7 : f32 to vector<2x16x16xf32>
    %18 = arith.mulf %16, %17 : vector<2x16x16xf32>
    %cst_8 = arith.constant -1.000000e+30 : f32
    %19 = vector.shape_cast %12 : vector<1x16xi1> to vector<1x1x16xi1>
    %20 = vector.broadcast %19 : vector<1x1x16xi1> to vector<2x16x16xi1>
    %21 = vector.broadcast %cst_8 : f32 to vector<2x16x16xf32>
    %22 = arith.select %20, %18, %21 : vector<2x16x16xi1>, vector<2x16x16xf32>
    %cst_9 = arith.constant dense<0xFF800000> : vector<2x16xf32>
    %23 = vector.multi_reduction <maximumf>, %22, %cst_9 [2] : vector<2x16x16xf32> to vector<2x16xf32>
    %24 = vector.shape_cast %23 : vector<2x16xf32> to vector<2x16x1xf32>
    %25 = vector.broadcast %24 : vector<2x16x1xf32> to vector<2x16x16xf32>
    %26 = arith.subf %22, %25 : vector<2x16x16xf32>
    %27 = math.exp %26 : vector<2x16x16xf32>
    %cst_10 = arith.constant dense<0.000000e+00> : vector<2x16xf32>
    %28 = vector.multi_reduction <add>, %27, %cst_10 [2] : vector<2x16x16xf32> to vector<2x16xf32>
    %29 = vector.shape_cast %28 : vector<2x16xf32> to vector<2x16x1xf32>
    %30 = vector.broadcast %29 : vector<2x16x1xf32> to vector<2x16x16xf32>
    %31 = arith.divf %27, %30 : vector<2x16x16xf32>
    %32 = arith.truncf %31 : vector<2x16x16xf32> to vector<2x16x16xbf16>
    "tpu.trace_start"() <{level = 10 : i32, message = "nlm,nme->nle"}> : () -> ()
    %cst_11 = arith.constant dense<0.000000e+00> : vector<2x16x8xf32>
    %33 = tpu.matmul %32, %15, %cst_11 {dimension_numbers = #tpu.dot_dimension_numbers<[2], [1], [1], [2], [0, 0, 0, 1, 1, 2], [0], [0]>} : vector<2x16x16xbf16>, vector<2x16x8xbf16>, vector<2x16x8xf32> -> vector<2x16x8xf32>
    "tpu.trace_stop"() : () -> ()
    %34 = arith.truncf %33 : vector<2x16x8xf32> to vector<2x16x8xbf16>
    %35 = vector.extract_strided_slice %9 {offsets = [0, 0, 8], sizes = [2, 16, 8], strides = [1, 1, 1]} : vector<2x16x96xbf16> to vector<2x16x8xbf16>
    %36 = vector.extract_strided_slice %9 {offsets = [0, 0, 40], sizes = [2, 16, 8], strides = [1, 1, 1]} : vector<2x16x96xbf16> to vector<2x16x8xbf16>
    %37 = vector.extract_strided_slice %9 {offsets = [0, 0, 72], sizes = [2, 16, 8], strides = [1, 1, 1]} : vector<2x16x96xbf16> to vector<2x16x8xbf16>
    "tpu.trace_start"() <{level = 10 : i32, message = "nle,nme->nlm"}> : () -> ()
    %cst_12 = arith.constant dense<0.000000e+00> : vector<2x16x16xf32>
    %38 = tpu.matmul %35, %36, %cst_12 {dimension_numbers = #tpu.dot_dimension_numbers<[2], [2], [1], [1], [0, 0, 0, 1, 1, 1], [0], [0]>} : vector<2x16x8xbf16>, vector<2x16x8xbf16>, vector<2x16x16xf32> -> vector<2x16x16xf32>
    "tpu.trace_stop"() : () -> ()
    %cst_13 = arith.constant 0.353553385 : f32
    %39 = vector.broadcast %cst_13 : f32 to vector<2x16x16xf32>
    %40 = arith.mulf %38, %39 : vector<2x16x16xf32>
    %cst_14 = arith.constant -1.000000e+30 : f32
    %41 = vector.shape_cast %12 : vector<1x16xi1> to vector<1x1x16xi1>
    %42 = vector.broadcast %41 : vector<1x1x16xi1> to vector<2x16x16xi1>
    %43 = vector.broadcast %cst_14 : f32 to vector<2x16x16xf32>
    %44 = arith.select %42, %40, %43 : vector<2x16x16xi1>, vector<2x16x16xf32>
    %cst_15 = arith.constant dense<0xFF800000> : vector<2x16xf32>
    %45 = vector.multi_reduction <maximumf>, %44, %cst_15 [2] : vector<2x16x16xf32> to vector<2x16xf32>
    %46 = vector.shape_cast %45 : vector<2x16xf32> to vector<2x16x1xf32>
    %47 = vector.broadcast %46 : vector<2x16x1xf32> to vector<2x16x16xf32>
    %48 = arith.subf %44, %47 : vector<2x16x16xf32>
    %49 = math.exp %48 : vector<2x16x16xf32>
    %cst_16 = arith.constant dense<0.000000e+00> : vector<2x16xf32>
    %50 = vector.multi_reduction <add>, %49, %cst_16 [2] : vector<2x16x16xf32> to vector<2x16xf32>
    %51 = vector.shape_cast %50 : vector<2x16xf32> to vector<2x16x1xf32>
    %52 = vector.broadcast %51 : vector<2x16x1xf32> to vector<2x16x16xf32>
    %53 = arith.divf %49, %52 : vector<2x16x16xf32>
    %54 = arith.truncf %53 : vector<2x16x16xf32> to vector<2x16x16xbf16>
    "tpu.trace_start"() <{level = 10 : i32, message = "nlm,nme->nle"}> : () -> ()
    %cst_17 = arith.constant dense<0.000000e+00> : vector<2x16x8xf32>
    %55 = tpu.matmul %54, %37, %cst_17 {dimension_numbers = #tpu.dot_dimension_numbers<[2], [1], [1], [2], [0, 0, 0, 1, 1, 2], [0], [0]>} : vector<2x16x16xbf16>, vector<2x16x8xbf16>, vector<2x16x8xf32> -> vector<2x16x8xf32>
    "tpu.trace_stop"() : () -> ()
    %56 = arith.truncf %55 : vector<2x16x8xf32> to vector<2x16x8xbf16>
    %57 = vector.extract_strided_slice %9 {offsets = [0, 0, 16], sizes = [2, 16, 8], strides = [1, 1, 1]} : vector<2x16x96xbf16> to vector<2x16x8xbf16>
    %58 = vector.extract_strided_slice %9 {offsets = [0, 0, 48], sizes = [2, 16, 8], strides = [1, 1, 1]} : vector<2x16x96xbf16> to vector<2x16x8xbf16>
    %59 = vector.extract_strided_slice %9 {offsets = [0, 0, 80], sizes = [2, 16, 8], strides = [1, 1, 1]} : vector<2x16x96xbf16> to vector<2x16x8xbf16>
    "tpu.trace_start"() <{level = 10 : i32, message = "nle,nme->nlm"}> : () -> ()
    %cst_18 = arith.constant dense<0.000000e+00> : vector<2x16x16xf32>
    %60 = tpu.matmul %57, %58, %cst_18 {dimension_numbers = #tpu.dot_dimension_numbers<[2], [2], [1], [1], [0, 0, 0, 1, 1, 1], [0], [0]>} : vector<2x16x8xbf16>, vector<2x16x8xbf16>, vector<2x16x16xf32> -> vector<2x16x16xf32>
    "tpu.trace_stop"() : () -> ()
    %cst_19 = arith.constant 0.353553385 : f32
    %61 = vector.broadcast %cst_19 : f32 to vector<2x16x16xf32>
    %62 = arith.mulf %60, %61 : vector<2x16x16xf32>
    %cst_20 = arith.constant -1.000000e+30 : f32
    %63 = vector.shape_cast %12 : vector<1x16xi1> to vector<1x1x16xi1>
    %64 = vector.broadcast %63 : vector<1x1x16xi1> to vector<2x16x16xi1>
    %65 = vector.broadcast %cst_20 : f32 to vector<2x16x16xf32>
    %66 = arith.select %64, %62, %65 : vector<2x16x16xi1>, vector<2x16x16xf32>
    %cst_21 = arith.constant dense<0xFF800000> : vector<2x16xf32>
    %67 = vector.multi_reduction <maximumf>, %66, %cst_21 [2] : vector<2x16x16xf32> to vector<2x16xf32>
    %68 = vector.shape_cast %67 : vector<2x16xf32> to vector<2x16x1xf32>
    %69 = vector.broadcast %68 : vector<2x16x1xf32> to vector<2x16x16xf32>
    %70 = arith.subf %66, %69 : vector<2x16x16xf32>
    %71 = math.exp %70 : vector<2x16x16xf32>
    %cst_22 = arith.constant dense<0.000000e+00> : vector<2x16xf32>
    %72 = vector.multi_reduction <add>, %71, %cst_22 [2] : vector<2x16x16xf32> to vector<2x16xf32>
    %73 = vector.shape_cast %72 : vector<2x16xf32> to vector<2x16x1xf32>
    %74 = vector.broadcast %73 : vector<2x16x1xf32> to vector<2x16x16xf32>
    %75 = arith.divf %71, %74 : vector<2x16x16xf32>
    %76 = arith.truncf %75 : vector<2x16x16xf32> to vector<2x16x16xbf16>
    "tpu.trace_start"() <{level = 10 : i32, message = "nlm,nme->nle"}> : () -> ()
    %cst_23 = arith.constant dense<0.000000e+00> : vector<2x16x8xf32>
    %77 = tpu.matmul %76, %59, %cst_23 {dimension_numbers = #tpu.dot_dimension_numbers<[2], [1], [1], [2], [0, 0, 0, 1, 1, 2], [0], [0]>} : vector<2x16x16xbf16>, vector<2x16x8xbf16>, vector<2x16x8xf32> -> vector<2x16x8xf32>
    "tpu.trace_stop"() : () -> ()
    %78 = arith.truncf %77 : vector<2x16x8xf32> to vector<2x16x8xbf16>
    %79 = vector.extract_strided_slice %9 {offsets = [0, 0, 24], sizes = [2, 16, 8], strides = [1, 1, 1]} : vector<2x16x96xbf16> to vector<2x16x8xbf16>
    %80 = vector.extract_strided_slice %9 {offsets = [0, 0, 56], sizes = [2, 16, 8], strides = [1, 1, 1]} : vector<2x16x96xbf16> to vector<2x16x8xbf16>
    %81 = vector.extract_strided_slice %9 {offsets = [0, 0, 88], sizes = [2, 16, 8], strides = [1, 1, 1]} : vector<2x16x96xbf16> to vector<2x16x8xbf16>
    "tpu.trace_start"() <{level = 10 : i32, message = "nle,nme->nlm"}> : () -> ()
    %cst_24 = arith.constant dense<0.000000e+00> : vector<2x16x16xf32>
    %82 = tpu.matmul %79, %80, %cst_24 {dimension_numbers = #tpu.dot_dimension_numbers<[2], [2], [1], [1], [0, 0, 0, 1, 1, 1], [0], [0]>} : vector<2x16x8xbf16>, vector<2x16x8xbf16>, vector<2x16x16xf32> -> vector<2x16x16xf32>
    "tpu.trace_stop"() : () -> ()
    %cst_25 = arith.constant 0.353553385 : f32
    %83 = vector.broadcast %cst_25 : f32 to vector<2x16x16xf32>
    %84 = arith.mulf %82, %83 : vector<2x16x16xf32>
    %cst_26 = arith.constant -1.000000e+30 : f32
    %85 = vector.shape_cast %12 : vector<1x16xi1> to vector<1x1x16xi1>
    %86 = vector.broadcast %85 : vector<1x1x16xi1> to vector<2x16x16xi1>
    %87 = vector.broadcast %cst_26 : f32 to vector<2x16x16xf32>
    %88 = arith.select %86, %84, %87 : vector<2x16x16xi1>, vector<2x16x16xf32>
    %cst_27 = arith.constant dense<0xFF800000> : vector<2x16xf32>
    %89 = vector.multi_reduction <maximumf>, %88, %cst_27 [2] : vector<2x16x16xf32> to vector<2x16xf32>
    %90 = vector.shape_cast %89 : vector<2x16xf32> to vector<2x16x1xf32>
    %91 = vector.broadcast %90 : vector<2x16x1xf32> to vector<2x16x16xf32>
    %92 = arith.subf %88, %91 : vector<2x16x16xf32>
    %93 = math.exp %92 : vector<2x16x16xf32>
    %cst_28 = arith.constant dense<0.000000e+00> : vector<2x16xf32>
    %94 = vector.multi_reduction <add>, %93, %cst_28 [2] : vector<2x16x16xf32> to vector<2x16xf32>
    %95 = vector.shape_cast %94 : vector<2x16xf32> to vector<2x16x1xf32>
    %96 = vector.broadcast %95 : vector<2x16x1xf32> to vector<2x16x16xf32>
    %97 = arith.divf %93, %96 : vector<2x16x16xf32>
    %98 = arith.truncf %97 : vector<2x16x16xf32> to vector<2x16x16xbf16>
    "tpu.trace_start"() <{level = 10 : i32, message = "nlm,nme->nle"}> : () -> ()
    %cst_29 = arith.constant dense<0.000000e+00> : vector<2x16x8xf32>
    %99 = tpu.matmul %98, %81, %cst_29 {dimension_numbers = #tpu.dot_dimension_numbers<[2], [1], [1], [2], [0, 0, 0, 1, 1, 2], [0], [0]>} : vector<2x16x16xbf16>, vector<2x16x8xbf16>, vector<2x16x8xf32> -> vector<2x16x8xf32>
    "tpu.trace_stop"() : () -> ()
    %100 = arith.truncf %99 : vector<2x16x8xf32> to vector<2x16x8xbf16>
    %101 = tpu.concatenate %34, %56, %78, %100 in 2 : vector<2x16x8xbf16>, vector<2x16x8xbf16>, vector<2x16x8xbf16>, vector<2x16x8xbf16> -> vector<2x16x32xbf16>
    %102 = vector.shape_cast %101 : vector<2x16x32xbf16> to vector<32x32xbf16>
    %c0_30 = arith.constant 0 : index
    %c0_31 = arith.constant 0 : index
    %103 = vector.load %arg4[%c0_30, %c0_31] : memref<32x32xbf16, #tpu.memory_space<vmem>>, vector<32x32xbf16>
    %cst_32 = arith.constant dense<0.000000e+00> : vector<32x32xf32>
    %104 = tpu.matmul %102, %103, %cst_32 {dimension_numbers = #tpu.dot_dimension_numbers<[1], [0], [0], [1], [0, 0, 1, 1], [], []>} : vector<32x32xbf16>, vector<32x32xbf16>, vector<32x32xf32> -> vector<32x32xf32>
    %c0_33 = arith.constant 0 : index
    %c0_34 = arith.constant 0 : index
    %105 = vector.load %arg5[%c0_33, %c0_34] : memref<1x32xf32, #tpu.memory_space<vmem>>, vector<1x32xf32>
    %106 = vector.broadcast %105 : vector<1x32xf32> to vector<32x32xf32>
    %107 = arith.addf %104, %106 : vector<32x32xf32>
    %108 = arith.addf %1, %107 : vector<32x32xf32>
    %cst_35 = arith.constant dense<0.000000e+00> : vector<32xf32>
    %109 = vector.multi_reduction <add>, %108, %cst_35 [1] : vector<32x32xf32> to vector<32xf32>
    %110 = vector.shape_cast %109 : vector<32xf32> to vector<32x1xf32>
    %cst_36 = arith.constant 3.200000e+01 : f32
    %111 = vector.broadcast %cst_36 : f32 to vector<32x1xf32>
    %112 = arith.divf %110, %111 : vector<32x1xf32>
    %113 = vector.broadcast %112 : vector<32x1xf32> to vector<32x32xf32>
    %114 = arith.subf %108, %113 : vector<32x32xf32>
    %115 = arith.mulf %114, %114 : vector<32x32xf32>
    %cst_37 = arith.constant dense<0.000000e+00> : vector<32xf32>
    %116 = vector.multi_reduction <add>, %115, %cst_37 [1] : vector<32x32xf32> to vector<32xf32>
    %117 = vector.shape_cast %116 : vector<32xf32> to vector<32x1xf32>
    %cst_38 = arith.constant 3.200000e+01 : f32
    %118 = vector.broadcast %cst_38 : f32 to vector<32x1xf32>
    %119 = arith.divf %117, %118 : vector<32x1xf32>
    %120 = vector.broadcast %112 : vector<32x1xf32> to vector<32x32xf32>
    %121 = arith.subf %108, %120 : vector<32x32xf32>
    %cst_39 = arith.constant 9.99999974E-6 : f32
    %122 = vector.broadcast %cst_39 : f32 to vector<32x1xf32>
    %123 = arith.addf %119, %122 : vector<32x1xf32>
    %124 = math.rsqrt %123 : vector<32x1xf32>
    %125 = vector.broadcast %124 : vector<32x1xf32> to vector<32x32xf32>
    %126 = arith.mulf %121, %125 : vector<32x32xf32>
    %c0_40 = arith.constant 0 : index
    %c0_41 = arith.constant 0 : index
    %127 = vector.load %arg10[%c0_40, %c0_41] : memref<1x32xf32, #tpu.memory_space<vmem>>, vector<1x32xf32>
    %128 = vector.broadcast %127 : vector<1x32xf32> to vector<32x32xf32>
    %129 = arith.mulf %126, %128 : vector<32x32xf32>
    %c0_42 = arith.constant 0 : index
    %c0_43 = arith.constant 0 : index
    %130 = vector.load %arg11[%c0_42, %c0_43] : memref<1x32xf32, #tpu.memory_space<vmem>>, vector<1x32xf32>
    %131 = vector.broadcast %130 : vector<1x32xf32> to vector<32x32xf32>
    %132 = arith.addf %129, %131 : vector<32x32xf32>
    %133 = arith.truncf %132 : vector<32x32xf32> to vector<32x32xbf16>
    %c0_44 = arith.constant 0 : index
    %c0_45 = arith.constant 0 : index
    %134 = vector.load %arg6[%c0_44, %c0_45] : memref<32x128xbf16, #tpu.memory_space<vmem>>, vector<32x128xbf16>
    %cst_46 = arith.constant dense<0.000000e+00> : vector<32x128xf32>
    %135 = tpu.matmul %133, %134, %cst_46 {dimension_numbers = #tpu.dot_dimension_numbers<[1], [0], [0], [1], [0, 0, 1, 1], [], []>} : vector<32x32xbf16>, vector<32x128xbf16>, vector<32x128xf32> -> vector<32x128xf32>
    %c0_47 = arith.constant 0 : index
    %c0_48 = arith.constant 0 : index
    %136 = vector.load %arg7[%c0_47, %c0_48] : memref<1x128xf32, #tpu.memory_space<vmem>>, vector<1x128xf32>
    %137 = vector.broadcast %136 : vector<1x128xf32> to vector<32x128xf32>
    %138 = arith.addf %135, %137 : vector<32x128xf32>
    %cst_49 = arith.constant 0.000000e+00 : f32
    %139 = vector.broadcast %cst_49 : f32 to vector<32x128xf32>
    %140 = arith.maximumf %138, %139 : vector<32x128xf32>
    %141 = arith.truncf %140 : vector<32x128xf32> to vector<32x128xbf16>
    %c0_50 = arith.constant 0 : index
    %c0_51 = arith.constant 0 : index
    %142 = vector.load %arg8[%c0_50, %c0_51] : memref<128x32xbf16, #tpu.memory_space<vmem>>, vector<128x32xbf16>
    %cst_52 = arith.constant dense<0.000000e+00> : vector<32x32xf32>
    %143 = tpu.matmul %141, %142, %cst_52 {dimension_numbers = #tpu.dot_dimension_numbers<[1], [0], [0], [1], [0, 0, 1, 1], [], []>} : vector<32x128xbf16>, vector<128x32xbf16>, vector<32x32xf32> -> vector<32x32xf32>
    %c0_53 = arith.constant 0 : index
    %c0_54 = arith.constant 0 : index
    %144 = vector.load %arg9[%c0_53, %c0_54] : memref<1x32xf32, #tpu.memory_space<vmem>>, vector<1x32xf32>
    %145 = vector.broadcast %144 : vector<1x32xf32> to vector<32x32xf32>
    %146 = arith.addf %143, %145 : vector<32x32xf32>
    %147 = arith.addf %132, %146 : vector<32x32xf32>
    %cst_55 = arith.constant dense<0.000000e+00> : vector<32xf32>
    %148 = vector.multi_reduction <add>, %147, %cst_55 [1] : vector<32x32xf32> to vector<32xf32>
    %149 = vector.shape_cast %148 : vector<32xf32> to vector<32x1xf32>
    %cst_56 = arith.constant 3.200000e+01 : f32
    %150 = vector.broadcast %cst_56 : f32 to vector<32x1xf32>
    %151 = arith.divf %149, %150 : vector<32x1xf32>
    %152 = vector.broadcast %151 : vector<32x1xf32> to vector<32x32xf32>
    %153 = arith.subf %147, %152 : vector<32x32xf32>
    %154 = arith.mulf %153, %153 : vector<32x32xf32>
    %cst_57 = arith.constant dense<0.000000e+00> : vector<32xf32>
    %155 = vector.multi_reduction <add>, %154, %cst_57 [1] : vector<32x32xf32> to vector<32xf32>
    %156 = vector.shape_cast %155 : vector<32xf32> to vector<32x1xf32>
    %cst_58 = arith.constant 3.200000e+01 : f32
    %157 = vector.broadcast %cst_58 : f32 to vector<32x1xf32>
    %158 = arith.divf %156, %157 : vector<32x1xf32>
    %159 = vector.broadcast %151 : vector<32x1xf32> to vector<32x32xf32>
    %160 = arith.subf %147, %159 : vector<32x32xf32>
    %cst_59 = arith.constant 9.99999974E-6 : f32
    %161 = vector.broadcast %cst_59 : f32 to vector<32x1xf32>
    %162 = arith.addf %158, %161 : vector<32x1xf32>
    %163 = math.rsqrt %162 : vector<32x1xf32>
    %164 = vector.broadcast %163 : vector<32x1xf32> to vector<32x32xf32>
    %165 = arith.mulf %160, %164 : vector<32x32xf32>
    %c0_60 = arith.constant 0 : index
    %c0_61 = arith.constant 0 : index
    %166 = vector.load %arg12[%c0_60, %c0_61] : memref<1x32xf32, #tpu.memory_space<vmem>>, vector<1x32xf32>
    %167 = vector.broadcast %166 : vector<1x32xf32> to vector<32x32xf32>
    %168 = arith.mulf %165, %167 : vector<32x32xf32>
    %c0_62 = arith.constant 0 : index
    %c0_63 = arith.constant 0 : index
    %169 = vector.load %arg13[%c0_62, %c0_63] : memref<1x32xf32, #tpu.memory_space<vmem>>, vector<1x32xf32>
    %170 = vector.broadcast %169 : vector<1x32xf32> to vector<32x32xf32>
    %171 = arith.addf %168, %170 : vector<32x32xf32>
    %172 = vector.shape_cast %171 : vector<32x32xf32> to vector<2x16x32xf32>
    %c0_64 = arith.constant 0 : index
    %c0_65 = arith.constant 0 : index
    %c0_66 = arith.constant 0 : index
    %173 = vector.load %arg14[%c0_64, %c0_65, %c0_66] : memref<2x16x32xf32, #tpu.memory_space<vmem>>, vector<2x16x32xf32>
    tpu.vector_store %arg14[%c0_64, %c0_65, %c0_66], %172 {strides = array<i32>} : memref<2x16x32xf32, #tpu.memory_space<vmem>>, vector<2x16x32xf32>,
    return
  }
  func.func @transform_0(%arg0: i32) -> (i32, i32, i32) {
    %c0_i32 = arith.constant 0 : i32
    %c0_i32_0 = arith.constant 0 : i32
    %c0_i32_1 = arith.constant 0 : i32
    return %arg0, %c0_i32, %c0_i32_0 : i32, i32, i32
  }
  func.func @transform_1(%arg0: i32) -> (i32, i32) {
    %c0_i32 = arith.constant 0 : i32
    %c0_i32_0 = arith.constant 0 : i32
    %c0_i32_1 = arith.constant 0 : i32
    return %c0_i32, %c0_i32_0 : i32, i32
  }
  func.func @transform_2(%arg0: i32) -> (i32, i32) {
    %c0_i32 = arith.constant 0 : i32
    %c0_i32_0 = arith.constant 0 : i32
    %c0_i32_1 = arith.constant 0 : i32
    return %c0_i32, %c0_i32_0 : i32, i32
  }
  func.func @transform_3(%arg0: i32) -> (i32, i32) {
    %c0_i32 = arith.constant 0 : i32
    %c0_i32_0 = arith.constant 0 : i32
    %c0_i32_1 = arith.constant 0 : i32
    return %c0_i32, %c0_i32_0 : i32, i32
  }
  func.func @transform_4(%arg0: i32) -> (i32, i32) {
    %c0_i32 = arith.constant 0 : i32
    %c0_i32_0 = arith.constant 0 : i32
    %c0_i32_1 = arith.constant 0 : i32
    return %c0_i32, %c0_i32_0 : i32, i32
  }
  func.func @transform_5(%arg0: i32) -> (i32, i32) {
    %c0_i32 = arith.constant 0 : i32
    %c0_i32_0 = arith.constant 0 : i32
    %c0_i32_1 = arith.constant 0 : i32
    return %c0_i32, %c0_i32_0 : i32, i32
  }
  func.func @transform_6(%arg0: i32) -> (i32, i32) {
    %c0_i32 = arith.constant 0 : i32
    %c0_i32_0 = arith.constant 0 : i32
    %c0_i32_1 = arith.constant 0 : i32
    return %c0_i32, %c0_i32_0 : i32, i32
  }
  func.func @transform_7(%arg0: i32) -> (i32, i32) {
    %c0_i32 = arith.constant 0 : i32
    %c0_i32_0 = arith.constant 0 : i32
    %c0_i32_1 = arith.constant 0 : i32
    return %c0_i32, %c0_i32_0 : i32, i32
  }
  func.func @transform_8(%arg0: i32) -> (i32, i32) {
    %c0_i32 = arith.constant 0 : i32
    %c0_i32_0 = arith.constant 0 : i32
    %c0_i32_1 = arith.constant 0 : i32
    return %c0_i32, %c0_i32_0 : i32, i32
  }
  func.func @transform_9(%arg0: i32) -> (i32, i32) {
    %c0_i32 = arith.constant 0 : i32
    %c0_i32_0 = arith.constant 0 : i32
    %c0_i32_1 = arith.constant 0 : i32
    return %c0_i32, %c0_i32_0 : i32, i32
  }
  func.func @transform_10(%arg0: i32) -> (i32, i32) {
    %c0_i32 = arith.constant 0 : i32
    %c0_i32_0 = arith.constant 0 : i32
    %c0_i32_1 = arith.constant 0 : i32
    return %c0_i32, %c0_i32_0 : i32, i32
  }
  func.func @transform_11(%arg0: i32) -> (i32, i32) {
    %c0_i32 = arith.constant 0 : i32
    %c0_i32_0 = arith.constant 0 : i32
    %c0_i32_1 = arith.constant 0 : i32
    return %c0_i32, %c0_i32_0 : i32, i32
  }
  func.func @transform_12(%arg0: i32) -> (i32, i32) {
    %c0_i32 = arith.constant 0 : i32
    %c0_i32_0 = arith.constant 0 : i32
    %c0_i32_1 = arith.constant 0 : i32
    return %c0_i32, %c0_i32_0 : i32, i32
  }
  func.func @transform_13(%arg0: i32) -> (i32, i32, i32) {
    %c0_i32 = arith.constant 0 : i32
    %c0_i32_0 = arith.constant 0 : i32
    %c0_i32_1 = arith.constant 0 : i32
    return %arg0, %c0_i32, %c0_i32_0 : i32, i32, i32
  }
}

module attributes {stable_mosaic.version = 11 : i64} {
  func.func @_encoder_layer_kernel(%arg0: i32, %arg1: memref<2x16x32xf32, #tpu.memory_space<vmem>>, %arg2: memref<32x96xbf16, #tpu.memory_space<vmem>>, %arg3: memref<1x96xf32, #tpu.memory_space<vmem>>, %arg4: memref<32x32xbf16, #tpu.memory_space<vmem>>, %arg5: memref<1x32xf32, #tpu.memory_space<vmem>>, %arg6: memref<32x128xbf16, #tpu.memory_space<vmem>>, %arg7: memref<1x128xf32, #tpu.memory_space<vmem>>, %arg8: memref<128x32xbf16, #tpu.memory_space<vmem>>, %arg9: memref<1x32xf32, #tpu.memory_space<vmem>>, %arg10: memref<1x32xf32, #tpu.memory_space<vmem>>, %arg11: memref<1x32xf32, #tpu.memory_space<vmem>>, %arg12: memref<1x32xf32, #tpu.memory_space<vmem>>, %arg13: memref<1x32xf32, #tpu.memory_space<vmem>>, %arg14: memref<2x16x32xf32, #tpu.memory_space<vmem>>) attributes {dimension_semantics = [#tpu.dimension_semantics<parallel>], iteration_bounds = array<i64: 2>, scalar_prefetch = 0 : i64, scratch_operands = 0 : i64, tpu.core_type = #tpu.core_type<tc>, window_params = [{transform_indices = @transform_0, window_bounds = array<i64: 2, 16, 32>}, {pipeline_mode = #tpu.pipeline_mode<synchronous>, transform_indices = @transform_1, window_bounds = array<i64: 32, 96>}, {pipeline_mode = #tpu.pipeline_mode<synchronous>, transform_indices = @transform_2, window_bounds = array<i64: 1, 96>}, {pipeline_mode = #tpu.pipeline_mode<synchronous>, transform_indices = @transform_3, window_bounds = array<i64: 32, 32>}, {pipeline_mode = #tpu.pipeline_mode<synchronous>, transform_indices = @transform_4, window_bounds = array<i64: 1, 32>}, {pipeline_mode = #tpu.pipeline_mode<synchronous>, transform_indices = @transform_5, window_bounds = array<i64: 32, 128>}, {pipeline_mode = #tpu.pipeline_mode<synchronous>, transform_indices = @transform_6, window_bounds = array<i64: 1, 128>}, {pipeline_mode = #tpu.pipeline_mode<synchronous>, transform_indices = @transform_7, window_bounds = array<i64: 128, 32>}, {pipeline_mode = #tpu.pipeline_mode<synchronous>, transform_indices = @transform_8, window_bounds = array<i64: 1, 32>}, {pipeline_mode = #tpu.pipeline_mode<synchronous>, transform_indices = @transform_9, window_bounds = array<i64: 1, 32>}, {pipeline_mode = #tpu.pipeline_mode<synchronous>, transform_indices = @transform_10, window_bounds = array<i64: 1, 32>}, {pipeline_mode = #tpu.pipeline_mode<synchronous>, transform_indices = @transform_11, window_bounds = array<i64: 1, 32>}, {pipeline_mode = #tpu.pipeline_mode<synchronous>, transform_indices = @transform_12, window_bounds = array<i64: 1, 32>}, {transform_indices = @transform_13, window_bounds = array<i64: 2, 16, 32>}]} {
    %c0 = arith.constant 0 : index
    %c0_0 = arith.constant 0 : index
    %c0_1 = arith.constant 0 : index
    %0 = vector.load %arg1[%c0, %c0_0, %c0_1] : memref<2x16x32xf32, #tpu.memory_space<vmem>>, vector<2x16x32xf32>
    %1 = vector.shape_cast %0 : vector<2x16x32xf32> to vector<32x32xf32>
    %2 = arith.truncf %1 : vector<32x32xf32> to vector<32x32xbf16>
    %c0_2 = arith.constant 0 : index
    %c0_3 = arith.constant 0 : index
    %3 = vector.load %arg2[%c0_2, %c0_3] : memref<32x96xbf16, #tpu.memory_space<vmem>>, vector<32x96xbf16>
    %cst = arith.constant dense<0.000000e+00> : vector<32x96xf32>
    %4 = tpu.matmul %2, %3, %cst {dimension_numbers = #tpu.dot_dimension_numbers<[1], [0], [0], [1], [0, 0, 1, 1], [], []>} : vector<32x32xbf16>, vector<32x96xbf16>, vector<32x96xf32> -> vector<32x96xf32>
    %c0_4 = arith.constant 0 : index
    %c0_5 = arith.constant 0 : index
    %5 = vector.load %arg3[%c0_4, %c0_5] : memref<1x96xf32, #tpu.memory_space<vmem>>, vector<1x96xf32>
    %6 = vector.broadcast %5 : vector<1x96xf32> to vector<32x96xf32>
    %7 = arith.addf %4, %6 : vector<32x96xf32>
    %8 = arith.truncf %7 : vector<32x96xf32> to vector<32x96xbf16>
    %9 = vector.shape_cast %8 : vector<32x96xbf16> to vector<2x16x96xbf16>
    %10 = tpu.iota {dimensions = array<i32: 1>} : vector<1x16xi32>
    %c12_i32 = arith.constant 12 : i32
    %11 = vector.broadcast %c12_i32 : i32 to vector<1x16xi32>
    %12 = arith.cmpi slt, %10, %11 : vector<1x16xi32>
    %13 = vector.extract_strided_slice %9 {offsets = [0, 0, 0], sizes = [2, 16, 8], strides = [1, 1, 1]} : vector<2x16x96xbf16> to vector<2x16x8xbf16>
    %14 = vector.extract_strided_slice %9 {offsets = [0, 0, 32], sizes = [2, 16, 8], strides = [1, 1, 1]} : vector<2x16x96xbf16> to vector<2x16x8xbf16>
    %15 = vector.extract_strided_slice %9 {offsets = [0, 0, 64], sizes = [2, 16, 8], strides = [1, 1, 1]} : vector<2x16x96xbf16> to vector<2x16x8xbf16>
    "tpu.trace_start"() <{level = 10 : i32, message = "nle,nme->nlm"}> : () -> ()
    %cst_6 = arith.constant dense<0.000000e+00> : vector<2x16x16xf32>
    %16 = tpu.matmul %13, %14, %cst_6 {dimension_numbers = #tpu.dot_dimension_numbers<[2], [2], [1], [1], [0, 0, 0, 1, 1, 1], [0], [0]>} : vector<2x16x8xbf16>, vector<2x16x8xbf16>, vector<2x16x16xf32> -> vector<2x16x16xf32>
    "tpu.trace_stop"() : () -> ()
    %cst_7 = arith.constant 0.353553385 : f32
    %17 = vector.broadcast %cst_7 : f32 to vector<2x16x16xf32>
    %18 = arith.mulf %16, %17 : vector<2x16x16xf32>
    %cst_8 = arith.constant -1.000000e+30 : f32
    %19 = vector.shape_cast %12 : vector<1x16xi1> to vector<1x1x16xi1>
    %20 = vector.broadcast %19 : vector<1x1x16xi1> to vector<2x16x16xi1>
    %21 = vector.broadcast %cst_8 : f32 to vector<2x16x16xf32>
    %22 = arith.select %20, %18, %21 : vector<2x16x16xi1>, vector<2x16x16xf32>
    %cst_9 = arith.constant dense<0xFF800000> : vector<2x16xf32>
    %23 = vector.multi_reduction <maximumf>, %22, %cst_9 [2] : vector<2x16x16xf32> to vector<2x16xf32>
    %24 = vector.shape_cast %23 : vector<2x16xf32> to vector<2x16x1xf32>
    %25 = vector.broadcast %24 : vector<2x16x1xf32> to vector<2x16x16xf32>
    %26 = arith.subf %22, %25 : vector<2x16x16xf32>
    %27 = math.exp %26 : vector<2x16x16xf32>
    %cst_10 = arith.constant dense<0.000000e+00> : vector<2x16xf32>
    %28 = vector.multi_reduction <add>, %27, %cst_10 [2] : vector<2x16x16xf32> to vector<2x16xf32>
    %29 = vector.shape_cast %28 : vector<2x16xf32> to vector<2x16x1xf32>
    %30 = vector.broadcast %29 : vector<2x16x1xf32> to vector<2x16x16xf32>
    %31 = arith.divf %27, %30 : vector<2x16x16xf32>
    %32 = arith.truncf %31 : vector<2x16x16xf32> to vector<2x16x16xbf16>
    "tpu.trace_start"() <{level = 10 : i32, message = "nlm,nme->nle"}> : () -> ()
    %cst_11 = arith.constant dense<0.000000e+00> : vector<2x16x8xf32>
    %33 = tpu.matmul %32, %15, %cst_11 {dimension_numbers = #tpu.dot_dimension_numbers<[2], [1], [1], [2], [0, 0, 0, 1, 1, 2], [0], [0]>} : vector<2x16x16xbf16>, vector<2x16x8xbf16>, vector<2x16x8xf32> -> vector<2x16x8xf32>
    "tpu.trace_stop"() : () -> ()
    %34 = arith.truncf %33 : vector<2x16x8xf32> to vector<2x16x8xbf16>
    %35 = vector.extract_strided_slice %9 {offsets = [0, 0, 8], sizes = [2, 16, 8], strides = [1, 1, 1]} : vector<2x16x96xbf16> to vector<2x16x8xbf16>
    %36 = vector.extract_strided_slice %9 {offsets = [0, 0, 40], sizes = [2, 16, 8], strides = [1, 1, 1]} : vector<2x16x96xbf16> to vector<2x16x8xbf16>
    %37 = vector.extract_strided_slice %9 {offsets = [0, 0, 72], sizes = [2, 16, 8], strides = [1, 1, 1]} : vector<2x16x96xbf16> to vector<2x16x8xbf16>
    "tpu.trace_start"() <{level = 10 : i32, message = "nle,nme->nlm"}> : () -> ()
    %cst_12 = arith.constant dense<0.000000e+00> : vector<2x16x16xf32>
    %38 = tpu.matmul %35, %36, %cst_12 {dimension_numbers = #tpu.dot_dimension_numbers<[2], [2], [1], [1], [0, 0, 0, 1, 1, 1], [0], [0]>} : vector<2x16x8xbf16>, vector<2x16x8xbf16>, vector<2x16x16xf32> -> vector<2x16x16xf32>
    "tpu.trace_stop"() : () -> ()
    %cst_13 = arith.constant 0.353553385 : f32
    %39 = vector.broadcast %cst_13 : f32 to vector<2x16x16xf32>
    %40 = arith.mulf %38, %39 : vector<2x16x16xf32>
    %cst_14 = arith.constant -1.000000e+30 : f32
    %41 = vector.shape_cast %12 : vector<1x16xi1> to vector<1x1x16xi1>
    %42 = vector.broadcast %41 : vector<1x1x16xi1> to vector<2x16x16xi1>
    %43 = vector.broadcast %cst_14 : f32 to vector<2x16x16xf32>
    %44 = arith.select %42, %40, %43 : vector<2x16x16xi1>, vector<2x16x16xf32>
    %cst_15 = arith.constant dense<0xFF800000> : vector<2x16xf32>
    %45 = vector.multi_reduction <maximumf>, %44, %cst_15 [2] : vector<2x16x16xf32> to vector<2x16xf32>
    %46 = vector.shape_cast %45 : vector<2x16xf32> to vector<2x16x1xf32>
    %47 = vector.broadcast %46 : vector<2x16x1xf32> to vector<2x16x16xf32>
    %48 = arith.subf %44, %47 : vector<2x16x16xf32>
    %49 = math.exp %48 : vector<2x16x16xf32>
    %cst_16 = arith.constant dense<0.000000e+00> : vector<2x16xf32>
    %50 = vector.multi_reduction <add>, %49, %cst_16 [2] : vector<2x16x16xf32> to vector<2x16xf32>
    %51 = vector.shape_cast %50 : vector<2x16xf32> to vector<2x16x1xf32>
    %52 = vector.broadcast %51 : vector<2x16x1xf32> to vector<2x16x16xf32>
    %53 = arith.divf %49, %52 : vector<2x16x16xf32>
    %54 = arith.truncf %53 : vector<2x16x16xf32> to vector<2x16x16xbf16>
    "tpu.trace_start"() <{level = 10 : i32, message = "nlm,nme->nle"}> : () -> ()
    %cst_17 = arith.constant dense<0.000000e+00> : vector<2x16x8xf32>
    %55 = tpu.matmul %54, %37, %cst_17 {dimension_numbers = #tpu.dot_dimension_numbers<[2], [1], [1], [2], [0, 0, 0, 1, 1, 2], [0], [0]>} : vector<2x16x16xbf16>, vector<2x16x8xbf16>, vector<2x16x8xf32> -> vector<2x16x8xf32>
    "tpu.trace_stop"() : () -> ()
    %56 = arith.truncf %55 : vector<2x16x8xf32> to vector<2x16x8xbf16>
    %57 = vector.extract_strided_slice %9 {offsets = [0, 0, 16], sizes = [2, 16, 8], strides = [1, 1, 1]} : vector<2x16x96xbf16> to vector<2x16x8xbf16>
    %58 = vector.extract_strided_slice %9 {offsets = [0, 0, 48], sizes = [2, 16, 8], strides = [1, 1, 1]} : vector<2x16x96xbf16> to vector<2x16x8xbf16>
    %59 = vector.extract_strided_slice %9 {offsets = [0, 0, 80], sizes = [2, 16, 8], strides = [1, 1, 1]} : vector<2x16x96xbf16> to vector<2x16x8xbf16>
    "tpu.trace_start"() <{level = 10 : i32, message = "nle,nme->nlm"}> : () -> ()
    %cst_18 = arith.constant dense<0.000000e+00> : vector<2x16x16xf32>
    %60 = tpu.matmul %57, %58, %cst_18 {dimension_numbers = #tpu.dot_dimension_numbers<[2], [2], [1], [1], [0, 0, 0, 1, 1, 1], [0], [0]>} : vector<2x16x8xbf16>, vector<2x16x8xbf16>, vector<2x16x16xf32> -> vector<2x16x16xf32>
    "tpu.trace_stop"() : () -> ()
    %cst_19 = arith.constant 0.353553385 : f32
    %61 = vector.broadcast %cst_19 : f32 to vector<2x16x16xf32>
    %62 = arith.mulf %60, %61 : vector<2x16x16xf32>
    %cst_20 = arith.constant -1.000000e+30 : f32
    %63 = vector.shape_cast %12 : vector<1x16xi1> to vector<1x1x16xi1>
    %64 = vector.broadcast %63 : vector<1x1x16xi1> to vector<2x16x16xi1>
    %65 = vector.broadcast %cst_20 : f32 to vector<2x16x16xf32>
    %66 = arith.select %64, %62, %65 : vector<2x16x16xi1>, vector<2x16x16xf32>
    %cst_21 = arith.constant dense<0xFF800000> : vector<2x16xf32>
    %67 = vector.multi_reduction <maximumf>, %66, %cst_21 [2] : vector<2x16x16xf32> to vector<2x16xf32>
    %68 = vector.shape_cast %67 : vector<2x16xf32> to vector<2x16x1xf32>
    %69 = vector.broadcast %68 : vector<2x16x1xf32> to vector<2x16x16xf32>
    %70 = arith.subf %66, %69 : vector<2x16x16xf32>
    %71 = math.exp %70 : vector<2x16x16xf32>
    %cst_22 = arith.constant dense<0.000000e+00> : vector<2x16xf32>
    %72 = vector.multi_reduction <add>, %71, %cst_22 [2] : vector<2x16x16xf32> to vector<2x16xf32>
    %73 = vector.shape_cast %72 : vector<2x16xf32> to vector<2x16x1xf32>
    %74 = vector.broadcast %73 : vector<2x16x1xf32> to vector<2x16x16xf32>
    %75 = arith.divf %71, %74 : vector<2x16x16xf32>
    %76 = arith.truncf %75 : vector<2x16x16xf32> to vector<2x16x16xbf16>
    "tpu.trace_start"() <{level = 10 : i32, message = "nlm,nme->nle"}> : () -> ()
    %cst_23 = arith.constant dense<0.000000e+00> : vector<2x16x8xf32>
    %77 = tpu.matmul %76, %59, %cst_23 {dimension_numbers = #tpu.dot_dimension_numbers<[2], [1], [1], [2], [0, 0, 0, 1, 1, 2], [0], [0]>} : vector<2x16x16xbf16>, vector<2x16x8xbf16>, vector<2x16x8xf32> -> vector<2x16x8xf32>
    "tpu.trace_stop"() : () -> ()
    %78 = arith.truncf %77 : vector<2x16x8xf32> to vector<2x16x8xbf16>
    %79 = vector.extract_strided_slice %9 {offsets = [0, 0, 24], sizes = [2, 16, 8], strides = [1, 1, 1]} : vector<2x16x96xbf16> to vector<2x16x8xbf16>
    %80 = vector.extract_strided_slice %9 {offsets = [0, 0, 56], sizes = [2, 16, 8], strides = [1, 1, 1]} : vector<2x16x96xbf16> to vector<2x16x8xbf16>
    %81 = vector.extract_strided_slice %9 {offsets = [0, 0, 88], sizes = [2, 16, 8], strides = [1, 1, 1]} : vector<2x16x96xbf16> to vector<2x16x8xbf16>
    "tpu.trace_start"() <{level = 10 : i32, message = "nle,nme->nlm"}> : () -> ()
    %cst_24 = arith.constant dense<0.000000e+00> : vector<2x16x16xf32>
    %82 = tpu.matmul %79, %80, %cst_24 {dimension_numbers = #tpu.dot_dimension_numbers<[2], [2], [1], [1], [0, 0, 0, 1, 1, 1], [0], [0]>} : vector<2x16x8xbf16>, vector<2x16x8xbf16>, vector<2x16x16xf32> -> vector<2x16x16xf32>
    "tpu.trace_stop"() : () -> ()
    %cst_25 = arith.constant 0.353553385 : f32
    %83 = vector.broadcast %cst_25 : f32 to vector<2x16x16xf32>
    %84 = arith.mulf %82, %83 : vector<2x16x16xf32>
    %cst_26 = arith.constant -1.000000e+30 : f32
    %85 = vector.shape_cast %12 : vector<1x16xi1> to vector<1x1x16xi1>
    %86 = vector.broadcast %85 : vector<1x1x16xi1> to vector<2x16x16xi1>
    %87 = vector.broadcast %cst_26 : f32 to vector<2x16x16xf32>
    %88 = arith.select %86, %84, %87 : vector<2x16x16xi1>, vector<2x16x16xf32>
    %cst_27 = arith.constant dense<0xFF800000> : vector<2x16xf32>
    %89 = vector.multi_reduction <maximumf>, %88, %cst_27 [2] : vector<2x16x16xf32> to vector<2x16xf32>
    %90 = vector.shape_cast %89 : vector<2x16xf32> to vector<2x16x1xf32>
    %91 = vector.broadcast %90 : vector<2x16x1xf32> to vector<2x16x16xf32>
    %92 = arith.subf %88, %91 : vector<2x16x16xf32>
    %93 = math.exp %92 : vector<2x16x16xf32>
    %cst_28 = arith.constant dense<0.000000e+00> : vector<2x16xf32>
    %94 = vector.multi_reduction <add>, %93, %cst_28 [2] : vector<2x16x16xf32> to vector<2x16xf32>
    %95 = vector.shape_cast %94 : vector<2x16xf32> to vector<2x16x1xf32>
    %96 = vector.broadcast %95 : vector<2x16x1xf32> to vector<2x16x16xf32>
    %97 = arith.divf %93, %96 : vector<2x16x16xf32>
    %98 = arith.truncf %97 : vector<2x16x16xf32> to vector<2x16x16xbf16>
    "tpu.trace_start"() <{level = 10 : i32, message = "nlm,nme->nle"}> : () -> ()
    %cst_29 = arith.constant dense<0.000000e+00> : vector<2x16x8xf32>
    %99 = tpu.matmul %98, %81, %cst_29 {dimension_numbers = #tpu.dot_dimension_numbers<[2], [1], [1], [2], [0, 0, 0, 1, 1, 2], [0], [0]>} : vector<2x16x16xbf16>, vector<2x16x8xbf16>, vector<2x16x8xf32> -> vector<2x16x8xf32>
    "tpu.trace_stop"() : () -> ()
    %100 = arith.truncf %99 : vector<2x16x8xf32> to vector<2x16x8xbf16>
    %101 = tpu.concatenate %34, %56, %78, %100 in 2 : vector<2x16x8xbf16>, vector<2x16x8xbf16>, vector<2x16x8xbf16>, vector<2x16x8xbf16> -> vector<2x16x32xbf16>
    %102 = vector.shape_cast %101 : vector<2x16x32xbf16> to vector<32x32xbf16>
    %c0_30 = arith.constant 0 : index
    %c0_31 = arith.constant 0 : index
    %103 = vector.load %arg4[%c0_30, %c0_31] : memref<32x32xbf16, #tpu.memory_space<vmem>>, vector<32x32xbf16>
    %cst_32 = arith.constant dense<0.000000e+00> : vector<32x32xf32>
    %104 = tpu.matmul %102, %103, %cst_32 {dimension_numbers = #tpu.dot_dimension_numbers<[1], [0], [0], [1], [0, 0, 1, 1], [], []>} : vector<32x32xbf16>, vector<32x32xbf16>, vector<32x32xf32> -> vector<32x32xf32>
    %c0_33 = arith.constant 0 : index
    %c0_34 = arith.constant 0 : index
    %105 = vector.load %arg5[%c0_33, %c0_34] : memref<1x32xf32, #tpu.memory_space<vmem>>, vector<1x32xf32>
    %106 = vector.broadcast %105 : vector<1x32xf32> to vector<32x32xf32>
    %107 = arith.addf %104, %106 : vector<32x32xf32>
    %108 = arith.addf %1, %107 : vector<32x32xf32>
    %cst_35 = arith.constant dense<0.000000e+00> : vector<32xf32>
    %109 = vector.multi_reduction <add>, %108, %cst_35 [1] : vector<32x32xf32> to vector<32xf32>
    %110 = vector.shape_cast %109 : vector<32xf32> to vector<32x1xf32>
    %cst_36 = arith.constant 3.200000e+01 : f32
    %111 = vector.broadcast %cst_36 : f32 to vector<32x1xf32>
    %112 = arith.divf %110, %111 : vector<32x1xf32>
    %113 = vector.broadcast %112 : vector<32x1xf32> to vector<32x32xf32>
    %114 = arith.subf %108, %113 : vector<32x32xf32>
    %115 = arith.mulf %114, %114 : vector<32x32xf32>
    %cst_37 = arith.constant dense<0.000000e+00> : vector<32xf32>
    %116 = vector.multi_reduction <add>, %115, %cst_37 [1] : vector<32x32xf32> to vector<32xf32>
    %117 = vector.shape_cast %116 : vector<32xf32> to vector<32x1xf32>
    %cst_38 = arith.constant 3.200000e+01 : f32
    %118 = vector.broadcast %cst_38 : f32 to vector<32x1xf32>
    %119 = arith.divf %117, %118 : vector<32x1xf32>
    %120 = vector.broadcast %112 : vector<32x1xf32> to vector<32x32xf32>
    %121 = arith.subf %108, %120 : vector<32x32xf32>
    %cst_39 = arith.constant 9.99999974E-6 : f32
    %122 = vector.broadcast %cst_39 : f32 to vector<32x1xf32>
    %123 = arith.addf %119, %122 : vector<32x1xf32>
    %124 = math.rsqrt %123 : vector<32x1xf32>
    %125 = vector.broadcast %124 : vector<32x1xf32> to vector<32x32xf32>
    %126 = arith.mulf %121, %125 : vector<32x32xf32>
    %c0_40 = arith.constant 0 : index
    %c0_41 = arith.constant 0 : index
    %127 = vector.load %arg10[%c0_40, %c0_41] : memref<1x32xf32, #tpu.memory_space<vmem>>, vector<1x32xf32>
    %128 = vector.broadcast %127 : vector<1x32xf32> to vector<32x32xf32>
    %129 = arith.mulf %126, %128 : vector<32x32xf32>
    %c0_42 = arith.constant 0 : index
    %c0_43 = arith.constant 0 : index
    %130 = vector.load %arg11[%c0_42, %c0_43] : memref<1x32xf32, #tpu.memory_space<vmem>>, vector<1x32xf32>
    %131 = vector.broadcast %130 : vector<1x32xf32> to vector<32x32xf32>
    %132 = arith.addf %129, %131 : vector<32x32xf32>
    %133 = arith.truncf %132 : vector<32x32xf32> to vector<32x32xbf16>
    %c0_44 = arith.constant 0 : index
    %c0_45 = arith.constant 0 : index
    %134 = vector.load %arg6[%c0_44, %c0_45] : memref<32x128xbf16, #tpu.memory_space<vmem>>, vector<32x128xbf16>
    %cst_46 = arith.constant dense<0.000000e+00> : vector<32x128xf32>
    %135 = tpu.matmul %133, %134, %cst_46 {dimension_numbers = #tpu.dot_dimension_numbers<[1], [0], [0], [1], [0, 0, 1, 1], [], []>} : vector<32x32xbf16>, vector<32x128xbf16>, vector<32x128xf32> -> vector<32x128xf32>
    %c0_47 = arith.constant 0 : index
    %c0_48 = arith.constant 0 : index
    %136 = vector.load %arg7[%c0_47, %c0_48] : memref<1x128xf32, #tpu.memory_space<vmem>>, vector<1x128xf32>
    %137 = vector.broadcast %136 : vector<1x128xf32> to vector<32x128xf32>
    %138 = arith.addf %135, %137 : vector<32x128xf32>
    %cst_49 = arith.constant 0.000000e+00 : f32
    %139 = vector.broadcast %cst_49 : f32 to vector<32x128xf32>
    %140 = arith.maximumf %138, %139 : vector<32x128xf32>
    %141 = arith.truncf %140 : vector<32x128xf32> to vector<32x128xbf16>
    %c0_50 = arith.constant 0 : index
    %c0_51 = arith.constant 0 : index
    %142 = vector.load %arg8[%c0_50, %c0_51] : memref<128x32xbf16, #tpu.memory_space<vmem>>, vector<128x32xbf16>
    %cst_52 = arith.constant dense<0.000000e+00> : vector<32x32xf32>
    %143 = tpu.matmul %141, %142, %cst_52 {dimension_numbers = #tpu.dot_dimension_numbers<[1], [0], [0], [1], [0, 0, 1, 1], [], []>} : vector<32x128xbf16>, vector<128x32xbf16>, vector<32x32xf32> -> vector<32x32xf32>
    %c0_53 = arith.constant 0 : index
    %c0_54 = arith.constant 0 : index
    %144 = vector.load %arg9[%c0_53, %c0_54] : memref<1x32xf32, #tpu.memory_space<vmem>>, vector<1x32xf32>
    %145 = vector.broadcast %144 : vector<1x32xf32> to vector<32x32xf32>
    %146 = arith.addf %143, %145 : vector<32x32xf32>
    %147 = arith.addf %132, %146 : vector<32x32xf32>
    %cst_55 = arith.constant dense<0.000000e+00> : vector<32xf32>
    %148 = vector.multi_reduction <add>, %147, %cst_55 [1] : vector<32x32xf32> to vector<32xf32>
    %149 = vector.shape_cast %148 : vector<32xf32> to vector<32x1xf32>
    %cst_56 = arith.constant 3.200000e+01 : f32
    %150 = vector.broadcast %cst_56 : f32 to vector<32x1xf32>
    %151 = arith.divf %149, %150 : vector<32x1xf32>
    %152 = vector.broadcast %151 : vector<32x1xf32> to vector<32x32xf32>
    %153 = arith.subf %147, %152 : vector<32x32xf32>
    %154 = arith.mulf %153, %153 : vector<32x32xf32>
    %cst_57 = arith.constant dense<0.000000e+00> : vector<32xf32>
    %155 = vector.multi_reduction <add>, %154, %cst_57 [1] : vector<32x32xf32> to vector<32xf32>
    %156 = vector.shape_cast %155 : vector<32xf32> to vector<32x1xf32>
    %cst_58 = arith.constant 3.200000e+01 : f32
    %157 = vector.broadcast %cst_58 : f32 to vector<32x1xf32>
    %158 = arith.divf %156, %157 : vector<32x1xf32>
    %159 = vector.broadcast %151 : vector<32x1xf32> to vector<32x32xf32>
    %160 = arith.subf %147, %159 : vector<32x32xf32>
    %cst_59 = arith.constant 9.99999974E-6 : f32
    %161 = vector.broadcast %cst_59 : f32 to vector<32x1xf32>
    %162 = arith.addf %158, %161 : vector<32x1xf32>
    %163 = math.rsqrt %162 : vector<32x1xf32>
    %164 = vector.broadcast %163 : vector<32x1xf32> to vector<32x32xf32>
    %165 = arith.mulf %160, %164 : vector<32x32xf32>
    %c0_60 = arith.constant 0 : index
    %c0_61 = arith.constant 0 : index
    %166 = vector.load %arg12[%c0_60, %c0_61] : memref<1x32xf32, #tpu.memory_space<vmem>>, vector<1x32xf32>
    %167 = vector.broadcast %166 : vector<1x32xf32> to vector<32x32xf32>
    %168 = arith.mulf %165, %167 : vector<32x32xf32>
    %c0_62 = arith.constant 0 : index
    %c0_63 = arith.constant 0 : index
    %169 = vector.load %arg13[%c0_62, %c0_63] : memref<1x32xf32, #tpu.memory_space<vmem>>, vector<1x32xf32>
    %170 = vector.broadcast %169 : vector<1x32xf32> to vector<32x32xf32>
    %171 = arith.addf %168, %170 : vector<32x32xf32>
    %172 = vector.shape_cast %171 : vector<32x32xf32> to vector<2x16x32xf32>
    %c0_64 = arith.constant 0 : index
    %c0_65 = arith.constant 0 : index
    %c0_66 = arith.constant 0 : index
    %173 = vector.load %arg14[%c0_64, %c0_65, %c0_66] : memref<2x16x32xf32, #tpu.memory_space<vmem>>, vector<2x16x32xf32>
    tpu.vector_store %arg14[%c0_64, %c0_65, %c0_66], %172 {strides = array<i32>} : memref<2x16x32xf32, #tpu.memory_space<vmem>>, vector<2x16x32xf32>,
    return
  }
  func.func @transform_0(%arg0: i32) -> (i32, i32, i32) {
    %c0_i32 = arith.constant 0 : i32
    %c0_i32_0 = arith.constant 0 : i32
    %c0_i32_1 = arith.constant 0 : i32
    return %arg0, %c0_i32, %c0_i32_0 : i32, i32, i32
  }
  func.func @transform_1(%arg0: i32) -> (i32, i32) {
    %c0_i32 = arith.constant 0 : i32
    %c0_i32_0 = arith.constant 0 : i32
    %c0_i32_1 = arith.constant 0 : i32
    return %c0_i32, %c0_i32_0 : i32, i32
  }
  func.func @transform_2(%arg0: i32) -> (i32, i32) {
    %c0_i32 = arith.constant 0 : i32
    %c0_i32_0 = arith.constant 0 : i32
    %c0_i32_1 = arith.constant 0 : i32
    return %c0_i32, %c0_i32_0 : i32, i32
  }
  func.func @transform_3(%arg0: i32) -> (i32, i32) {
    %c0_i32 = arith.constant 0 : i32
    %c0_i32_0 = arith.constant 0 : i32
    %c0_i32_1 = arith.constant 0 : i32
    return %c0_i32, %c0_i32_0 : i32, i32
  }
  func.func @transform_4(%arg0: i32) -> (i32, i32) {
    %c0_i32 = arith.constant 0 : i32
    %c0_i32_0 = arith.constant 0 : i32
    %c0_i32_1 = arith.constant 0 : i32
    return %c0_i32, %c0_i32_0 : i32, i32
  }
  func.func @transform_5(%arg0: i32) -> (i32, i32) {
    %c0_i32 = arith.constant 0 : i32
    %c0_i32_0 = arith.constant 0 : i32
    %c0_i32_1 = arith.constant 0 : i32
    return %c0_i32, %c0_i32_0 : i32, i32
  }
  func.func @transform_6(%arg0: i32) -> (i32, i32) {
    %c0_i32 = arith.constant 0 : i32
    %c0_i32_0 = arith.constant 0 : i32
    %c0_i32_1 = arith.constant 0 : i32
    return %c0_i32, %c0_i32_0 : i32, i32
  }
  func.func @transform_7(%arg0: i32) -> (i32, i32) {
    %c0_i32 = arith.constant 0 : i32
    %c0_i32_0 = arith.constant 0 : i32
    %c0_i32_1 = arith.constant 0 : i32
    return %c0_i32, %c0_i32_0 : i32, i32
  }
  func.func @transform_8(%arg0: i32) -> (i32, i32) {
    %c0_i32 = arith.constant 0 : i32
    %c0_i32_0 = arith.constant 0 : i32
    %c0_i32_1 = arith.constant 0 : i32
    return %c0_i32, %c0_i32_0 : i32, i32
  }
  func.func @transform_9(%arg0: i32) -> (i32, i32) {
    %c0_i32 = arith.constant 0 : i32
    %c0_i32_0 = arith.constant 0 : i32
    %c0_i32_1 = arith.constant 0 : i32
    return %c0_i32, %c0_i32_0 : i32, i32
  }
  func.func @transform_10(%arg0: i32) -> (i32, i32) {
    %c0_i32 = arith.constant 0 : i32
    %c0_i32_0 = arith.constant 0 : i32
    %c0_i32_1 = arith.constant 0 : i32
    return %c0_i32, %c0_i32_0 : i32, i32
  }
  func.func @transform_11(%arg0: i32) -> (i32, i32) {
    %c0_i32 = arith.constant 0 : i32
    %c0_i32_0 = arith.constant 0 : i32
    %c0_i32_1 = arith.constant 0 : i32
    return %c0_i32, %c0_i32_0 : i32, i32
  }
  func.func @transform_12(%arg0: i32) -> (i32, i32) {
    %c0_i32 = arith.constant 0 : i32
    %c0_i32_0 = arith.constant 0 : i32
    %c0_i32_1 = arith.constant 0 : i32
    return %c0_i32, %c0_i32_0 : i32, i32
  }
  func.func @transform_13(%arg0: i32) -> (i32, i32, i32) {
    %c0_i32 = arith.constant 0 : i32
    %c0_i32_0 = arith.constant 0 : i32
    %c0_i32_1 = arith.constant 0 : i32
    return %arg0, %c0_i32, %c0_i32_0 : i32, i32, i32
  }
}

</mosaic_0001>

<bundles_post_ra>
// kernel: tpu_custom_call.1
= control target key start
LH: loop header
LB: loop body
LE: loop exit
PB: predicated region body
PF: predicated region fallthrough
CT: control target
= control target key end

     0   :  { %s3304_s0 = inlined_call_operand.vmem [shape: f32[4,16,32], index: 0, kind: input, shape index: {}]   ;;  %s3305_s1 = inlined_call_operand.vmem [shape: bf16[32,96], index: 1, kind: input, shape index: {}]   ;;  %s3306_s2 = inlined_call_operand.vmem [shape: f32[1,96], index: 2, kind: input, shape index: {}]   ;;  %s3307_s3 = inlined_call_operand.hbm [shape: bf16[32,32], index: 3, kind: input, shape index: {}]   ;;  %s3308_s4 = inlined_call_operand.vmem [shape: f32[1,32], index: 4, kind: input, shape index: {}]   ;;  %s3309_s5 = inlined_call_operand.hbm [shape: bf16[32,128], index: 5, kind: input, shape index: {}]   ;;  %s3310_s6 = inlined_call_operand.vmem [shape: f32[1,128], index: 6, kind: input, shape index: {}]   ;;  %s3311_s7 = inlined_call_operand.vmem [shape: bf16[128,32], index: 7, kind: input, shape index: {}]   ;;  %s3312_s8 = inlined_call_operand.vmem [shape: f32[1,32], index: 8, kind: input, shape index: {}]   ;;  %s3313_s9 = inlined_call_operand.vmem [shape: f32[1,32], index: 9, kind: input, shape index: {}]   ;;  %s3314_s10 = inlined_call_operand.vmem [shape: f32[1,32], index: 10, kind: input, shape index: {}]   ;;  %s3315_s11 = inlined_call_operand.vmem [shape: f32[1,32], index: 11, kind: input, shape index: {}]   ;;  %s3316_s12 = inlined_call_operand.vmem [shape: f32[1,32], index: 12, kind: input, shape index: {}]   ;;  %s3317_s13 = inlined_call_operand.hbm [shape: f32[4,16,32], index: 13, kind: output, shape index: {}]  }
   0x1   :  { %3328 = sst [smem:[#allocation17_spill]] %s3317_s13 }
   0x2   :  { %18 = vsyncpa [#allocation3], 0 }
   0x3   :  { %19 = vsyncpa [#allocation6], 0 }
   0x4   :  { %20 = vsyncpa [#allocation4], 0 }
   0x5   :  { %22 = vsyncpa [#allocation4 + $0x1], 0  ;;  %s2807_s25 = smov 0   ;;  %s2809_s26 = smov 0  }
   0x6   :  { %s2811_s27 = smov 0   ;;  %s2813_s28 = smov 0  }
   0x7 LB: > { %3329 = sst [smem:[#allocation11_spill]] %s2701_s25  ;;  %s2828_s29 = sadd.s32 4294967295, %s2713_s28   ;;  %s2713_s28 = sphi %s2813_s28, %s3350_s28   ;;  %s2709_s27 = sphi %s2811_s27, %s3355_s27   ;;  %s2705_s26 = sphi %s2809_s26, %s3354_s26   ;;  %s2701_s25 = sphi %s2807_s25, %s3353_s25  }
   0x8   : > { %3330 = sst [smem:[#allocation12_spill]] %s2709_s27  ;;  %s2151_s30 = sadd.s32 4294967294, %s2713_s28  }
   0x9   : > { %3331 = sst [smem:[#allocation13_spill]] %s2713_s28  ;;  %s2832_s14 = sadd.s32 1, %s2713_s28  }
   0xa   : > { %3332 = sst [smem:[#allocation14_spill]] %s2832_s14  ;;  %s313_s15 = sadd.s32 1, %s2709_s27 }
   0xb   : > { %s310_s16 = ssub.s32 %s2713_s28, %s2832_s14  ;;  %p323_p0 = scmp.ne.s32.totalorder %s2709_s27, %s2705_s26 }
   0xc   : > { %p311_p1 = scmp.eq.s32.totalorder %s310_s16, 0  ;;  %p324_p2 = scmp.eq.s32.totalorder %s2828_s29, 1 }
   0xd   : > { %p329_p3 = scmp.ne.s32.totalorder %s2705_s26, %s2701_s25  ;;  %p330_p4 = scmp.eq.s32.totalorder %s2151_s30, 1 }
   0xe   : > { %s2843_s17 = scalar_select %p311_p1, %s2709_s27, %s313_s15  }
   0xf   : > { %p2845_p5 = por %p324_p2, %p323_p0  ;;  %p2849_p6 = por %p330_p4, %p329_p3 }
  0x10   : > { %3333 = sst [smem:[#allocation15_spill]] %s2843_s17  ;;  %p2152_p7 = scmp.ge.s32.totalorder %s2713_s28, 1 }
  0x11   : > { %s3334_s18 = scalar_select %p2845_p5, 1, 0 }
  0x12   : > { %s3335_s19 = scalar_select %p2849_p6, 1, 0 }
  0x13   : > { %p337_p8 = scmp.lt.s32.totalorder %s2713_s28, 3  ;;  %p3322_p9 = scmp.eq.s32.totalorder %s2828_s29, 0 }
  0x14   : > { %3336 = sst [smem:[#allocation16_spill]] %s3335_s19  ;;  %s2715_s21 = smov [#allocation2]  }
  0x15   : > { %p2856_p10 = pnand %p2152_p7, %p337_p8  ;;  %s355_s22 = sshll.u32 %s2715_s21, 4  ;;  %s356_s22 = int_to_ptr.vmem [resolvable:$true] %s355_s22 }
  0x16   : > { %s2716_s24 = smov [#allocation5]   ;;  %s2587_s17 = scalar_lea.hbm %s3307_s3, 256 }
  0x17   : > { %s3337_s20 = scalar_select %p2856_p10, 1, 0 }
  0x18   : > { %p2420_p11 = pneg %p2856_p10  ;;  %s371_s30 = sshll.u32 %s2716_s24, 4  ;;  %s2868_s30 = int_to_ptr.vmem [resolvable:$true] %s371_s30 }
  0x19   : > { %p2588_p13 = scmp.ne.s32.totalorder %s3307_s3, %s2587_s17  ;;  %p2594_p3 = scmp.lt.u32.totalorder %s2587_s17, %s3307_s3 }
  0x1a   : > { %p2864_p12 = pnand %p3322_p9, %p2420_p11 }
  0x1c   : > { %p2589_p0 = pneg %p2864_p12 }
  0x1e   : > { %p2590_p1 = pnand %p2589_p0, %p2588_p13 }
  0x20   : > { %p2591_p2 = pneg %p2590_p1 }
  0x22   : > { %p2596_p4 = pnand %p2594_p3, %p2591_p2 }
  0x24   : > { %2599 = shalt.err (!%p2596_p4)
}
  0x25   : > { %s2600_s24 = scalar_lea.vmem %s356_s22, 256  ;;  %p2608_p9 = scmp.lt.s32.totalorder %s356_s22, %s356_s22 }
  0x26   : > { %p2601_p7 = scmp.ne.s32.totalorder %s356_s22, %s2600_s24  ;;  %p2609_p6 = scmp.lt.s32.totalorder %s2600_s24, %s2600_s24 }
  0x28   : > { %p2603_p8 = pnand %p2601_p7, %p2589_p0  ;;  %p2610_p5 = por %p2609_p6, %p2608_p9 }
  0x2a   : > { %p2604_p11 = pneg %p2603_p8 }
  0x2c   : > { %p2611_p10 = pnand %p2610_p5, %p2604_p11 }
  0x2e   : > { %2614 = shalt.err (!%p2611_p10)
}
  0x2f   : > { %s2717_s27 = smov 64   ;;  %s2718_s15 = smov 4  }
  0x30   : > { %2423 = dma.hbm_to_vmem [thread:$0]  (!%p2864_p12), %s3307_s3, 256, %s356_s22, [#allocation3], %s2717_s27, %s2717_s27, %s2718_s15  }
  0x31   : > { %s2615_s21 = scalar_lea.hbm %s3309_s5, 256 }
  0x32   : > { %p2616_p13 = scmp.ne.s32.totalorder %s3309_s5, %s2615_s21  ;;  %p2622_p9 = scmp.lt.u32.totalorder %s2615_s21, %s3309_s5 }
  0x34   : > { %p2618_p5 = pnand %p2616_p13, %p2589_p0 }
  0x36   : > { %p2619_p6 = pneg %p2618_p5 }
  0x38   : > { %p2624_p10 = pnand %p2622_p9, %p2619_p6 }
  0x3a   : > { %2627 = shalt.err (!%p2624_p10)
}
  0x3b   : > { %s2628_s22 = scalar_lea.vmem %s2868_s30, 256  ;;  %p2636_p4 = scmp.lt.s32.totalorder %s2868_s30, %s2868_s30 }
  0x3c   : > { %p2629_p1 = scmp.ne.s32.totalorder %s2868_s30, %s2628_s22  ;;  %p2637_p7 = scmp.lt.s32.totalorder %s2628_s22, %s2628_s22 }
  0x3e   : > { %p2631_p2 = pnand %p2629_p1, %p2589_p0  ;;  %p2638_p8 = por %p2637_p7, %p2636_p4 }
  0x40   : > { %p2632_p3 = pneg %p2631_p2 }
  0x42   : > { %p2639_p11 = pnand %p2638_p8, %p2632_p3 }
  0x44   : > { %2642 = shalt.err (!%p2639_p11)
}
  0x45   : > { %2426 = dma.hbm_to_vmem [thread:$0]  (!%p2864_p12), %s3309_s5, 256, %s2868_s30, [#allocation6], %s2717_s27, %s2717_s27, %s2718_s15  }
  0x46   : > { %p3339_p13 = scmp.ne.s32.totalorder %s3337_s20, 0 }
  0x47   : > { %p3340_p5 = scmp.eq.s32.totalorder (!%p3339_p13), %s2828_s29, 0 }
  0x48   : > { %418 = sbr.rel (%p3339_p13) target bundleno = 4253 (0x109d), region = 72 }
  0x4f   : > { %2688 = dma.done.wait (%p3340_p5), [#allocation3], 256   ;;  %p3341_p0 = pmov %p3340_p5 }
  0x51   : > { %2690 = vsyncadd (%p3341_p0), [#allocation3], 4294967040  ;;  %p3342_p6 = pmov %p3341_p0 }
  0x52   : > { %p3343_p9 = pmov %p3341_p0 }
  0x53   : > { %2692 = dma.done.wait (%p3342_p6), [#allocation6], 256  }
  0x54   : > { %2694 = vsyncadd (%p3343_p9), [#allocation6], 4294967040  ;;  %s2160_s28 = sshll.u32 %s2828_s29, 1  ;;  %v2489_v0 = vld [vmem:[%s3305_s1] sm:$0xff]   ;;  %v2490_v1 = vld [vmem:[%s3305_s1 + $0x8] sm:$0xff]   ;;  %vm505_vm0 = vcmask 261120   ;;  %v563_v24 = vlaneseq }
  0x55   : > { %p468_p10 = scmp.lt.s32.totalorder %s2160_s28, 3  ;;  %2270 = vmatprep.subr.bf16.mxu0 %v2489_v0  ;;  %v2719_v8 = vmov 0.0   ;;  %v2163_v10 = vld [vmem:[%s3306_s2] ss:$0 sm:$0xff]  ;;  %vm2720_vm1 = vmmov 0   ;;  %s2721_s24 = smov 96  }
  0x56   : > { %2271 = vmatpush3.bf16.msra.mxu0 %v2489_v0  ;;  %2290 = vmatprep.subr.bf16.mxu1 %v2719_v8  ;;  %vm569_vm2 = vcmask 64512   ;;  %v2972_v25 = vand.u32 127, %v563_v24  ;;  %vm677_vm4 = vcmask 130048   ;;  %s2722_s22 = smov 64   ;;  %s2723_s13 = smov 88   ;;  %vm1604_vm5 = vcmask 195584  }
  0x57   : > { %s3357_s28 = smov (!%p468_p10, %s2160_s28), 3  ;;  %2272 = vmatprep.subr.bf16.mxu0 %v2490_v1  ;;  %2292 = vmatprep.mubr.msk.bf16.mxu1 %vm2720_vm1, %v2719_v8  ;;  %s2724_s25 = smov 120  }
  0x58   : > { %s2213_s23 = sshll.u32 %s3357_s28, 4  ;;  %vm565_vm3 = vcmp.lt.s32.totalorder %v2972_v25, 12  ;;  %s2725_s28 = smov 56  }
  0x59   : > { %s2931_s27 = scalar_lea.vmem %s3304_s0, %s2213_s23  ;;  %s2726_s23 = smov 80  }
  0x5a   : > { %v476_v2 = vld [vmem:[%s2931_s27] sm:$0xff]  ;;  %v477_v3 = vld [vmem:[%s2931_s27 + $0x8] sm:$0xff]  ;;  %v478_v4 = vld [vmem:[%s2931_s27 + $0x10] sm:$0xff]  ;;  %2273 = vmatpush3.bf16.msra.mxu0 %v2490_v1  ;;  %s2727_s30 = smov 112   ;;  %s2728_s20 = smov 48  }
  0x5b   : > { %v480_v5 = vpack.c.bf16 %v477_v3, %v476_v2  ;;  %v479_v6 = vld [vmem:[%s2931_s27 + $0x18] sm:$0xff]  ;;  %2278 = vmatprep.subr.bf16.mxu0 %v2719_v8  ;;  %s2729_s15 = smov 72   ;;  %s2730_s14 = smov 104  }
  0x5c   : > { %v481_v7 = vpack.c.bf16 %v479_v6, %v478_v4  ;;  %s2731_s17 = smov 40   ;;  %s2732_s19 = smov 8  }
  0x5d   : > { %2274 = vmatprep.mubr.msk.bf16.mxu0 %vm505_vm0, %v480_v5  ;;  %s2733_s16 = smov 16   ;;  %s2734_s21 = smov 24  }
  0x5e   : > { %2275 = vmatmul.mubr.msk.bf16.vlgmr.msra.gmra.mrb[0].mxu0 %vm505_vm0, %v481_v7  ;;  %p3345_p1 = scmp.ne.s32.totalorder %s3334_s18, 0 }
  0x5f   : > { %2280 = vmatprep.mubr.msk.bf16.mxu0 %vm2720_vm1, %v2719_v8 }
 0x131   : > { %v2276_v9 = vpop.f32.mrb[0].mxu0 }
 0x132   : > { %v546_v11 = vpop.f32.mrb[1].mxu0  ;;  %v555_v13 = vadd.f32 %v2276_v9, %v2163_v10 }
 0x133   : > { %v2277_v12 = vpop.f32.mrb[2].mxu0  ;;  %v547_v16 = vadd.f32 %v2163_v10, %v546_v11 }
 0x134   : > { %v558_v14 = vadd.f32 %v2277_v12, %v2163_v10  ;;  %v549_v15 = vpop.f32.mrb[3].mxu0 }
 0x135   : > { %v550_v17 = vadd.f32 %v2163_v10, %v549_v15 }
 0x136   : > { %v2954_v18 = vpack.c.bf16 %v558_v14, %v555_v13 }
 0x137   : > { %v2956_v19 = vpack.c.bf16 %v550_v17, %v547_v16 }
 0x139   : > { %567 = vrot.lane.b32.xlu0 %v2956_v19, %s2721_s24 }
 0x13d   : > { %618 = vrot.lane.b32.xlu0 %v2954_v18, %s2721_s24 }
 0x1ab   : > { %v568_v20 = vpop.permute.xlu0 %567 }
 0x1ac   : > { %v574_v21 = vsel %vm569_vm2, %v568_v20, 0 }
 0x1ad   : > { %2279 = vmatpush3.bf16.xpose.msra.mxu0 %v574_v21 }
 0x1ae   : > { %2284 = vmatprep.subr.bf16.mxu0 %v2719_v8 }
 0x1af   : > { %v619_v22 = vpop.permute.xlu0 %618 }
 0x1b0   : > { %v624_v23 = vsel %vm569_vm2, %v619_v22, 0 }
 0x1b4   : > { %2281 = vmatmul.mubr.msk.bf16.vlgmr.msra.gmra.mrb[4].mxu0 %vm569_vm2, %v2956_v19 }
 0x1b5   : > { %2285 = vmatpush3.bf16.xpose.msra.mxu0 %v624_v23  ;;  %2286 = vmatprep.mubr.msk.bf16.mxu0 %vm2720_vm1, %v2719_v8 }
 0x1b6   : > { %2296 = vmatprep.subr.bf16.mxu0 %v2719_v8 }
 0x1bc   : > { %2287 = vmatmul.mubr.msk.bf16.vlgmr.msra.gmra.mrb[8].mxu0 %vm569_vm2, %v2954_v18 }
 0x1bd   : > { %2298 = vmatprep.mubr.msk.bf16.mxu0 %vm2720_vm1, %v2719_v8 }
 0x287   : > { %v610_v26 = vpop.f32.mrb[4].mxu0 }
 0x288   : > { %v667_v27 = vmul.f32 0.35355338, %v610_v26  ;;  %v2282_v28 = vpop.f32.mrb[5].mxu0 }
 0x289   : > { %v613_v29 = vpop.f32.mrb[6].mxu0 }
 0x28a   : > { %v668_v30 = vmul.f32 0.35355338, %v613_v29  ;;  %v2283_v31 = vpop.f32.mrb[7].mxu0  ;;  %v673_v32 = vsel %vm565_vm3, %v667_v27, -1e+30 }
 0x28b   : > { %v678_v33 = vsel %vm677_vm4, %v673_v32, -inf }
 0x28c   : > { %679 = vmax.xlane.f32.xlu1 %v678_v33  ;;  %v674_v34 = vsel %vm565_vm3, %v668_v30, -1e+30 }
 0x28d   : > { %v681_v36 = vsel %vm677_vm4, %v674_v34, -inf }
 0x28f   : > { %v660_v35 = vpop.f32.mrb[8].mxu0 }
 0x290   : > { %v669_v37 = vmul.f32 0.35355338, %v660_v35  ;;  %682 = vmax.xlane.f32.xlu1 %v681_v36  ;;  %v2288_v38 = vpop.f32.mrb[9].mxu0 }
 0x291   : > { %v663_v39 = vpop.f32.mrb[10].mxu0 }
 0x292   : > { %v670_v40 = vmul.f32 0.35355338, %v663_v39  ;;  %v2289_v41 = vpop.f32.mrb[11].mxu0  ;;  %v675_v42 = vsel %vm565_vm3, %v669_v37, -1e+30 }
 0x293   : > { %v684_v43 = vsel %vm677_vm4, %v675_v42, -inf }
 0x294   : > { %685 = vmax.xlane.f32.xlu0 %v684_v43  ;;  %v676_v44 = vsel %vm565_vm3, %v670_v40, -1e+30 }
 0x295   : > { %v687_v45 = vsel %vm677_vm4, %v676_v44, -inf }
 0x296   : > { %688 = vmax.xlane.f32.xlu1 %v687_v45 }
 0x2a7   : > { %724 = vrot.lane.b32.xlu1 %v2956_v19, %s2722_s22 }
 0x2aa   : > { %771 = vrot.lane.b32.xlu0 %v2954_v18, %s2722_s22 }
 0x2ab   : > { %822 = vrot.lane.b32.xlu1 %v2956_v19, %s2723_s13 }
 0x2af   : > { %873 = vrot.lane.b32.xlu1 %v2954_v18, %s2723_s13 }
 0x319   : > { %v680_v46 = vpop.xlane.xlu1 %679 }
 0x31a   : > { %v690_v47 = vsub.f32 %v673_v32, %v680_v46 }
 0x31c   : > { %v694_v48 = vmul.f32 1.442695, %v690_v47 }
 0x31d   : > { %v683_v49 = vpop.xlane.xlu1 %682 }
 0x31e   : > { %2503 = vpow2.f32 %v694_v48  ;;  %v691_v50 = vsub.f32 %v674_v34, %v683_v49 }
 0x320   : > { %v696_v51 = vmul.f32 1.442695, %v691_v50 }
 0x321   : > { %v686_v52 = vpop.xlane.xlu0 %685 }
 0x322   : > { %2505 = vpow2.f32 %v696_v51  ;;  %v692_v53 = vsub.f32 %v675_v42, %v686_v52 }
 0x323   : > { %v689_v54 = vpop.xlane.xlu1 %688 }
 0x324   : > { %v698_v55 = vmul.f32 1.442695, %v692_v53  ;;  %v693_v56 = vsub.f32 %v676_v44, %v689_v54 }
 0x325   : > { %v772_v57 = vpop.permute.xlu0 %771 }
 0x326   : > { %2507 = vpow2.f32 %v698_v55  ;;  %v700_v58 = vmul.f32 1.442695, %v693_v56  ;;  %2297 = vmatpush3.bf16.msra.mxu0 %v772_v57 }
 0x327   : > { %v725_v59 = vpop.permute.xlu1 %724  ;;  %2308 = vmatprep.subr.bf16.mxu0 %v2719_v8 }
 0x328   : > { %v2504_v60 = vpop.eup %2503  ;;  %2509 = vpow2.f32 %v700_v58  ;;  %2291 = vmatpush3.bf16.msra.mxu1 %v725_v59 }
 0x329   : > { %v702_v61 = vsel %vm677_vm4, %v2504_v60, 0.0  ;;  %2302 = vmatprep.subr.bf16.mxu1 %v2719_v8 }
 0x32a   : > { %703 = vadd.xlane.f32.xlu1 %v702_v61 }
 0x32b   : > { %v823_v4 = vpop.permute.xlu1 %822 }
 0x32c   : > { %v2506_v62 = vpop.eup %2505  ;;  %v828_v16 = vsel %vm569_vm2, %v823_v4, 0 }
 0x32d   : > { %v705_v63 = vsel %vm677_vm4, %v2506_v62, 0.0 }
 0x32e   : > { %706 = vadd.xlane.f32.xlu1 %v705_v63 }
 0x32f   : > { %v874_v5 = vpop.permute.xlu1 %873 }
 0x330   : > { %v2508_v0 = vpop.eup %2507  ;;  %v879_v26 = vsel %vm569_vm2, %v874_v5, 0 }
 0x331   : > { %v708_v1 = vsel %vm677_vm4, %v2508_v0, 0.0 }
 0x332   : > { %v2510_v2 = vpop.eup %2509  ;;  %709 = vadd.xlane.f32.xlu1 %v708_v1 }
 0x333   : > { %v711_v3 = vsel %vm677_vm4, %v2510_v2, 0.0 }
 0x336   : > { %712 = vadd.xlane.f32.xlu1 %v711_v3 }
 0x347   : > { %820 = vrot.lane.b32.xlu1 %v2956_v19, %s2724_s25 }
 0x34b   : > { %871 = vrot.lane.b32.xlu1 %v2954_v18, %s2724_s25 }
 0x3b7   : > { %v704_v6 = vpop.xlane.xlu1 %703 }
 0x3b8   : > { %2511 = vrcp.f32 %v704_v6 }
 0x3bb   : > { %v707_v7 = vpop.xlane.xlu1 %706 }
 0x3bc   : > { %2513 = vrcp.f32 %v707_v7 }
 0x3bf   : > { %v710_v9 = vpop.xlane.xlu1 %709 }
 0x3c0   : > { %2515 = vrcp.f32 %v710_v9 }
 0x3c2   : > { %v2512_v11 = vpop.eup %2511 }
 0x3c3   : > { %v713_v10 = vpop.xlane.xlu1 %712  ;;  %v715_v13 = vmul.f32 %v2512_v11, %v2504_v60 }
 0x3c4   : > { %2517 = vrcp.f32 %v713_v10 }
 0x3c6   : > { %v2514_v12 = vpop.eup %2513 }
 0x3c7   : > { %v717_v14 = vmul.f32 %v2514_v12, %v2506_v62  ;;  %v821_v24 = vpop.permute.xlu1 %820 }
 0x3c9   : > { %v722_v15 = vpack.c.bf16 %v717_v14, %v715_v13 }
 0x3ca   : > { %v2516_v17 = vpop.eup %2515 }
 0x3cb   : > { %2293 = vmatmul.mubr.msk.bf16.vlgmr.msra.gmra.mrb[0].mxu1 %vm677_vm4, %v722_v15  ;;  %v719_v21 = vmul.f32 %v2516_v17, %v2508_v0  ;;  %v872_v27 = vpop.permute.xlu1 %871 }
 0x3cc   : > { %2303 = vmatpush3.bf16.xpose.msra.mxu1 %v828_v16  ;;  %2304 = vmatprep.mubr.msk.bf16.mxu1 %vm2720_vm1, %v2719_v8 }
 0x3cd   : > { %2314 = vmatprep.subr.bf16.mxu1 %v2719_v8 }
 0x3ce   : > { %v2518_v20 = vpop.eup %2517 }
 0x3cf   : > { %v721_v22 = vmul.f32 %v2518_v20, %v2510_v2 }
 0x3d1   : > { %v723_v23 = vpack.c.bf16 %v721_v22, %v719_v21 }
 0x3d3   : > { %2299 = vmatmul.mubr.msk.bf16.vlgmr.msra.gmra.mrb[12].mxu0 %vm677_vm4, %v723_v23  ;;  %2305 = vmatmul.mubr.msk.bf16.vlgmr.msra.gmra.mrb[4].mxu1 %vm569_vm2, %v821_v24 }
 0x3d4   : > { %2309 = vmatpush3.bf16.xpose.msra.mxu0 %v879_v26  ;;  %2310 = vmatprep.mubr.msk.bf16.mxu0 %vm2720_vm1, %v2719_v8 }
 0x3d5   : > { %2320 = vmatprep.subr.bf16.mxu0 %v2719_v8  ;;  %2316 = vmatprep.mubr.msk.bf16.mxu1 %vm2720_vm1, %v2719_v8 }
 0x3db   : > { %2311 = vmatmul.mubr.msk.bf16.vlgmr.msra.gmra.mrb[16].mxu0 %vm569_vm2, %v872_v27 }
 0x3dc   : > { %2322 = vmatprep.mubr.msk.bf16.mxu0 %vm2720_vm1, %v2719_v8 }
 0x49e   : > { %v3015_v28 = vpop.f32.mrb[0].mxu1 }
 0x49f   : > { %v2294_v29 = vpop.f32.mrb[1].mxu1 }
 0x4a0   : > { %v3017_v30 = vpop.f32.mrb[2].mxu1 }
 0x4a1   : > { %v818_v31 = vpack.c.bf16 %v3017_v30, %v3015_v28  ;;  %v2295_v32 = vpop.f32.mrb[3].mxu1 }
 0x4a6   : > { %v3021_v33 = vpop.f32.mrb[12].mxu0  ;;  %v864_v34 = vpop.f32.mrb[4].mxu1 }
 0x4a7   : > { %v922_v35 = vmul.f32 0.35355338, %v864_v34  ;;  %v2300_v36 = vpop.f32.mrb[13].mxu0  ;;  %v2306_v37 = vpop.f32.mrb[5].mxu1 }
 0x4a8   : > { %v3023_v38 = vpop.f32.mrb[14].mxu0  ;;  %v867_v39 = vpop.f32.mrb[6].mxu1 }
 0x4a9   : > { %v819_v40 = vpack.c.bf16 %v3023_v38, %v3021_v33  ;;  %v923_v41 = vmul.f32 0.35355338, %v867_v39  ;;  %v2301_v42 = vpop.f32.mrb[15].mxu0  ;;  %v2307_v43 = vpop.f32.mrb[7].mxu1  ;;  %v926_v44 = vsel %vm565_vm3, %v922_v35, -1e+30 }
 0x4aa   : > { %v930_v45 = vsel %vm677_vm4, %v926_v44, -inf }
 0x4ab   : > { %931 = vmax.xlane.f32.xlu0 %v930_v45  ;;  %v927_v46 = vsel %vm565_vm3, %v923_v41, -1e+30 }
 0x4ac   : > { %v933_v47 = vsel %vm677_vm4, %v927_v46, -inf }
 0x4ad   : > { %934 = vmax.xlane.f32.xlu1 %v933_v47 }
 0x4ae   : > { %v915_v48 = vpop.f32.mrb[16].mxu0 }
 0x4af   : > { %v924_v49 = vmul.f32 0.35355338, %v915_v48  ;;  %v2312_v50 = vpop.f32.mrb[17].mxu0 }
 0x4b0   : > { %v918_v51 = vpop.f32.mrb[18].mxu0 }
 0x4b1   : > { %v925_v52 = vmul.f32 0.35355338, %v918_v51  ;;  %v2313_v53 = vpop.f32.mrb[19].mxu0  ;;  %v928_v54 = vsel %vm565_vm3, %v924_v49, -1e+30 }
 0x4b2   : > { %v936_v55 = vsel %vm677_vm4, %v928_v54, -inf }
 0x4b3   : > { %937 = vmax.xlane.f32.xlu0 %v936_v55  ;;  %v929_v56 = vsel %vm565_vm3, %v925_v52, -1e+30 }
 0x4b4   : > { %v939_v57 = vsel %vm677_vm4, %v929_v56, -inf }
 0x4b7   : > { %940 = vmax.xlane.f32.xlu0 %v939_v57 }
 0x4be   : > { %976 = vrot.lane.b32.xlu1 %v2956_v19, %s2725_s28 }
 0x538   : > { %v932_v58 = vpop.xlane.xlu0 %931 }
 0x539   : > { %v942_v59 = vsub.f32 %v926_v44, %v932_v58 }
 0x53a   : > { %v935_v60 = vpop.xlane.xlu1 %934 }
 0x53b   : > { %v946_v61 = vmul.f32 1.442695, %v942_v59  ;;  %v943_v62 = vsub.f32 %v927_v46, %v935_v60 }
 0x53d   : > { %2519 = vpow2.f32 %v946_v61  ;;  %v948_v63 = vmul.f32 1.442695, %v943_v62 }
 0x53e   : > { %v977_v0 = vpop.permute.xlu1 %976 }
 0x53f   : > { %2521 = vpow2.f32 %v948_v63  ;;  %2315 = vmatpush3.bf16.msra.mxu1 %v977_v0 }
 0x540   : > { %v938_v1 = vpop.xlane.xlu0 %937  ;;  %2326 = vmatprep.subr.bf16.mxu1 %v2719_v8 }
 0x541   : > { %v944_v2 = vsub.f32 %v928_v54, %v938_v1 }
 0x543   : > { %v950_v3 = vmul.f32 1.442695, %v944_v2 }
 0x544   : > { %v941_v4 = vpop.xlane.xlu0 %940 }
 0x545   : > { %2523 = vpow2.f32 %v950_v3  ;;  %v945_v5 = vsub.f32 %v929_v56, %v941_v4 }
 0x547   : > { %v2520_v6 = vpop.eup %2519  ;;  %v952_v7 = vmul.f32 1.442695, %v945_v5 }
 0x548   : > { %v954_v9 = vsel %vm677_vm4, %v2520_v6, 0.0 }
 0x549   : > { %v2522_v10 = vpop.eup %2521  ;;  %2525 = vpow2.f32 %v952_v7  ;;  %955 = vadd.xlane.f32.xlu1 %v954_v9 }
 0x54a   : > { %v957_v11 = vsel %vm677_vm4, %v2522_v10, 0.0 }
 0x54b   : > { %958 = vadd.xlane.f32.xlu0 %v957_v11 }
 0x54f   : > { %v2524_v12 = vpop.eup %2523 }
 0x550   : > { %v960_v13 = vsel %vm677_vm4, %v2524_v12, 0.0 }
 0x551   : > { %961 = vadd.xlane.f32.xlu1 %v960_v13 }
 0x553   : > { %v2526_v14 = vpop.eup %2525 }
 0x554   : > { %v963_v15 = vsel %vm677_vm4, %v2526_v14, 0.0 }
 0x555   : > { %964 = vadd.xlane.f32.xlu0 %v963_v15 }
 0x562   : > { %1074 = vrot.lane.b32.xlu1 %v2956_v19, %s2726_s23 }
 0x566   : > { %1125 = vrot.lane.b32.xlu1 %v2954_v18, %s2726_s23 }
 0x56a   : > { %1123 = vrot.lane.b32.xlu1 %v2954_v18, %s2727_s30 }
 0x56b   : > { %1023 = vrot.lane.b32.xlu0 %v2954_v18, %s2725_s28  ;;  %s2215_s28 = sshll.u32 %s2828_s29, 9 }
 0x56f   : > { %1072 = vrot.lane.b32.xlu0 %v2956_v19, %s2727_s30 }
 0x5d6   : > { %v956_v16 = vpop.xlane.xlu1 %955 }
 0x5d7   : > { %2527 = vrcp.f32 %v956_v16 }
 0x5d8   : > { %v959_v17 = vpop.xlane.xlu0 %958 }
 0x5d9   : > { %2529 = vrcp.f32 %v959_v17 }
 0x5de   : > { %v962_v20 = vpop.xlane.xlu1 %961 }
 0x5df   : > { %2531 = vrcp.f32 %v962_v20 }
 0x5e1   : > { %v2528_v21 = vpop.eup %2527 }
 0x5e2   : > { %v965_v22 = vpop.xlane.xlu0 %964  ;;  %v967_v24 = vmul.f32 %v2528_v21, %v2520_v6  ;;  %v1075_v27 = vpop.permute.xlu1 %1074 }
 0x5e3   : > { %v2530_v23 = vpop.eup %2529  ;;  %2533 = vrcp.f32 %v965_v22  ;;  %v1080_v34 = vsel %vm569_vm2, %v1075_v27, 0 }
 0x5e4   : > { %v969_v26 = vmul.f32 %v2530_v23, %v2522_v10 }
 0x5e6   : > { %v1024_v29 = vpop.permute.xlu0 %1023  ;;  %v974_v32 = vpack.c.bf16 %v969_v26, %v967_v24  ;;  %v1126_v41 = vpop.permute.xlu1 %1125 }
 0x5e7   : > { %2321 = vmatpush3.bf16.msra.mxu0 %v1024_v29  ;;  %v1131_v44 = vsel %vm569_vm2, %v1126_v41, 0 }
 0x5e8   : > { %2317 = vmatmul.mubr.msk.bf16.vlgmr.msra.gmra.mrb[8].mxu1 %vm677_vm4, %v974_v32  ;;  %2332 = vmatprep.subr.bf16.mxu0 %v2719_v8 }
 0x5e9   : > { %2327 = vmatpush3.bf16.xpose.msra.mxu1 %v1080_v34  ;;  %2328 = vmatprep.mubr.msk.bf16.mxu1 %vm2720_vm1, %v2719_v8  ;;  %v2532_v35 = vpop.eup %2531 }
 0x5ea   : > { %2338 = vmatprep.subr.bf16.mxu1 %v2719_v8  ;;  %v971_v37 = vmul.f32 %v2532_v35, %v2524_v12  ;;  %v1073_v42 = vpop.permute.xlu0 %1072  ;;  %v1124_v45 = vpop.permute.xlu1 %1123 }
 0x5ed   : > { %v2534_v36 = vpop.eup %2533 }
 0x5ee   : > { %v973_v39 = vmul.f32 %v2534_v36, %v2526_v14 }
 0x5f0   : > { %2329 = vmatmul.mubr.msk.bf16.vlgmr.msra.gmra.mrb[12].mxu1 %vm569_vm2, %v1073_v42  ;;  %v975_v43 = vpack.c.bf16 %v973_v39, %v971_v37 }
 0x5f1   : > { %2340 = vmatprep.mubr.msk.bf16.mxu1 %vm2720_vm1, %v2719_v8 }
 0x5f2   : > { %2323 = vmatmul.mubr.msk.bf16.vlgmr.msra.gmra.mrb[20].mxu0 %vm677_vm4, %v975_v43 }
 0x5f3   : > { %2333 = vmatpush3.bf16.xpose.msra.mxu0 %v1131_v44  ;;  %2334 = vmatprep.mubr.msk.bf16.mxu0 %vm2720_vm1, %v2719_v8 }
 0x5f4   : > { %2344 = vmatprep.subr.bf16.mxu0 %v2719_v8 }
 0x5fa   : > { %2335 = vmatmul.mubr.msk.bf16.vlgmr.msra.gmra.mrb[24].mxu0 %vm569_vm2, %v1124_v45 }
 0x5fb   : > { %2346 = vmatprep.mubr.msk.bf16.mxu0 %vm2720_vm1, %v2719_v8 }
 0x6bb   : > { %v3069_v46 = vpop.f32.mrb[8].mxu1 }
 0x6bc   : > { %v2318_v47 = vpop.f32.mrb[9].mxu1 }
 0x6bd   : > { %v3071_v48 = vpop.f32.mrb[10].mxu1 }
 0x6be   : > { %v1070_v49 = vpack.c.bf16 %v3071_v48, %v3069_v46  ;;  %v2319_v50 = vpop.f32.mrb[11].mxu1 }
 0x6c3   : > { %v1116_v51 = vpop.f32.mrb[12].mxu1 }
 0x6c4   : > { %v1174_v52 = vmul.f32 0.35355338, %v1116_v51  ;;  %v2330_v53 = vpop.f32.mrb[13].mxu1 }
 0x6c5   : > { %v3075_v54 = vpop.f32.mrb[20].mxu0  ;;  %v1119_v55 = vpop.f32.mrb[14].mxu1 }
 0x6c6   : > { %v1175_v56 = vmul.f32 0.35355338, %v1119_v55  ;;  %v2324_v57 = vpop.f32.mrb[21].mxu0  ;;  %v2331_v58 = vpop.f32.mrb[15].mxu1  ;;  %v1178_v59 = vsel %vm565_vm3, %v1174_v52, -1e+30 }
 0x6c7   : > { %v3079_v60 = vpop.f32.mrb[22].mxu0  ;;  %v1182_v61 = vsel %vm677_vm4, %v1178_v59, -inf }
 0x6c8   : > { %v1071_v62 = vpack.c.bf16 %v3079_v60, %v3075_v54  ;;  %1183 = vmax.xlane.f32.xlu0 %v1182_v61  ;;  %v2325_v63 = vpop.f32.mrb[23].mxu0  ;;  %v1179_v0 = vsel %vm565_vm3, %v1175_v56, -1e+30 }
 0x6c9   : > { %v1185_v1 = vsel %vm677_vm4, %v1179_v0, -inf }
 0x6ca   : > { %1186 = vmax.xlane.f32.xlu1 %v1185_v1 }
 0x6cd   : > { %v1167_v2 = vpop.f32.mrb[24].mxu0 }
 0x6ce   : > { %v1176_v3 = vmul.f32 0.35355338, %v1167_v2  ;;  %v2336_v4 = vpop.f32.mrb[25].mxu0 }
 0x6cf   : > { %v1170_v5 = vpop.f32.mrb[26].mxu0 }
 0x6d0   : > { %v1177_v6 = vmul.f32 0.35355338, %v1170_v5  ;;  %v2337_v7 = vpop.f32.mrb[27].mxu0  ;;  %v1180_v9 = vsel %vm565_vm3, %v1176_v3, -1e+30 }
 0x6d1   : > { %v1188_v10 = vsel %vm677_vm4, %v1180_v9, -inf }
 0x6d2   : > { %1189 = vmax.xlane.f32.xlu0 %v1188_v10  ;;  %v1181_v11 = vsel %vm565_vm3, %v1177_v6, -1e+30 }
 0x6d3   : > { %v1191_v12 = vsel %vm677_vm4, %v1181_v11, -inf }
 0x6d6   : > { %1192 = vmax.xlane.f32.xlu0 %v1191_v12 }
 0x6db   : > { %1228 = vrot.lane.b32.xlu1 %v2956_v19, %s2728_s20 }
 0x755   : > { %v1184_v13 = vpop.xlane.xlu0 %1183 }
 0x756   : > { %v1194_v14 = vsub.f32 %v1178_v59, %v1184_v13 }
 0x757   : > { %v1187_v15 = vpop.xlane.xlu1 %1186 }
 0x758   : > { %v1198_v16 = vmul.f32 1.442695, %v1194_v14  ;;  %v1195_v17 = vsub.f32 %v1179_v0, %v1187_v15 }
 0x75a   : > { %2535 = vpow2.f32 %v1198_v16  ;;  %v1200_v20 = vmul.f32 1.442695, %v1195_v17 }
 0x75b   : > { %v1229_v21 = vpop.permute.xlu1 %1228 }
 0x75c   : > { %2537 = vpow2.f32 %v1200_v20  ;;  %2339 = vmatpush3.bf16.msra.mxu1 %v1229_v21 }
 0x75d   : > { %2350 = vmatprep.subr.bf16.mxu1 %v2719_v8 }
 0x75f   : > { %v1190_v22 = vpop.xlane.xlu0 %1189 }
 0x760   : > { %v1196_v23 = vsub.f32 %v1180_v9, %v1190_v22 }
 0x762   : > { %v1202_v24 = vmul.f32 1.442695, %v1196_v23 }
 0x763   : > { %v1193_v26 = vpop.xlane.xlu0 %1192 }
 0x764   : > { %v2536_v27 = vpop.eup %2535  ;;  %2539 = vpow2.f32 %v1202_v24  ;;  %v1197_v29 = vsub.f32 %v1181_v11, %v1193_v26 }
 0x765   : > { %v1206_v32 = vsel %vm677_vm4, %v2536_v27, 0.0 }
 0x766   : > { %v2538_v34 = vpop.eup %2537  ;;  %v1204_v35 = vmul.f32 1.442695, %v1197_v29  ;;  %1207 = vadd.xlane.f32.xlu1 %v1206_v32 }
 0x767   : > { %v1209_v36 = vsel %vm677_vm4, %v2538_v34, 0.0 }
 0x768   : > { %2541 = vpow2.f32 %v1204_v35  ;;  %1210 = vadd.xlane.f32.xlu0 %v1209_v36 }
 0x76e   : > { %v2540_v37 = vpop.eup %2539 }
 0x76f   : > { %v1212_v39 = vsel %vm677_vm4, %v2540_v37, 0.0 }
 0x770   : > { %1213 = vadd.xlane.f32.xlu1 %v1212_v39 }
 0x772   : > { %v2542_v41 = vpop.eup %2541 }
 0x773   : > { %v1215_v42 = vsel %vm677_vm4, %v2542_v41, 0.0 }
 0x774   : > { %1216 = vadd.xlane.f32.xlu0 %v1215_v42 }
 0x781   : > { %1326 = vrot.lane.b32.xlu1 %v2956_v19, %s2729_s15 }
 0x785   : > { %1377 = vrot.lane.b32.xlu1 %v2954_v18, %s2729_s15  ;;  %s3344_s15 = sld [smem:[#allocation17_spill]] }
 0x789   : > { %1375 = vrot.lane.b32.xlu1 %v2954_v18, %s2730_s14 }
 0x78a   : > { %1275 = vrot.lane.b32.xlu0 %v2954_v18, %s2728_s20 }
 0x78e   : > { %1324 = vrot.lane.b32.xlu0 %v2956_v19, %s2730_s14  ;;  %s3256_s14 = scalar_lea.hbm %s3344_s15, %s2215_s28 }
 0x7f3   : > { %v1208_v43 = vpop.xlane.xlu1 %1207 }
 0x7f4   : > { %2543 = vrcp.f32 %v1208_v43 }
 0x7f5   : > { %v1211_v44 = vpop.xlane.xlu0 %1210 }
 0x7f6   : > { %2545 = vrcp.f32 %v1211_v44 }
 0x7fd   : > { %v1214_v45 = vpop.xlane.xlu1 %1213 }
 0x7fe   : > { %v2544_v47 = vpop.eup %2543  ;;  %2547 = vrcp.f32 %v1214_v45 }
 0x7ff   : > { %v1219_v51 = vmul.f32 %v2544_v47, %v2536_v27 }
 0x800   : > { %v2546_v50 = vpop.eup %2545 }
 0x801   : > { %v1221_v52 = vmul.f32 %v2546_v50, %v2538_v34  ;;  %v1217_v53 = vpop.xlane.xlu0 %1216  ;;  %v1327_v55 = vpop.permute.xlu1 %1326 }
 0x802   : > { %2549 = vrcp.f32 %v1217_v53  ;;  %v1332_v57 = vsel %vm569_vm2, %v1327_v55, 0 }
 0x803   : > { %v1226_v56 = vpack.c.bf16 %v1221_v52, %v1219_v51 }
 0x805   : > { %2341 = vmatmul.mubr.msk.bf16.vlgmr.msra.gmra.mrb[16].mxu1 %vm677_vm4, %v1226_v56  ;;  %v1276_v58 = vpop.permute.xlu0 %1275  ;;  %v1378_v2 = vpop.permute.xlu1 %1377 }
 0x806   : > { %2351 = vmatpush3.bf16.xpose.msra.mxu1 %v1332_v57  ;;  %2345 = vmatpush3.bf16.msra.mxu0 %v1276_v58  ;;  %v1383_v4 = vsel %vm569_vm2, %v1378_v2, 0 }
 0x807   : > { %2352 = vmatprep.mubr.msk.bf16.mxu1 %vm2720_vm1, %v2719_v8  ;;  %2356 = vmatprep.subr.bf16.mxu0 %v2719_v8 }
 0x808   : > { %2362 = vmatprep.subr.bf16.mxu1 %v2719_v8  ;;  %v2548_v59 = vpop.eup %2547 }
 0x809   : > { %v1325_v63 = vpop.permute.xlu0 %1324  ;;  %v1223_v0 = vmul.f32 %v2548_v59, %v2540_v37  ;;  %v1376_v5 = vpop.permute.xlu1 %1375 }
 0x80c   : > { %v2550_v61 = vpop.eup %2549 }
 0x80d   : > { %v1225_v1 = vmul.f32 %v2550_v61, %v2542_v41  ;;  %2353 = vmatmul.mubr.msk.bf16.vlgmr.msra.gmra.mrb[20].mxu1 %vm569_vm2, %v1325_v63 }
 0x80e   : > { %2364 = vmatprep.mubr.msk.bf16.mxu1 %vm2720_vm1, %v2719_v8 }
 0x80f   : > { %v1227_v3 = vpack.c.bf16 %v1225_v1, %v1223_v0 }
 0x811   : > { %2347 = vmatmul.mubr.msk.bf16.vlgmr.msra.gmra.mrb[28].mxu0 %vm677_vm4, %v1227_v3 }
 0x812   : > { %2357 = vmatpush3.bf16.xpose.msra.mxu0 %v1383_v4  ;;  %2358 = vmatprep.mubr.msk.bf16.mxu0 %vm2720_vm1, %v2719_v8 }
 0x813   : > { %2368 = vmatprep.subr.bf16.mxu0 %v2719_v8 }
 0x819   : > { %2359 = vmatmul.mubr.msk.bf16.vlgmr.msra.gmra.mrb[32].mxu0 %vm569_vm2, %v1376_v5 }
 0x81a   : > { %2370 = vmatprep.mubr.msk.bf16.mxu0 %vm2720_vm1, %v2719_v8 }
 0x8d8   : > { %v3123_v6 = vpop.f32.mrb[16].mxu1 }
 0x8d9   : > { %v2342_v7 = vpop.f32.mrb[17].mxu1 }
 0x8da   : > { %v3125_v9 = vpop.f32.mrb[18].mxu1 }
 0x8db   : > { %v1322_v10 = vpack.c.bf16 %v3125_v9, %v3123_v6  ;;  %v2343_v11 = vpop.f32.mrb[19].mxu1 }
 0x8e0   : > { %v1368_v12 = vpop.f32.mrb[20].mxu1 }
 0x8e1   : > { %v1426_v13 = vmul.f32 0.35355338, %v1368_v12  ;;  %v2354_v14 = vpop.f32.mrb[21].mxu1 }
 0x8e2   : > { %v1371_v15 = vpop.f32.mrb[22].mxu1 }
 0x8e3   : > { %v1427_v16 = vmul.f32 0.35355338, %v1371_v15  ;;  %v2355_v17 = vpop.f32.mrb[23].mxu1  ;;  %v1430_v20 = vsel %vm565_vm3, %v1426_v13, -1e+30  ;;  %v2491_v15 = vld [vmem:[#allocation2] sm:$0xff]  }
 0x8e4   : > { %v1315_v21 = vpop.f32.mrb[28].mxu0  ;;  %v1434_v8 = vsel %vm677_vm4, %v1430_v20, -inf }
 0x8e5   : > { %1435 = vmax.xlane.f32.xlu0 %v1434_v8  ;;  %v2348_v22 = vpop.f32.mrb[29].mxu0  ;;  %v1431_v23 = vsel %vm565_vm3, %v1427_v16, -1e+30  ;;  %v2492_v16 = vld [vmem:[#allocation2 + $0x8] sm:$0xff]  }
 0x8e6   : > { %v1318_v24 = vpop.f32.mrb[30].mxu0  ;;  %v1437_v26 = vsel %vm677_vm4, %v1431_v23, -inf }
 0x8e7   : > { %v1323_v27 = vpack.c.bf16 %v1318_v24, %v1315_v21  ;;  %1438 = vmax.xlane.f32.xlu1 %v1437_v26  ;;  %v2349_v29 = vpop.f32.mrb[31].mxu0 }
 0x8ec   : > { %v1419_v32 = vpop.f32.mrb[32].mxu0 }
 0x8ed   : > { %v1428_v34 = vmul.f32 0.35355338, %v1419_v32  ;;  %v2360_v35 = vpop.f32.mrb[33].mxu0 }
 0x8ee   : > { %v1422_v36 = vpop.f32.mrb[34].mxu0 }
 0x8ef   : > { %v1429_v37 = vmul.f32 0.35355338, %v1422_v36  ;;  %v2361_v39 = vpop.f32.mrb[35].mxu0  ;;  %v1432_v41 = vsel %vm565_vm3, %v1428_v34, -1e+30 }
 0x8f0   : > { %v1440_v42 = vsel %vm677_vm4, %v1432_v41, -inf }
 0x8f1   : > { %1441 = vmax.xlane.f32.xlu0 %v1440_v42  ;;  %v1433_v43 = vsel %vm565_vm3, %v1429_v37, -1e+30 }
 0x8f2   : > { %v1443_v44 = vsel %vm677_vm4, %v1433_v43, -inf }
 0x8f5   : > { %1444 = vmax.xlane.f32.xlu0 %v1443_v44 }
 0x972   : > { %v1436_v45 = vpop.xlane.xlu0 %1435 }
 0x973   : > { %v1446_v47 = vsub.f32 %v1430_v20, %v1436_v45 }
 0x974   : > { %v1439_v50 = vpop.xlane.xlu1 %1438 }
 0x975   : > { %v1450_v51 = vmul.f32 1.442695, %v1446_v47  ;;  %v1447_v52 = vsub.f32 %v1431_v23, %v1439_v50 }
 0x977   : > { %2551 = vpow2.f32 %v1450_v51  ;;  %v1452_v53 = vmul.f32 1.442695, %v1447_v52  ;;  %v2583_v52 = vld [vmem:[%s2931_s27] sm:$0xff] }
 0x979   : > { %2553 = vpow2.f32 %v1452_v53 }
 0x97e   : > { %v1442_v55 = vpop.xlane.xlu0 %1441 }
 0x97f   : > { %v1448_v56 = vsub.f32 %v1432_v41, %v1442_v55 }
 0x981   : > { %v2552_v57 = vpop.eup %2551  ;;  %v1454_v58 = vmul.f32 1.442695, %v1448_v56 }
 0x982   : > { %v1445_v59 = vpop.xlane.xlu0 %1444  ;;  %v1458_v61 = vsel %vm677_vm4, %v2552_v57, 0.0 }
 0x983   : > { %v2554_v25 = vpop.eup %2553  ;;  %2555 = vpow2.f32 %v1454_v58  ;;  %v1449_v63 = vsub.f32 %v1433_v43, %v1445_v59  ;;  %1459 = vadd.xlane.f32.xlu1 %v1458_v61  ;;  %v2585_v59 = vld [vmem:[%s2931_s27 + $0x10] sm:$0xff] }
 0x984   : > { %v1461_v0 = vsel %vm677_vm4, %v2554_v25, 0.0 }
 0x985   : > { %v1456_v1 = vmul.f32 1.442695, %v1449_v63  ;;  %1462 = vadd.xlane.f32.xlu0 %v1461_v0  ;;  %v2586_v0 = vld [vmem:[%s2931_s27 + $0x18] sm:$0xff] }
 0x987   : > { %2557 = vpow2.f32 %v1456_v1 }
 0x98d   : > { %v2556_v2 = vpop.eup %2555 }
 0x98e   : > { %v1464_v3 = vsel %vm677_vm4, %v2556_v2, 0.0 }
 0x98f   : > { %1465 = vadd.xlane.f32.xlu1 %v1464_v3 }
 0x991   : > { %v2558_v4 = vpop.eup %2557 }
 0x992   : > { %v1467_v5 = vsel %vm677_vm4, %v2558_v4, 0.0 }
 0x993   : > { %1468 = vadd.xlane.f32.xlu0 %v1467_v5 }
 0x9a0   : > { %1480 = vrot.lane.b32.xlu1 %v2956_v19, %s2731_s17 }
 0x9a4   : > { %1578 = vrot.lane.b32.xlu1 %v1070_v49, %s2732_s19 }
 0x9a8   : > { %1580 = vrot.lane.b32.xlu1 %v1071_v62, %s2732_s19 }
 0x9a9   : > { %1527 = vrot.lane.b32.xlu0 %v2954_v18, %s2731_s17 }
 0x9ac   : > { %1586 = vrot.lane.b32.xlu1 %v1323_v27, %s2733_s16 }
 0x9ad   : > { %1584 = vrot.lane.b32.xlu0 %v1322_v10, %s2733_s16  ;;  %s464_s16 = sand.u32 1, %s2705_s26  }
 0x9ae   : > { %s2159_s22 = sshll.u32 %s464_s16, 5  ;;  %s3262_s29 = scalar_lea.sflag [#allocation4], %s464_s16 }
 0x9af   : > { %s466_s25 = scalar_lea.vmem [#allocation7], %s2159_s22 }
 0x9b0   : > { %s2067_s23 = sshll.u32 %s466_s25, 4  ;;  %s3259_s23 = int_to_ptr.vmem [resolvable:$true] %s2067_s23 }
 0x9b1   : > { %s2643_s17 = scalar_lea.vmem %s3259_s23, 512 }
 0x9b2   : > { %p2644_p12 = scmp.ne.s32.totalorder %s3259_s23, %s2643_s17 }
 0x9b4   : > { %p2645_p2 = pnand %p2644_p12, %p3345_p1 }
 0x9b6   : > { %p2646_p3 = pneg %p2645_p2 }
 0xa10   : > { %v1460_v19 = vpop.xlane.xlu1 %1459 }
 0xa11   : > { %2559 = vrcp.f32 %v1460_v19 }
 0xa12   : > { %v1463_v7 = vpop.xlane.xlu0 %1462 }
 0xa13   : > { %2561 = vrcp.f32 %v1463_v7 }
 0xa1b   : > { %v2560_v11 = vpop.eup %2559 }
 0xa1c   : > { %v1466_v46 = vpop.xlane.xlu1 %1465  ;;  %v1471_v12 = vmul.f32 %v2560_v11, %v2552_v57  ;;  %v2584_v57 = vld [vmem:[%s2931_s27 + $0x8] sm:$0xff] }
 0xa1d   : > { %v2562_v48 = vpop.eup %2561  ;;  %2563 = vrcp.f32 %v1466_v46 }
 0xa1e   : > { %v1473_v49 = vmul.f32 %v2562_v48, %v2554_v25 }
 0xa20   : > { %v1481_v54 = vpop.permute.xlu1 %1480  ;;  %v1469_v60 = vpop.xlane.xlu0 %1468  ;;  %v1478_v18 = vpack.c.bf16 %v1473_v49, %v1471_v12 }
 0xa21   : > { %2565 = vrcp.f32 %v1469_v60  ;;  %2363 = vmatpush3.bf16.msra.mxu1 %v1481_v54 }
 0xa22   : > { %2374 = vmatprep.subr.bf16.mxu1 %v2491_v15 }
 0xa24   : > { %2365 = vmatmul.mubr.msk.bf16.vlgmr.msra.gmra.mrb[24].mxu1 %vm677_vm4, %v1478_v18  ;;  %v1528_v62 = vpop.permute.xlu0 %1527  ;;  %v1579_v32 = vpop.permute.xlu1 %1578 }
 0xa25   : > { %2369 = vmatpush3.bf16.msra.mxu0 %v1528_v62  ;;  %2375 = vmatpush3.bf16.msra.mxu1 %v2491_v15  ;;  %v1596_v35 = vsel %vm569_vm2, %v818_v31, %v1579_v32  ;;  %v2184_v31 = vld [vmem:[%s3308_s4] ss:$0 sm:$0xff] }
 0xa26   : > { %2376 = vmatprep.subr.bf16.mxu1 %v2492_v16 }
 0xa27   : > { %v2564_v6 = vpop.eup %2563 }
 0xa28   : > { %v1475_v10 = vmul.f32 %v2564_v6, %v2556_v2  ;;  %v1585_v34 = vpop.permute.xlu0 %1584  ;;  %v1581_v41 = vpop.permute.xlu1 %1580 }
 0xa29   : > { %2377 = vmatpush3.bf16.msra.mxu1 %v2492_v16  ;;  %v1601_v36 = vsel %vm677_vm4, %v1596_v35, %v1585_v34  ;;  %v1599_v43 = vsel %vm569_vm2, %v819_v40, %v1581_v41  ;;  %v2493_v16 = vld [vmem:[#allocation5] sm:$0xff]  }
 0xa2a   : > { %2382 = vmatprep.subr.bf16.mxu0 %v2493_v16 }
 0xa2b   : > { %v2566_v9 = vpop.eup %2565 }
 0xa2c   : > { %v1477_v13 = vmul.f32 %v2566_v9, %v2558_v4  ;;  %v1587_v42 = vpop.permute.xlu1 %1586 }
 0xa2d   : > { %v1603_v44 = vsel %vm677_vm4, %v1599_v43, %v1587_v42 }
 0xa2e   : > { %v1479_v14 = vpack.c.bf16 %v1477_v13, %v1475_v10 }
 0xa30   : > { %2371 = vmatmul.mubr.msk.bf16.vlgmr.msra.gmra.mrb[36].mxu0 %vm677_vm4, %v1479_v14 }
 0xa31   : > { %2383 = vmatpush3.bf16.msra.mxu0 %v2493_v16 }
 0xaf7   : > { %v1520_v17 = vpop.f32.mrb[24].mxu1 }
 0xaf8   : > { %v2366_v20 = vpop.f32.mrb[25].mxu1 }
 0xaf9   : > { %v1523_v21 = vpop.f32.mrb[26].mxu1  ;;  %v2495_v20 = vld [vmem:[%s3311_s7] sm:$0xff]  }
 0xafa   : > { %v1574_v8 = vpack.c.bf16 %v1523_v21, %v1520_v17  ;;  %v2367_v22 = vpop.f32.mrb[27].mxu1  ;;  %v2494_v17 = vld [vmem:[#allocation5 + $0x8] sm:$0xff]   ;;  %v2496_v21 = vld [vmem:[%s3311_s7 + $0x8] sm:$0xff]   ;;  %2390 = vmatprep.subr.bf16.mxu1 %v2495_v20 }
 0xafb   : > { %2384 = vmatprep.subr.bf16.mxu0 %v2494_v17  ;;  %v2498_v22 = vld [vmem:[%s3311_s7 + $0x18] sm:$0xff]  }
 0xafc   : > { %1590 = vrot.lane.b32.xlu0 %v1574_v8, %s2734_s21  ;;  %2385 = vmatpush3.bf16.msra.mxu0 %v2494_v17  ;;  %v2497_v8 = vld [vmem:[%s3311_s7 + $0x10] sm:$0xff]  }
 0xb03   : > { %v1567_v23 = vpop.f32.mrb[36].mxu0 }
 0xb04   : > { %v2372_v24 = vpop.f32.mrb[37].mxu0 }
 0xb05   : > { %v1570_v26 = vpop.f32.mrb[38].mxu0  ;;  %v2500_v24 = vld [vmem:[%s3311_s7 + $0x28] sm:$0xff]  }
 0xb06   : > { %v1575_v27 = vpack.c.bf16 %v1570_v26, %v1567_v23  ;;  %v2373_v29 = vpop.f32.mrb[39].mxu0  ;;  %v2499_v23 = vld [vmem:[%s3311_s7 + $0x20] sm:$0xff]  }
 0xb08   : > { %1592 = vrot.lane.b32.xlu1 %v1575_v27, %s2734_s21  ;;  %s2735_s21 = smov [#allocation7]  }
 0xb09   : > { %s2647_s24 = sshll.u32 %s2735_s21, 4  ;;  %s2648_s24 = int_to_ptr.vmem [resolvable:$false] %s2647_s24 }
 0xb0a   : > { %s2649_s22 = scalar_lea.vmem %s2648_s24, 1024  ;;  %p2650_p4 = scmp.lt.s32.totalorder %s3259_s23, %s2648_s24 }
 0xb0b   : > { %p2651_p7 = scmp.lt.s32.totalorder %s2649_s22, %s2643_s17 }
 0xb0d   : > { %p2652_p8 = por %p2651_p7, %p2650_p4 }
 0xb0f   : > { %p2653_p11 = pnand %p2652_p8, %p2646_p3 }
 0xb6e   : > { %v1591_v37 = vpop.permute.xlu0 %1590 }
 0xb6f   : > { %v1606_v39 = vsel %vm1604_vm5, %v1601_v36, %v1591_v37 }
 0xb70   : > { %2378 = vmatprep.mubr.msk.bf16.mxu1 %vm505_vm0, %v1606_v39 }
 0xb7a   : > { %v1593_v28 = vpop.permute.xlu1 %1592 }
 0xb7b   : > { %v1608_v30 = vsel %vm1604_vm5, %v1603_v44, %v1593_v28  ;;  %v2189_v28 = vld [vmem:[%s3313_s9] ss:$0 sm:$0xff] }
 0xb7c   : > { %2379 = vmatmul.mubr.msk.bf16.vlgmr.msra.gmra.mrb[28].mxu1 %vm505_vm0, %v1608_v30 }
 0xb7d   : > { %2391 = vmatpush3.bf16.msra.mxu1 %v2495_v20 }
 0xb7e   : > { %2392 = vmatprep.subr.bf16.mxu1 %v2496_v21 }
 0xb81   : > { %2393 = vmatpush3.bf16.msra.mxu1 %v2496_v21 }
 0xb82   : > { %2394 = vmatprep.subr.bf16.mxu1 %v2497_v8 }
 0xb85   : > { %2395 = vmatpush3.bf16.msra.mxu1 %v2497_v8 }
 0xb86   : > { %2396 = vmatprep.subr.bf16.mxu1 %v2498_v22 }
 0xb89   : > { %2397 = vmatpush3.bf16.msra.mxu1 %v2498_v22 }
 0xb8a   : > { %2398 = vmatprep.subr.bf16.mxu1 %v2499_v23 }
 0xb8d   : > { %2399 = vmatpush3.bf16.msra.mxu1 %v2499_v23 }
 0xb8e   : > { %2400 = vmatprep.subr.bf16.mxu1 %v2500_v24 }
 0xb91   : > { %2401 = vmatpush3.bf16.msra.mxu1 %v2500_v24 }
 0xc4f   : > { %v2380_v45 = vpop.f32.mrb[28].mxu1 }
 0xc50   : > { %v1670_v47 = vpop.f32.mrb[29].mxu1  ;;  %v1679_v50 = vadd.f32 %v2380_v45, %v2184_v31 }
 0xc51   : > { %v1671_v51 = vadd.f32 %v2184_v31, %v1670_v47  ;;  %v2381_v33 = vpop.f32.mrb[30].mxu1 }
 0xc52   : > { %v1673_v38 = vpop.f32.mrb[31].mxu1  ;;  %v1682_v55 = vadd.f32 %v2381_v33, %v2184_v31  ;;  %v1687_v61 = vadd.f32 %v2585_v59, %v1679_v50 }
 0xc53   : > { %v1674_v40 = vadd.f32 %v2184_v31, %v1673_v38  ;;  %v1685_v53 = vadd.f32 %v2583_v52, %v1671_v51  ;;  %v2190_v51 = vld [vmem:[%s3314_s10] ss:$0 sm:$0xff] }
 0xc54   : > { %v1695_v63 = vsel %vm505_vm0, %v1687_v61, 0.0  ;;  %v1688_v1 = vadd.f32 %v2586_v0, %v1682_v55  ;;  %v2502_v0 = vld [vmem:[%s3311_s7 + $0x38] sm:$0xff]  }
 0xc55   : > { %v1689_v56 = vsel %vm505_vm0, %v1685_v53, 0.0  ;;  %v1686_v58 = vadd.f32 %v2584_v57, %v1674_v40 }
 0xc56   : > { %1690 = vadd.xlane.f32.xlu0 %v1689_v56  ;;  %v1698_v2 = vsel %vm505_vm0, %v1688_v1, 0.0 }
 0xc57   : > { %v1692_v25 = vsel %vm505_vm0, %v1686_v58, 0.0 }
 0xc58   : > { %1693 = vadd.xlane.f32.xlu1 %v1692_v25 }
 0xc5a   : > { %1696 = vadd.xlane.f32.xlu0 %v1695_v63  ;;  %v2501_v63 = vld [vmem:[%s3311_s7 + $0x30] sm:$0xff]  }
 0xc5b   : > { %2402 = vmatprep.subr.bf16.mxu1 %v2501_v63 }
 0xc5c   : > { %2403 = vmatpush3.bf16.msra.mxu1 %v2501_v63 }
 0xc5d   : > { %2404 = vmatprep.subr.bf16.mxu1 %v2502_v0 }
 0xc5e   : > { %1699 = vadd.xlane.f32.xlu0 %v1698_v2 }
 0xc60   : > { %2405 = vmatpush3.bf16.msra.mxu1 %v2502_v0 }
 0xce3   : > { %v1691_v3 = vpop.xlane.xlu0 %1690 }
 0xce4   : > { %v1702_v4 = vmul.f32 0.03125, %v1691_v3 }
 0xce5   : > { %v1694_v5 = vpop.xlane.xlu1 %1693 }
 0xce6   : > { %v3183_v19 = vsub.f32 %v1685_v53, %v1702_v4  ;;  %v1703_v7 = vmul.f32 0.03125, %v1694_v5 }
 0xce7   : > { %v1697_v11 = vpop.xlane.xlu0 %1696 }
 0xce8   : > { %v1707_v46 = vsub.f32 %v1686_v58, %v1703_v7  ;;  %v1704_v48 = vmul.f32 0.03125, %v1697_v11  ;;  %v1710_v49 = vmul.f32 %v3183_v19, %v3183_v19 }
 0xcea   : > { %v3187_v12 = vsub.f32 %v1687_v61, %v1704_v48  ;;  %v1714_v54 = vsel %vm505_vm0, %v1710_v49, 0.0  ;;  %v1711_v60 = vmul.f32 %v1707_v46, %v1707_v46 }
 0xceb   : > { %1715 = vadd.xlane.f32.xlu1 %v1714_v54  ;;  %v1700_v18 = vpop.xlane.xlu0 %1699 }
 0xcec   : > { %v1705_v62 = vmul.f32 0.03125, %v1700_v18  ;;  %v1717_v6 = vsel %vm505_vm0, %v1711_v60, 0.0  ;;  %v1712_v9 = vmul.f32 %v3187_v12, %v3187_v12 }
 0xced   : > { %1718 = vadd.xlane.f32.xlu0 %v1717_v6 }
 0xcee   : > { %v1709_v10 = vsub.f32 %v1688_v1, %v1705_v62  ;;  %v1720_v13 = vsel %vm505_vm0, %v1712_v9, 0.0  ;;  %v2191_v1 = vld [vmem:[%s3310_s6] ss:$0 sm:$0xff] }
 0xcef   : > { %1721 = vadd.xlane.f32.xlu1 %v1720_v13  ;;  %v2196_v62 = vld [vmem:[%s3312_s8] ss:$0 sm:$0xff] }
 0xcf0   : > { %v1713_v14 = vmul.f32 %v1709_v10, %v1709_v10 }
 0xcf2   : > { %v1723_v15 = vsel %vm505_vm0, %v1713_v14, 0.0 }
 0xcf3   : > { %1724 = vadd.xlane.f32.xlu0 %v1723_v15 }
 0xd78   : > { %v1716_v26 = vpop.xlane.xlu1 %1715 }
 0xd79   : > { %v1726_v27 = vmul.f32 0.03125, %v1716_v26 }
 0xd7a   : > { %v1719_v29 = vpop.xlane.xlu0 %1718 }
 0xd7b   : > { %v1730_v32 = vadd.f32 1e-05, %v1726_v27  ;;  %v1727_v34 = vmul.f32 0.03125, %v1719_v29 }
 0xd7c   : > { %v1722_v35 = vpop.xlane.xlu1 %1721 }
 0xd7d   : > { %2567 = vrsqrt.f32 %v1730_v32  ;;  %v1731_v36 = vadd.f32 1e-05, %v1727_v34  ;;  %v1728_v37 = vmul.f32 0.03125, %v1722_v35 }
 0xd7f   : > { %2569 = vrsqrt.f32 %v1731_v36  ;;  %v1732_v39 = vadd.f32 1e-05, %v1728_v37 }
 0xd80   : > { %v1725_v41 = vpop.xlane.xlu0 %1724 }
 0xd81   : > { %2571 = vrsqrt.f32 %v1732_v39  ;;  %v1729_v42 = vmul.f32 0.03125, %v1725_v41 }
 0xd83   : > { %v1733_v43 = vadd.f32 1e-05, %v1729_v42 }
 0xd85   : > { %2573 = vrsqrt.f32 %v1733_v43 }
 0xd87   : > { %v2568_v44 = vpop.eup %2567 }
 0xd88   : > { %v1738_v30 = vmul.f32 %v2568_v44, %v3183_v19 }
 0xd89   : > { %v2570_v31 = vpop.eup %2569 }
 0xd8a   : > { %v1739_v45 = vmul.f32 %v2570_v31, %v1707_v46  ;;  %v1749_v47 = vmul.f32 %v2189_v28, %v1738_v30 }
 0xd8b   : > { %v2572_v50 = vpop.eup %2571 }
 0xd8c   : > { %v1740_v33 = vmul.f32 %v2572_v50, %v3187_v12  ;;  %v1750_v38 = vmul.f32 %v2189_v28, %v1739_v45  ;;  %v1760_v40 = vadd.f32 %v2190_v51, %v1749_v47 }
 0xd8e   : > { %v1761_v52 = vadd.f32 %v2190_v51, %v1750_v38  ;;  %v1751_v55 = vmul.f32 %v2189_v28, %v1740_v33 }
 0xd8f   : > { %v2574_v53 = vpop.eup %2573 }
 0xd90   : > { %v1741_v56 = vmul.f32 %v2574_v53, %v1709_v10  ;;  %v1764_v57 = vpack.c.bf16 %v1761_v52, %v1760_v40  ;;  %v1762_v59 = vadd.f32 %v2190_v51, %v1751_v55 }
 0xd92   : > { %v1752_v58 = vmul.f32 %v2189_v28, %v1741_v56  ;;  %2386 = vmatprep.mubr.msk.bf16.mxu0 %vm505_vm0, %v1764_v57 }
 0xd94   : > { %v1763_v61 = vadd.f32 %v2190_v51, %v1752_v58 }
 0xd96   : > { %v1765_v25 = vpack.c.bf16 %v1763_v61, %v1762_v59 }
 0xd98   : > { %2387 = vmatmul.mubr.msk.bf16.vlgmr.msra.gmra.mrb[40].mxu0 %vm505_vm0, %v1765_v25 }
 0xe6b   : > { %v2388_v2 = vpop.f32.mrb[40].mxu0 }
 0xe6c   : > { %v1838_v3 = vadd.f32 %v2388_v2, %v2191_v1  ;;  %v1829_v4 = vpop.f32.mrb[41].mxu0  ;;  %v2205_v2 = vld [vmem:[%s3315_s11] ss:$0 sm:$0xff] }
 0xe6d   : > { %v1830_v5 = vadd.f32 %v2191_v1, %v1829_v4  ;;  %v2389_v19 = vpop.f32.mrb[42].mxu0 }
 0xe6e   : > { %v1841_v7 = vadd.f32 %v2389_v19, %v2191_v1  ;;  %v1832_v11 = vpop.f32.mrb[43].mxu0  ;;  %v1846_v48 = vmax.f32 %v1838_v3, 0.0 }
 0xe6f   : > { %v1833_v46 = vadd.f32 %v2191_v1, %v1832_v11  ;;  %v1844_v12 = vmax.f32 %v1830_v5, 0.0  ;;  %v2206_v5 = vld [vmem:[%s3316_s12] ss:$0 sm:$0xff] }
 0xe70   : > { %v1847_v49 = vmax.f32 %v1841_v7, 0.0 }
 0xe71   : > { %v1845_v54 = vmax.f32 %v1833_v46, 0.0 }
 0xe72   : > { %v1849_v60 = vpack.c.bf16 %v1847_v49, %v1846_v48 }
 0xe73   : > { %v1848_v18 = vpack.c.bf16 %v1845_v54, %v1844_v12 }
 0xe75   : > { %2406 = vmatprep.mubr.bf16.mxu1 %v1848_v18 }
 0xe76   : > { %2407 = vmatmul.mubr.bf16.vlgmr.msra.gmra.mrb[32].mxu1 %v1849_v60 }
 0xf49   : > { %v2408_v6 = vpop.f32.mrb[32].mxu1 }
 0xf4a   : > { %v1955_v9 = vpop.f32.mrb[33].mxu1  ;;  %v1964_v10 = vadd.f32 %v2408_v6, %v2196_v62 }
 0xf4b   : > { %v1956_v13 = vadd.f32 %v2196_v62, %v1955_v9  ;;  %v2409_v14 = vpop.f32.mrb[34].mxu1 }
 0xf4c   : > { %v1958_v15 = vpop.f32.mrb[35].mxu1  ;;  %v1967_v16 = vadd.f32 %v2409_v14, %v2196_v62  ;;  %v1972_v22 = vadd.f32 %v1964_v10, %v1762_v59 }
 0xf4d   : > { %v1959_v17 = vadd.f32 %v2196_v62, %v1958_v15  ;;  %v1970_v20 = vadd.f32 %v1956_v13, %v1760_v40 }
 0xf4e   : > { %v1973_v24 = vadd.f32 %v1967_v16, %v1763_v61  ;;  %v1980_v26 = vsel %vm505_vm0, %v1972_v22, 0.0 }
 0xf4f   : > { %v1974_v21 = vsel %vm505_vm0, %v1970_v20, 0.0  ;;  %v1971_v8 = vadd.f32 %v1959_v17, %v1761_v52 }
 0xf50   : > { %1975 = vadd.xlane.f32.xlu1 %v1974_v21  ;;  %v1983_v27 = vsel %vm505_vm0, %v1973_v24, 0.0 }
 0xf51   : > { %v1977_v23 = vsel %vm505_vm0, %v1971_v8, 0.0 }
 0xf52   : > { %1978 = vadd.xlane.f32.xlu0 %v1977_v23 }
 0xf54   : > { %1981 = vadd.xlane.f32.xlu1 %v1980_v26 }
 0xf56   : > { %1984 = vadd.xlane.f32.xlu0 %v1983_v27 }
 0xfdd   : > { %v1976_v29 = vpop.xlane.xlu1 %1975 }
 0xfde   : > { %v1986_v32 = vmul.f32 0.03125, %v1976_v29 }
 0xfdf   : > { %v1979_v34 = vpop.xlane.xlu0 %1978 }
 0xfe0   : > { %v1990_v35 = vsub.f32 %v1970_v20, %v1986_v32  ;;  %v1987_v36 = vmul.f32 0.03125, %v1979_v34 }
 0xfe1   : > { %v1982_v37 = vpop.xlane.xlu1 %1981 }
 0xfe2   : > { %v1991_v39 = vsub.f32 %v1971_v8, %v1987_v36  ;;  %v1988_v41 = vmul.f32 0.03125, %v1982_v37  ;;  %v1994_v42 = vmul.f32 %v1990_v35, %v1990_v35 }
 0xfe3   : > { %v1985_v43 = vpop.xlane.xlu0 %1984 }
 0xfe4   : > { %v1992_v44 = vsub.f32 %v1972_v22, %v1988_v41  ;;  %v1989_v28 = vmul.f32 0.03125, %v1985_v43  ;;  %v1998_v30 = vsel %vm505_vm0, %v1994_v42, 0.0  ;;  %v1995_v31 = vmul.f32 %v1991_v39, %v1991_v39 }
 0xfe5   : > { %1999 = vadd.xlane.f32.xlu1 %v1998_v30 }
 0xfe6   : > { %v1993_v45 = vsub.f32 %v1973_v24, %v1989_v28  ;;  %v2001_v47 = vsel %vm505_vm0, %v1995_v31, 0.0  ;;  %v1996_v50 = vmul.f32 %v1992_v44, %v1992_v44 }
 0xfe7   : > { %2002 = vadd.xlane.f32.xlu0 %v2001_v47 }
 0xfe8   : > { %v2004_v51 = vsel %vm505_vm0, %v1996_v50, 0.0  ;;  %v1997_v33 = vmul.f32 %v1993_v45, %v1993_v45 }
 0xfe9   : > { %2005 = vadd.xlane.f32.xlu1 %v2004_v51 }
 0xfea   : > { %v2007_v38 = vsel %vm505_vm0, %v1997_v33, 0.0 }
 0xfeb   : > { %2008 = vadd.xlane.f32.xlu0 %v2007_v38 }
0x1072   : > { %v2000_v40 = vpop.xlane.xlu1 %1999 }
0x1073   : > { %v2010_v52 = vmul.f32 0.03125, %v2000_v40 }
0x1074   : > { %v2003_v53 = vpop.xlane.xlu0 %2002 }
0x1075   : > { %v2014_v55 = vadd.f32 1e-05, %v2010_v52  ;;  %v2011_v56 = vmul.f32 0.03125, %v2003_v53 }
0x1076   : > { %v2006_v57 = vpop.xlane.xlu1 %2005 }
0x1077   : > { %2575 = vrsqrt.f32 %v2014_v55  ;;  %v2015_v58 = vadd.f32 1e-05, %v2011_v56  ;;  %v2012_v59 = vmul.f32 0.03125, %v2006_v57 }
0x1078   : > { %v2009_v61 = vpop.xlane.xlu0 %2008 }
0x1079   : > { %2577 = vrsqrt.f32 %v2015_v58  ;;  %v2016_v25 = vadd.f32 1e-05, %v2012_v59  ;;  %v2013_v63 = vmul.f32 0.03125, %v2009_v61 }
0x107b   : > { %2579 = vrsqrt.f32 %v2016_v25  ;;  %v2017_v0 = vadd.f32 1e-05, %v2013_v63 }
0x107d   : > { %2581 = vrsqrt.f32 %v2017_v0 }
0x1081   : > { %v2576_v1 = vpop.eup %2575 }
0x1082   : > { %v2022_v3 = vmul.f32 %v2576_v1, %v1990_v35 }
0x1083   : > { %v2578_v4 = vpop.eup %2577 }
0x1084   : > { %v2033_v19 = vmul.f32 %v2205_v2, %v2022_v3  ;;  %v2023_v7 = vmul.f32 %v2578_v4, %v1991_v39 }
0x1085   : > { %v2580_v11 = vpop.eup %2579 }
0x1086   : > { %v2044_v46 = vadd.f32 %v2206_v5, %v2033_v19  ;;  %v2034_v48 = vmul.f32 %v2205_v2, %v2023_v7  ;;  %v2024_v49 = vmul.f32 %v2580_v11, %v1992_v44 }
0x1087   : > { %v2582_v12 = vpop.eup %2581 }
0x1088   : > { %v2045_v54 = vadd.f32 %v2206_v5, %v2034_v48  ;;  %v2035_v60 = vmul.f32 %v2205_v2, %v2024_v49  ;;  %2048 = vst.msk [vmem:[%s466_s25] sm:$0xff] %vm505_vm0, %v2044_v46  ;;  %v2025_v18 = vmul.f32 %v2582_v12, %v1993_v45 }
0x108a   : > { %v2046_v62 = vadd.f32 %v2206_v5, %v2035_v60  ;;  %2049 = vst.msk [vmem:[%s466_s25 + $0x8] sm:$0xff] %vm505_vm0, %v2045_v54  ;;  %v2036_v6 = vmul.f32 %v2205_v2, %v2025_v18 }
0x108c   : > { %2050 = vst.msk [vmem:[%s466_s25 + $0x10] sm:$0xff] %vm505_vm0, %v2046_v62  ;;  %v2047_v9 = vadd.f32 %v2206_v5, %v2036_v6 }
0x108e   : > { %2051 = vst.msk [vmem:[%s466_s25 + $0x18] sm:$0xff] %vm505_vm0, %v2047_v9 }
0x108f   : > { %2656 = shalt.err (!%p2653_p11)
}
0x1090   : > { %s2657_s16 = scalar_lea.hbm %s3256_s14, 512  ;;  %s2661_s25 = scalar_lea.hbm %s3344_s15, 1024 }
0x1091   : > { %p2658_p13 = scmp.ne.s32.totalorder %s3256_s14, %s2657_s16  ;;  %p2662_p6 = scmp.lt.u32.totalorder %s3256_s14, %s3344_s15 }
0x1092   : > { %p2663_p9 = scmp.lt.u32.totalorder %s2661_s25, %s2657_s16  ;;  %p2665_p12 = scmp.lt.u32.totalorder %s2657_s16, %s3256_s14 }
0x1093   : > { %p2659_p5 = pnand %p2658_p13, %p3345_p1 }
0x1094   : > { %p2664_p10 = por %p2663_p9, %p2662_p6 }
0x1095   : > { %p2660_p0 = pneg %p2659_p5 }
0x1096   : > { %p2666_p2 = por %p2665_p12, %p2664_p10 }
0x1098   : > { %p2667_p3 = pnand %p2666_p2, %p2660_p0 }
0x109a   : > { %2670 = shalt.err (!%p2667_p3)
}
0x109b   : > { %s2736_s20 = smov 128  }
0x109c   : > { %2418 = dma.vmem_to_hbm [thread:$0]  (%p3345_p1), %s3259_s23, 512, %s3256_s14, %s3262_s29, %s2736_s20, %s2736_s20, %s2732_s19  }
0x109d PF: > { %s3346_s17 = sld [smem:[#allocation13_spill]]  ;;  %s3347_s21 = sld [smem:[#allocation11_spill]] }
0x109e   : > { %s3348_s24 = sld [smem:[#allocation16_spill]] }
0x10a3   : > { %p2435_p4 = scmp.ge.s32.totalorder %s3346_s17, 2  ;;  %s2082_s22 = sand.u32 1, %s3347_s21  }
0x10a4   : > { %p3349_p7 = scmp.ne.s32.totalorder %s3348_s24, 0  ;;  %s2083_s16 = scalar_lea.sflag [#allocation4], %s2082_s22 }
0x10a6   : > { %p2428_p8 = pnand %p2435_p4, %p3349_p7 }
0x10a8   : > { %2696 = dma.done.wait (!%p2428_p8), %s2083_s16, 512  }
0x10a9   : > { %2698 = vsyncadd (!%p2428_p8), %s2083_s16, 4294966784  ;;  %s3350_s28 = sld [smem:[#allocation14_spill]]  ;;  %s3351_s27 = sld [smem:[#allocation12_spill]] }
0x10aa   : > { %s3352_s18 = sld [smem:[#allocation15_spill]]  ;;  %s3353_s25 = smov %s2705_s26 }
0x10af   : > { %p25_p11 = scmp.ge.s32.totalorder %s3350_s28, 4   ;;  %s3354_s26 = smov %s3351_s27 }
0x10b0   : > { %s3355_s27 = smov %s3352_s18 }
0x10b1   :  { %27 = sbr.rel (!%p25_p11) target bundleno = 7 (0x7), region = 116 }
0x10b8   :  { %2088 = vsyncpa [#allocation3], 1 }
0x10b9   :  { %2090 = vsyncpa [#allocation3 + $0x1], 1 }
0x10ba   :  { %2091 = vsyncpa [#allocation6], 1 }
0x10bb   :  { %2092 = vsyncpa [#allocation4], 1 }
0x10bc   :  { %2094 = vsyncpa [#allocation4 + $0x1], 1 }

// kernel: tpu_custom_call.1
= control target key start
LH: loop header
LB: loop body
LE: loop exit
PB: predicated region body
PF: predicated region fallthrough
CT: control target
= control target key end

     0   :  { %s3304_s0 = inlined_call_operand.vmem [shape: f32[4,16,32], index: 0, kind: input, shape index: {}]   ;;  %s3305_s1 = inlined_call_operand.vmem [shape: bf16[32,96], index: 1, kind: input, shape index: {}]   ;;  %s3306_s2 = inlined_call_operand.vmem [shape: f32[1,96], index: 2, kind: input, shape index: {}]   ;;  %s3307_s3 = inlined_call_operand.hbm [shape: bf16[32,32], index: 3, kind: input, shape index: {}]   ;;  %s3308_s4 = inlined_call_operand.vmem [shape: f32[1,32], index: 4, kind: input, shape index: {}]   ;;  %s3309_s5 = inlined_call_operand.hbm [shape: bf16[32,128], index: 5, kind: input, shape index: {}]   ;;  %s3310_s6 = inlined_call_operand.vmem [shape: f32[1,128], index: 6, kind: input, shape index: {}]   ;;  %s3311_s7 = inlined_call_operand.vmem [shape: bf16[128,32], index: 7, kind: input, shape index: {}]   ;;  %s3312_s8 = inlined_call_operand.vmem [shape: f32[1,32], index: 8, kind: input, shape index: {}]   ;;  %s3313_s9 = inlined_call_operand.vmem [shape: f32[1,32], index: 9, kind: input, shape index: {}]   ;;  %s3314_s10 = inlined_call_operand.vmem [shape: f32[1,32], index: 10, kind: input, shape index: {}]   ;;  %s3315_s11 = inlined_call_operand.vmem [shape: f32[1,32], index: 11, kind: input, shape index: {}]   ;;  %s3316_s12 = inlined_call_operand.vmem [shape: f32[1,32], index: 12, kind: input, shape index: {}]   ;;  %s3317_s13 = inlined_call_operand.hbm [shape: f32[4,16,32], index: 13, kind: output, shape index: {}]  }
   0x1   :  { %3328 = sst [smem:[#allocation17_spill]] %s3317_s13 }
   0x2   :  { %18 = vsyncpa [#allocation3], 0 }
   0x3   :  { %19 = vsyncpa [#allocation6], 0 }
   0x4   :  { %20 = vsyncpa [#allocation4], 0 }
   0x5   :  { %22 = vsyncpa [#allocation4 + $0x1], 0  ;;  %s2807_s25 = smov 0   ;;  %s2809_s26 = smov 0  }
   0x6   :  { %s2811_s27 = smov 0   ;;  %s2813_s28 = smov 0  }
   0x7 LB: > { %3329 = sst [smem:[#allocation11_spill]] %s2701_s25  ;;  %s2828_s29 = sadd.s32 4294967295, %s2713_s28   ;;  %s2713_s28 = sphi %s2813_s28, %s3350_s28   ;;  %s2709_s27 = sphi %s2811_s27, %s3355_s27   ;;  %s2705_s26 = sphi %s2809_s26, %s3354_s26   ;;  %s2701_s25 = sphi %s2807_s25, %s3353_s25  }
   0x8   : > { %3330 = sst [smem:[#allocation12_spill]] %s2709_s27  ;;  %s2151_s30 = sadd.s32 4294967294, %s2713_s28  }
   0x9   : > { %3331 = sst [smem:[#allocation13_spill]] %s2713_s28  ;;  %s2832_s14 = sadd.s32 1, %s2713_s28  }
   0xa   : > { %3332 = sst [smem:[#allocation14_spill]] %s2832_s14  ;;  %s313_s15 = sadd.s32 1, %s2709_s27 }
   0xb   : > { %s310_s16 = ssub.s32 %s2713_s28, %s2832_s14  ;;  %p323_p0 = scmp.ne.s32.totalorder %s2709_s27, %s2705_s26 }
   0xc   : > { %p311_p1 = scmp.eq.s32.totalorder %s310_s16, 0  ;;  %p324_p2 = scmp.eq.s32.totalorder %s2828_s29, 1 }
   0xd   : > { %p329_p3 = scmp.ne.s32.totalorder %s2705_s26, %s2701_s25  ;;  %p330_p4 = scmp.eq.s32.totalorder %s2151_s30, 1 }
   0xe   : > { %s2843_s17 = scalar_select %p311_p1, %s2709_s27, %s313_s15  }
   0xf   : > { %p2845_p5 = por %p324_p2, %p323_p0  ;;  %p2849_p6 = por %p330_p4, %p329_p3 }
  0x10   : > { %3333 = sst [smem:[#allocation15_spill]] %s2843_s17  ;;  %p2152_p7 = scmp.ge.s32.totalorder %s2713_s28, 1 }
  0x11   : > { %s3334_s18 = scalar_select %p2845_p5, 1, 0 }
  0x12   : > { %s3335_s19 = scalar_select %p2849_p6, 1, 0 }
  0x13   : > { %p337_p8 = scmp.lt.s32.totalorder %s2713_s28, 3  ;;  %p3322_p9 = scmp.eq.s32.totalorder %s2828_s29, 0 }
  0x14   : > { %3336 = sst [smem:[#allocation16_spill]] %s3335_s19  ;;  %s2715_s21 = smov [#allocation2]  }
  0x15   : > { %p2856_p10 = pnand %p2152_p7, %p337_p8  ;;  %s355_s22 = sshll.u32 %s2715_s21, 4  ;;  %s356_s22 = int_to_ptr.vmem [resolvable:$true] %s355_s22 }
  0x16   : > { %s2716_s24 = smov [#allocation5]   ;;  %s2587_s17 = scalar_lea.hbm %s3307_s3, 256 }
  0x17   : > { %s3337_s20 = scalar_select %p2856_p10, 1, 0 }
  0x18   : > { %p2420_p11 = pneg %p2856_p10  ;;  %s371_s30 = sshll.u32 %s2716_s24, 4  ;;  %s2868_s30 = int_to_ptr.vmem [resolvable:$true] %s371_s30 }
  0x19   : > { %p2588_p13 = scmp.ne.s32.totalorder %s3307_s3, %s2587_s17  ;;  %p2594_p3 = scmp.lt.u32.totalorder %s2587_s17, %s3307_s3 }
  0x1a   : > { %p2864_p12 = pnand %p3322_p9, %p2420_p11 }
  0x1c   : > { %p2589_p0 = pneg %p2864_p12 }
  0x1e   : > { %p2590_p1 = pnand %p2589_p0, %p2588_p13 }
  0x20   : > { %p2591_p2 = pneg %p2590_p1 }
  0x22   : > { %p2596_p4 = pnand %p2594_p3, %p2591_p2 }
  0x24   : > { %2599 = shalt.err (!%p2596_p4)
}
  0x25   : > { %s2600_s24 = scalar_lea.vmem %s356_s22, 256  ;;  %p2608_p9 = scmp.lt.s32.totalorder %s356_s22, %s356_s22 }
  0x26   : > { %p2601_p7 = scmp.ne.s32.totalorder %s356_s22, %s2600_s24  ;;  %p2609_p6 = scmp.lt.s32.totalorder %s2600_s24, %s2600_s24 }
  0x28   : > { %p2603_p8 = pnand %p2601_p7, %p2589_p0  ;;  %p2610_p5 = por %p2609_p6, %p2608_p9 }
  0x2a   : > { %p2604_p11 = pneg %p2603_p8 }
  0x2c   : > { %p2611_p10 = pnand %p2610_p5, %p2604_p11 }
  0x2e   : > { %2614 = shalt.err (!%p2611_p10)
}
  0x2f   : > { %s2717_s27 = smov 64   ;;  %s2718_s15 = smov 4  }
  0x30   : > { %2423 = dma.hbm_to_vmem [thread:$0]  (!%p2864_p12), %s3307_s3, 256, %s356_s22, [#allocation3], %s2717_s27, %s2717_s27, %s2718_s15  }
  0x31   : > { %s2615_s21 = scalar_lea.hbm %s3309_s5, 256 }
  0x32   : > { %p2616_p13 = scmp.ne.s32.totalorder %s3309_s5, %s2615_s21  ;;  %p2622_p9 = scmp.lt.u32.totalorder %s2615_s21, %s3309_s5 }
  0x34   : > { %p2618_p5 = pnand %p2616_p13, %p2589_p0 }
  0x36   : > { %p2619_p6 = pneg %p2618_p5 }
  0x38   : > { %p2624_p10 = pnand %p2622_p9, %p2619_p6 }
  0x3a   : > { %2627 = shalt.err (!%p2624_p10)
}
  0x3b   : > { %s2628_s22 = scalar_lea.vmem %s2868_s30, 256  ;;  %p2636_p4 = scmp.lt.s32.totalorder %s2868_s30, %s2868_s30 }
  0x3c   : > { %p2629_p1 = scmp.ne.s32.totalorder %s2868_s30, %s2628_s22  ;;  %p2637_p7 = scmp.lt.s32.totalorder %s2628_s22, %s2628_s22 }
  0x3e   : > { %p2631_p2 = pnand %p2629_p1, %p2589_p0  ;;  %p2638_p8 = por %p2637_p7, %p2636_p4 }
  0x40   : > { %p2632_p3 = pneg %p2631_p2 }
  0x42   : > { %p2639_p11 = pnand %p2638_p8, %p2632_p3 }
  0x44   : > { %2642 = shalt.err (!%p2639_p11)
}
  0x45   : > { %2426 = dma.hbm_to_vmem [thread:$0]  (!%p2864_p12), %s3309_s5, 256, %s2868_s30, [#allocation6], %s2717_s27, %s2717_s27, %s2718_s15  }
  0x46   : > { %p3339_p13 = scmp.ne.s32.totalorder %s3337_s20, 0 }
  0x47   : > { %p3340_p5 = scmp.eq.s32.totalorder (!%p3339_p13), %s2828_s29, 0 }
  0x48   : > { %418 = sbr.rel (%p3339_p13) target bundleno = 4253 (0x109d), region = 72 }
  0x4f   : > { %2688 = dma.done.wait (%p3340_p5), [#allocation3], 256   ;;  %p3341_p0 = pmov %p3340_p5 }
  0x51   : > { %2690 = vsyncadd (%p3341_p0), [#allocation3], 4294967040  ;;  %p3342_p6 = pmov %p3341_p0 }
  0x52   : > { %p3343_p9 = pmov %p3341_p0 }
  0x53   : > { %2692 = dma.done.wait (%p3342_p6), [#allocation6], 256  }
  0x54   : > { %2694 = vsyncadd (%p3343_p9), [#allocation6], 4294967040  ;;  %s2160_s28 = sshll.u32 %s2828_s29, 1  ;;  %v2489_v0 = vld [vmem:[%s3305_s1] sm:$0xff]   ;;  %v2490_v1 = vld [vmem:[%s3305_s1 + $0x8] sm:$0xff]   ;;  %vm505_vm0 = vcmask 261120   ;;  %v563_v24 = vlaneseq }
  0x55   : > { %p468_p10 = scmp.lt.s32.totalorder %s2160_s28, 3  ;;  %2270 = vmatprep.subr.bf16.mxu0 %v2489_v0  ;;  %v2719_v8 = vmov 0.0   ;;  %v2163_v10 = vld [vmem:[%s3306_s2] ss:$0 sm:$0xff]  ;;  %vm2720_vm1 = vmmov 0   ;;  %s2721_s24 = smov 96  }
  0x56   : > { %2271 = vmatpush3.bf16.msra.mxu0 %v2489_v0  ;;  %2290 = vmatprep.subr.bf16.mxu1 %v2719_v8  ;;  %vm569_vm2 = vcmask 64512   ;;  %v2972_v25 = vand.u32 127, %v563_v24  ;;  %vm677_vm4 = vcmask 130048   ;;  %s2722_s22 = smov 64   ;;  %s2723_s13 = smov 88   ;;  %vm1604_vm5 = vcmask 195584  }
  0x57   : > { %s3357_s28 = smov (!%p468_p10, %s2160_s28), 3  ;;  %2272 = vmatprep.subr.bf16.mxu0 %v2490_v1  ;;  %2292 = vmatprep.mubr.msk.bf16.mxu1 %vm2720_vm1, %v2719_v8  ;;  %s2724_s25 = smov 120  }
  0x58   : > { %s2213_s23 = sshll.u32 %s3357_s28, 4  ;;  %vm565_vm3 = vcmp.lt.s32.totalorder %v2972_v25, 12  ;;  %s2725_s28 = smov 56  }
  0x59   : > { %s2931_s27 = scalar_lea.vmem %s3304_s0, %s2213_s23  ;;  %s2726_s23 = smov 80  }
  0x5a   : > { %v476_v2 = vld [vmem:[%s2931_s27] sm:$0xff]  ;;  %v477_v3 = vld [vmem:[%s2931_s27 + $0x8] sm:$0xff]  ;;  %v478_v4 = vld [vmem:[%s2931_s27 + $0x10] sm:$0xff]  ;;  %2273 = vmatpush3.bf16.msra.mxu0 %v2490_v1  ;;  %s2727_s30 = smov 112   ;;  %s2728_s20 = smov 48  }
  0x5b   : > { %v480_v5 = vpack.c.bf16 %v477_v3, %v476_v2  ;;  %v479_v6 = vld [vmem:[%s2931_s27 + $0x18] sm:$0xff]  ;;  %2278 = vmatprep.subr.bf16.mxu0 %v2719_v8  ;;  %s2729_s15 = smov 72   ;;  %s2730_s14 = smov 104  }
  0x5c   : > { %v481_v7 = vpack.c.bf16 %v479_v6, %v478_v4  ;;  %s2731_s17 = smov 40   ;;  %s2732_s19 = smov 8  }
  0x5d   : > { %2274 = vmatprep.mubr.msk.bf16.mxu0 %vm505_vm0, %v480_v5  ;;  %s2733_s16 = smov 16   ;;  %s2734_s21 = smov 24  }
  0x5e   : > { %2275 = vmatmul.mubr.msk.bf16.vlgmr.msra.gmra.mrb[0].mxu0 %vm505_vm0, %v481_v7  ;;  %p3345_p1 = scmp.ne.s32.totalorder %s3334_s18, 0 }
  0x5f   : > { %2280 = vmatprep.mubr.msk.bf16.mxu0 %vm2720_vm1, %v2719_v8 }
 0x131   : > { %v2276_v9 = vpop.f32.mrb[0].mxu0 }
 0x132   : > { %v546_v11 = vpop.f32.mrb[1].mxu0  ;;  %v555_v13 = vadd.f32 %v2276_v9, %v2163_v10 }
 0x133   : > { %v2277_v12 = vpop.f32.mrb[2].mxu0  ;;  %v547_v16 = vadd.f32 %v2163_v10, %v546_v11 }
 0x134   : > { %v558_v14 = vadd.f32 %v2277_v12, %v2163_v10  ;;  %v549_v15 = vpop.f32.mrb[3].mxu0 }
 0x135   : > { %v550_v17 = vadd.f32 %v2163_v10, %v549_v15 }
 0x136   : > { %v2954_v18 = vpack.c.bf16 %v558_v14, %v555_v13 }
 0x137   : > { %v2956_v19 = vpack.c.bf16 %v550_v17, %v547_v16 }
 0x139   : > { %567 = vrot.lane.b32.xlu0 %v2956_v19, %s2721_s24 }
 0x13d   : > { %618 = vrot.lane.b32.xlu0 %v2954_v18, %s2721_s24 }
 0x1ab   : > { %v568_v20 = vpop.permute.xlu0 %567 }
 0x1ac   : > { %v574_v21 = vsel %vm569_vm2, %v568_v20, 0 }
 0x1ad   : > { %2279 = vmatpush3.bf16.xpose.msra.mxu0 %v574_v21 }
 0x1ae   : > { %2284 = vmatprep.subr.bf16.mxu0 %v2719_v8 }
 0x1af   : > { %v619_v22 = vpop.permute.xlu0 %618 }
 0x1b0   : > { %v624_v23 = vsel %vm569_vm2, %v619_v22, 0 }
 0x1b4   : > { %2281 = vmatmul.mubr.msk.bf16.vlgmr.msra.gmra.mrb[4].mxu0 %vm569_vm2, %v2956_v19 }
 0x1b5   : > { %2285 = vmatpush3.bf16.xpose.msra.mxu0 %v624_v23  ;;  %2286 = vmatprep.mubr.msk.bf16.mxu0 %vm2720_vm1, %v2719_v8 }
 0x1b6   : > { %2296 = vmatprep.subr.bf16.mxu0 %v2719_v8 }
 0x1bc   : > { %2287 = vmatmul.mubr.msk.bf16.vlgmr.msra.gmra.mrb[8].mxu0 %vm569_vm2, %v2954_v18 }
 0x1bd   : > { %2298 = vmatprep.mubr.msk.bf16.mxu0 %vm2720_vm1, %v2719_v8 }
 0x287   : > { %v610_v26 = vpop.f32.mrb[4].mxu0 }
 0x288   : > { %v667_v27 = vmul.f32 0.35355338, %v610_v26  ;;  %v2282_v28 = vpop.f32.mrb[5].mxu0 }
 0x289   : > { %v613_v29 = vpop.f32.mrb[6].mxu0 }
 0x28a   : > { %v668_v30 = vmul.f32 0.35355338, %v613_v29  ;;  %v2283_v31 = vpop.f32.mrb[7].mxu0  ;;  %v673_v32 = vsel %vm565_vm3, %v667_v27, -1e+30 }
 0x28b   : > { %v678_v33 = vsel %vm677_vm4, %v673_v32, -inf }
 0x28c   : > { %679 = vmax.xlane.f32.xlu1 %v678_v33  ;;  %v674_v34 = vsel %vm565_vm3, %v668_v30, -1e+30 }
 0x28d   : > { %v681_v36 = vsel %vm677_vm4, %v674_v34, -inf }
 0x28f   : > { %v660_v35 = vpop.f32.mrb[8].mxu0 }
 0x290   : > { %v669_v37 = vmul.f32 0.35355338, %v660_v35  ;;  %682 = vmax.xlane.f32.xlu1 %v681_v36  ;;  %v2288_v38 = vpop.f32.mrb[9].mxu0 }
 0x291   : > { %v663_v39 = vpop.f32.mrb[10].mxu0 }
 0x292   : > { %v670_v40 = vmul.f32 0.35355338, %v663_v39  ;;  %v2289_v41 = vpop.f32.mrb[11].mxu0  ;;  %v675_v42 = vsel %vm565_vm3, %v669_v37, -1e+30 }
 0x293   : > { %v684_v43 = vsel %vm677_vm4, %v675_v42, -inf }
 0x294   : > { %685 = vmax.xlane.f32.xlu0 %v684_v43  ;;  %v676_v44 = vsel %vm565_vm3, %v670_v40, -1e+30 }
 0x295   : > { %v687_v45 = vsel %vm677_vm4, %v676_v44, -inf }
 0x296   : > { %688 = vmax.xlane.f32.xlu1 %v687_v45 }
 0x2a7   : > { %724 = vrot.lane.b32.xlu1 %v2956_v19, %s2722_s22 }
 0x2aa   : > { %771 = vrot.lane.b32.xlu0 %v2954_v18, %s2722_s22 }
 0x2ab   : > { %822 = vrot.lane.b32.xlu1 %v2956_v19, %s2723_s13 }
 0x2af   : > { %873 = vrot.lane.b32.xlu1 %v2954_v18, %s2723_s13 }
 0x319   : > { %v680_v46 = vpop.xlane.xlu1 %679 }
 0x31a   : > { %v690_v47 = vsub.f32 %v673_v32, %v680_v46 }
 0x31c   : > { %v694_v48 = vmul.f32 1.442695, %v690_v47 }
 0x31d   : > { %v683_v49 = vpop.xlane.xlu1 %682 }
 0x31e   : > { %2503 = vpow2.f32 %v694_v48  ;;  %v691_v50 = vsub.f32 %v674_v34, %v683_v49 }
 0x320   : > { %v696_v51 = vmul.f32 1.442695, %v691_v50 }
 0x321   : > { %v686_v52 = vpop.xlane.xlu0 %685 }
 0x322   : > { %2505 = vpow2.f32 %v696_v51  ;;  %v692_v53 = vsub.f32 %v675_v42, %v686_v52 }
 0x323   : > { %v689_v54 = vpop.xlane.xlu1 %688 }
 0x324   : > { %v698_v55 = vmul.f32 1.442695, %v692_v53  ;;  %v693_v56 = vsub.f32 %v676_v44, %v689_v54 }
 0x325   : > { %v772_v57 = vpop.permute.xlu0 %771 }
 0x326   : > { %2507 = vpow2.f32 %v698_v55  ;;  %v700_v58 = vmul.f32 1.442695, %v693_v56  ;;  %2297 = vmatpush3.bf16.msra.mxu0 %v772_v57 }
 0x327   : > { %v725_v59 = vpop.permute.xlu1 %724  ;;  %2308 = vmatprep.subr.bf16.mxu0 %v2719_v8 }
 0x328   : > { %v2504_v60 = vpop.eup %2503  ;;  %2509 = vpow2.f32 %v700_v58  ;;  %2291 = vmatpush3.bf16.msra.mxu1 %v725_v59 }
 0x329   : > { %v702_v61 = vsel %vm677_vm4, %v2504_v60, 0.0  ;;  %2302 = vmatprep.subr.bf16.mxu1 %v2719_v8 }
 0x32a   : > { %703 = vadd.xlane.f32.xlu1 %v702_v61 }
 0x32b   : > { %v823_v4 = vpop.permute.xlu1 %822 }
 0x32c   : > { %v2506_v62 = vpop.eup %2505  ;;  %v828_v16 = vsel %vm569_vm2, %v823_v4, 0 }
 0x32d   : > { %v705_v63 = vsel %vm677_vm4, %v2506_v62, 0.0 }
 0x32e   : > { %706 = vadd.xlane.f32.xlu1 %v705_v63 }
 0x32f   : > { %v874_v5 = vpop.permute.xlu1 %873 }
 0x330   : > { %v2508_v0 = vpop.eup %2507  ;;  %v879_v26 = vsel %vm569_vm2, %v874_v5, 0 }
 0x331   : > { %v708_v1 = vsel %vm677_vm4, %v2508_v0, 0.0 }
 0x332   : > { %v2510_v2 = vpop.eup %2509  ;;  %709 = vadd.xlane.f32.xlu1 %v708_v1 }
 0x333   : > { %v711_v3 = vsel %vm677_vm4, %v2510_v2, 0.0 }
 0x336   : > { %712 = vadd.xlane.f32.xlu1 %v711_v3 }
 0x347   : > { %820 = vrot.lane.b32.xlu1 %v2956_v19, %s2724_s25 }
 0x34b   : > { %871 = vrot.lane.b32.xlu1 %v2954_v18, %s2724_s25 }
 0x3b7   : > { %v704_v6 = vpop.xlane.xlu1 %703 }
 0x3b8   : > { %2511 = vrcp.f32 %v704_v6 }
 0x3bb   : > { %v707_v7 = vpop.xlane.xlu1 %706 }
 0x3bc   : > { %2513 = vrcp.f32 %v707_v7 }
 0x3bf   : > { %v710_v9 = vpop.xlane.xlu1 %709 }
 0x3c0   : > { %2515 = vrcp.f32 %v710_v9 }
 0x3c2   : > { %v2512_v11 = vpop.eup %2511 }
 0x3c3   : > { %v713_v10 = vpop.xlane.xlu1 %712  ;;  %v715_v13 = vmul.f32 %v2512_v11, %v2504_v60 }
 0x3c4   : > { %2517 = vrcp.f32 %v713_v10 }
 0x3c6   : > { %v2514_v12 = vpop.eup %2513 }
 0x3c7   : > { %v717_v14 = vmul.f32 %v2514_v12, %v2506_v62  ;;  %v821_v24 = vpop.permute.xlu1 %820 }
 0x3c9   : > { %v722_v15 = vpack.c.bf16 %v717_v14, %v715_v13 }
 0x3ca   : > { %v2516_v17 = vpop.eup %2515 }
 0x3cb   : > { %2293 = vmatmul.mubr.msk.bf16.vlgmr.msra.gmra.mrb[0].mxu1 %vm677_vm4, %v722_v15  ;;  %v719_v21 = vmul.f32 %v2516_v17, %v2508_v0  ;;  %v872_v27 = vpop.permute.xlu1 %871 }
 0x3cc   : > { %2303 = vmatpush3.bf16.xpose.msra.mxu1 %v828_v16  ;;  %2304 = vmatprep.mubr.msk.bf16.mxu1 %vm2720_vm1, %v2719_v8 }
 0x3cd   : > { %2314 = vmatprep.subr.bf16.mxu1 %v2719_v8 }
 0x3ce   : > { %v2518_v20 = vpop.eup %2517 }
 0x3cf   : > { %v721_v22 = vmul.f32 %v2518_v20, %v2510_v2 }
 0x3d1   : > { %v723_v23 = vpack.c.bf16 %v721_v22, %v719_v21 }
 0x3d3   : > { %2299 = vmatmul.mubr.msk.bf16.vlgmr.msra.gmra.mrb[12].mxu0 %vm677_vm4, %v723_v23  ;;  %2305 = vmatmul.mubr.msk.bf16.vlgmr.msra.gmra.mrb[4].mxu1 %vm569_vm2, %v821_v24 }
 0x3d4   : > { %2309 = vmatpush3.bf16.xpose.msra.mxu0 %v879_v26  ;;  %2310 = vmatprep.mubr.msk.bf16.mxu0 %vm2720_vm1, %v2719_v8 }
 0x3d5   : > { %2320 = vmatprep.subr.bf16.mxu0 %v2719_v8  ;;  %2316 = vmatprep.mubr.msk.bf16.mxu1 %vm2720_vm1, %v2719_v8 }
 0x3db   : > { %2311 = vmatmul.mubr.msk.bf16.vlgmr.msra.gmra.mrb[16].mxu0 %vm569_vm2, %v872_v27 }
 0x3dc   : > { %2322 = vmatprep.mubr.msk.bf16.mxu0 %vm2720_vm1, %v2719_v8 }
 0x49e   : > { %v3015_v28 = vpop.f32.mrb[0].mxu1 }
 0x49f   : > { %v2294_v29 = vpop.f32.mrb[1].mxu1 }
 0x4a0   : > { %v3017_v30 = vpop.f32.mrb[2].mxu1 }
 0x4a1   : > { %v818_v31 = vpack.c.bf16 %v3017_v30, %v3015_v28  ;;  %v2295_v32 = vpop.f32.mrb[3].mxu1 }
 0x4a6   : > { %v3021_v33 = vpop.f32.mrb[12].mxu0  ;;  %v864_v34 = vpop.f32.mrb[4].mxu1 }
 0x4a7   : > { %v922_v35 = vmul.f32 0.35355338, %v864_v34  ;;  %v2300_v36 = vpop.f32.mrb[13].mxu0  ;;  %v2306_v37 = vpop.f32.mrb[5].mxu1 }
 0x4a8   : > { %v3023_v38 = vpop.f32.mrb[14].mxu0  ;;  %v867_v39 = vpop.f32.mrb[6].mxu1 }
 0x4a9   : > { %v819_v40 = vpack.c.bf16 %v3023_v38, %v3021_v33  ;;  %v923_v41 = vmul.f32 0.35355338, %v867_v39  ;;  %v2301_v42 = vpop.f32.mrb[15].mxu0  ;;  %v2307_v43 = vpop.f32.mrb[7].mxu1  ;;  %v926_v44 = vsel %vm565_vm3, %v922_v35, -1e+30 }
 0x4aa   : > { %v930_v45 = vsel %vm677_vm4, %v926_v44, -inf }
 0x4ab   : > { %931 = vmax.xlane.f32.xlu0 %v930_v45  ;;  %v927_v46 = vsel %vm565_vm3, %v923_v41, -1e+30 }
 0x4ac   : > { %v933_v47 = vsel %vm677_vm4, %v927_v46, -inf }
 0x4ad   : > { %934 = vmax.xlane.f32.xlu1 %v933_v47 }
 0x4ae   : > { %v915_v48 = vpop.f32.mrb[16].mxu0 }
 0x4af   : > { %v924_v49 = vmul.f32 0.35355338, %v915_v48  ;;  %v2312_v50 = vpop.f32.mrb[17].mxu0 }
 0x4b0   : > { %v918_v51 = vpop.f32.mrb[18].mxu0 }
 0x4b1   : > { %v925_v52 = vmul.f32 0.35355338, %v918_v51  ;;  %v2313_v53 = vpop.f32.mrb[19].mxu0  ;;  %v928_v54 = vsel %vm565_vm3, %v924_v49, -1e+30 }
 0x4b2   : > { %v936_v55 = vsel %vm677_vm4, %v928_v54, -inf }
 0x4b3   : > { %937 = vmax.xlane.f32.xlu0 %v936_v55  ;;  %v929_v56 = vsel %vm565_vm3, %v925_v52, -1e+30 }
 0x4b4   : > { %v939_v57 = vsel %vm677_vm4, %v929_v56, -inf }
 0x4b7   : > { %940 = vmax.xlane.f32.xlu0 %v939_v57 }
 0x4be   : > { %976 = vrot.lane.b32.xlu1 %v2956_v19, %s2725_s28 }
 0x538   : > { %v932_v58 = vpop.xlane.xlu0 %931 }
 0x539   : > { %v942_v59 = vsub.f32 %v926_v44, %v932_v58 }
 0x53a   : > { %v935_v60 = vpop.xlane.xlu1 %934 }
 0x53b   : > { %v946_v61 = vmul.f32 1.442695, %v942_v59  ;;  %v943_v62 = vsub.f32 %v927_v46, %v935_v60 }
 0x53d   : > { %2519 = vpow2.f32 %v946_v61  ;;  %v948_v63 = vmul.f32 1.442695, %v943_v62 }
 0x53e   : > { %v977_v0 = vpop.permute.xlu1 %976 }
 0x53f   : > { %2521 = vpow2.f32 %v948_v63  ;;  %2315 = vmatpush3.bf16.msra.mxu1 %v977_v0 }
 0x540   : > { %v938_v1 = vpop.xlane.xlu0 %937  ;;  %2326 = vmatprep.subr.bf16.mxu1 %v2719_v8 }
 0x541   : > { %v944_v2 = vsub.f32 %v928_v54, %v938_v1 }
 0x543   : > { %v950_v3 = vmul.f32 1.442695, %v944_v2 }
 0x544   : > { %v941_v4 = vpop.xlane.xlu0 %940 }
 0x545   : > { %2523 = vpow2.f32 %v950_v3  ;;  %v945_v5 = vsub.f32 %v929_v56, %v941_v4 }
 0x547   : > { %v2520_v6 = vpop.eup %2519  ;;  %v952_v7 = vmul.f32 1.442695, %v945_v5 }
 0x548   : > { %v954_v9 = vsel %vm677_vm4, %v2520_v6, 0.0 }
 0x549   : > { %v2522_v10 = vpop.eup %2521  ;;  %2525 = vpow2.f32 %v952_v7  ;;  %955 = vadd.xlane.f32.xlu1 %v954_v9 }
 0x54a   : > { %v957_v11 = vsel %vm677_vm4, %v2522_v10, 0.0 }
 0x54b   : > { %958 = vadd.xlane.f32.xlu0 %v957_v11 }
 0x54f   : > { %v2524_v12 = vpop.eup %2523 }
 0x550   : > { %v960_v13 = vsel %vm677_vm4, %v2524_v12, 0.0 }
 0x551   : > { %961 = vadd.xlane.f32.xlu1 %v960_v13 }
 0x553   : > { %v2526_v14 = vpop.eup %2525 }
 0x554   : > { %v963_v15 = vsel %vm677_vm4, %v2526_v14, 0.0 }
 0x555   : > { %964 = vadd.xlane.f32.xlu0 %v963_v15 }
 0x562   : > { %1074 = vrot.lane.b32.xlu1 %v2956_v19, %s2726_s23 }
 0x566   : > { %1125 = vrot.lane.b32.xlu1 %v2954_v18, %s2726_s23 }
 0x56a   : > { %1123 = vrot.lane.b32.xlu1 %v2954_v18, %s2727_s30 }
 0x56b   : > { %1023 = vrot.lane.b32.xlu0 %v2954_v18, %s2725_s28  ;;  %s2215_s28 = sshll.u32 %s2828_s29, 9 }
 0x56f   : > { %1072 = vrot.lane.b32.xlu0 %v2956_v19, %s2727_s30 }
 0x5d6   : > { %v956_v16 = vpop.xlane.xlu1 %955 }
 0x5d7   : > { %2527 = vrcp.f32 %v956_v16 }
 0x5d8   : > { %v959_v17 = vpop.xlane.xlu0 %958 }
 0x5d9   : > { %2529 = vrcp.f32 %v959_v17 }
 0x5de   : > { %v962_v20 = vpop.xlane.xlu1 %961 }
 0x5df   : > { %2531 = vrcp.f32 %v962_v20 }
 0x5e1   : > { %v2528_v21 = vpop.eup %2527 }
 0x5e2   : > { %v965_v22 = vpop.xlane.xlu0 %964  ;;  %v967_v24 = vmul.f32 %v2528_v21, %v2520_v6  ;;  %v1075_v27 = vpop.permute.xlu1 %1074 }
 0x5e3   : > { %v2530_v23 = vpop.eup %2529  ;;  %2533 = vrcp.f32 %v965_v22  ;;  %v1080_v34 = vsel %vm569_vm2, %v1075_v27, 0 }
 0x5e4   : > { %v969_v26 = vmul.f32 %v2530_v23, %v2522_v10 }
 0x5e6   : > { %v1024_v29 = vpop.permute.xlu0 %1023  ;;  %v974_v32 = vpack.c.bf16 %v969_v26, %v967_v24  ;;  %v1126_v41 = vpop.permute.xlu1 %1125 }
 0x5e7   : > { %2321 = vmatpush3.bf16.msra.mxu0 %v1024_v29  ;;  %v1131_v44 = vsel %vm569_vm2, %v1126_v41, 0 }
 0x5e8   : > { %2317 = vmatmul.mubr.msk.bf16.vlgmr.msra.gmra.mrb[8].mxu1 %vm677_vm4, %v974_v32  ;;  %2332 = vmatprep.subr.bf16.mxu0 %v2719_v8 }
 0x5e9   : > { %2327 = vmatpush3.bf16.xpose.msra.mxu1 %v1080_v34  ;;  %2328 = vmatprep.mubr.msk.bf16.mxu1 %vm2720_vm1, %v2719_v8  ;;  %v2532_v35 = vpop.eup %2531 }
 0x5ea   : > { %2338 = vmatprep.subr.bf16.mxu1 %v2719_v8  ;;  %v971_v37 = vmul.f32 %v2532_v35, %v2524_v12  ;;  %v1073_v42 = vpop.permute.xlu0 %1072  ;;  %v1124_v45 = vpop.permute.xlu1 %1123 }
 0x5ed   : > { %v2534_v36 = vpop.eup %2533 }
 0x5ee   : > { %v973_v39 = vmul.f32 %v2534_v36, %v2526_v14 }
 0x5f0   : > { %2329 = vmatmul.mubr.msk.bf16.vlgmr.msra.gmra.mrb[12].mxu1 %vm569_vm2, %v1073_v42  ;;  %v975_v43 = vpack.c.bf16 %v973_v39, %v971_v37 }
 0x5f1   : > { %2340 = vmatprep.mubr.msk.bf16.mxu1 %vm2720_vm1, %v2719_v8 }
 0x5f2   : > { %2323 = vmatmul.mubr.msk.bf16.vlgmr.msra.gmra.mrb[20].mxu0 %vm677_vm4, %v975_v43 }
 0x5f3   : > { %2333 = vmatpush3.bf16.xpose.msra.mxu0 %v1131_v44  ;;  %2334 = vmatprep.mubr.msk.bf16.mxu0 %vm2720_vm1, %v2719_v8 }
 0x5f4   : > { %2344 = vmatprep.subr.bf16.mxu0 %v2719_v8 }
 0x5fa   : > { %2335 = vmatmul.mubr.msk.bf16.vlgmr.msra.gmra.mrb[24].mxu0 %vm569_vm2, %v1124_v45 }
 0x5fb   : > { %2346 = vmatprep.mubr.msk.bf16.mxu0 %vm2720_vm1, %v2719_v8 }
 0x6bb   : > { %v3069_v46 = vpop.f32.mrb[8].mxu1 }
 0x6bc   : > { %v2318_v47 = vpop.f32.mrb[9].mxu1 }
 0x6bd   : > { %v3071_v48 = vpop.f32.mrb[10].mxu1 }
 0x6be   : > { %v1070_v49 = vpack.c.bf16 %v3071_v48, %v3069_v46  ;;  %v2319_v50 = vpop.f32.mrb[11].mxu1 }
 0x6c3   : > { %v1116_v51 = vpop.f32.mrb[12].mxu1 }
 0x6c4   : > { %v1174_v52 = vmul.f32 0.35355338, %v1116_v51  ;;  %v2330_v53 = vpop.f32.mrb[13].mxu1 }
 0x6c5   : > { %v3075_v54 = vpop.f32.mrb[20].mxu0  ;;  %v1119_v55 = vpop.f32.mrb[14].mxu1 }
 0x6c6   : > { %v1175_v56 = vmul.f32 0.35355338, %v1119_v55  ;;  %v2324_v57 = vpop.f32.mrb[21].mxu0  ;;  %v2331_v58 = vpop.f32.mrb[15].mxu1  ;;  %v1178_v59 = vsel %vm565_vm3, %v1174_v52, -1e+30 }
 0x6c7   : > { %v3079_v60 = vpop.f32.mrb[22].mxu0  ;;  %v1182_v61 = vsel %vm677_vm4, %v1178_v59, -inf }
 0x6c8   : > { %v1071_v62 = vpack.c.bf16 %v3079_v60, %v3075_v54  ;;  %1183 = vmax.xlane.f32.xlu0 %v1182_v61  ;;  %v2325_v63 = vpop.f32.mrb[23].mxu0  ;;  %v1179_v0 = vsel %vm565_vm3, %v1175_v56, -1e+30 }
 0x6c9   : > { %v1185_v1 = vsel %vm677_vm4, %v1179_v0, -inf }
 0x6ca   : > { %1186 = vmax.xlane.f32.xlu1 %v1185_v1 }
 0x6cd   : > { %v1167_v2 = vpop.f32.mrb[24].mxu0 }
 0x6ce   : > { %v1176_v3 = vmul.f32 0.35355338, %v1167_v2  ;;  %v2336_v4 = vpop.f32.mrb[25].mxu0 }
 0x6cf   : > { %v1170_v5 = vpop.f32.mrb[26].mxu0 }
 0x6d0   : > { %v1177_v6 = vmul.f32 0.35355338, %v1170_v5  ;;  %v2337_v7 = vpop.f32.mrb[27].mxu0  ;;  %v1180_v9 = vsel %vm565_vm3, %v1176_v3, -1e+30 }
 0x6d1   : > { %v1188_v10 = vsel %vm677_vm4, %v1180_v9, -inf }
 0x6d2   : > { %1189 = vmax.xlane.f32.xlu0 %v1188_v10  ;;  %v1181_v11 = vsel %vm565_vm3, %v1177_v6, -1e+30 }
 0x6d3   : > { %v1191_v12 = vsel %vm677_vm4, %v1181_v11, -inf }
 0x6d6   : > { %1192 = vmax.xlane.f32.xlu0 %v1191_v12 }
 0x6db   : > { %1228 = vrot.lane.b32.xlu1 %v2956_v19, %s2728_s20 }
 0x755   : > { %v1184_v13 = vpop.xlane.xlu0 %1183 }
 0x756   : > { %v1194_v14 = vsub.f32 %v1178_v59, %v1184_v13 }
 0x757   : > { %v1187_v15 = vpop.xlane.xlu1 %1186 }
 0x758   : > { %v1198_v16 = vmul.f32 1.442695, %v1194_v14  ;;  %v1195_v17 = vsub.f32 %v1179_v0, %v1187_v15 }
 0x75a   : > { %2535 = vpow2.f32 %v1198_v16  ;;  %v1200_v20 = vmul.f32 1.442695, %v1195_v17 }
 0x75b   : > { %v1229_v21 = vpop.permute.xlu1 %1228 }
 0x75c   : > { %2537 = vpow2.f32 %v1200_v20  ;;  %2339 = vmatpush3.bf16.msra.mxu1 %v1229_v21 }
 0x75d   : > { %2350 = vmatprep.subr.bf16.mxu1 %v2719_v8 }
 0x75f   : > { %v1190_v22 = vpop.xlane.xlu0 %1189 }
 0x760   : > { %v1196_v23 = vsub.f32 %v1180_v9, %v1190_v22 }
 0x762   : > { %v1202_v24 = vmul.f32 1.442695, %v1196_v23 }
 0x763   : > { %v1193_v26 = vpop.xlane.xlu0 %1192 }
 0x764   : > { %v2536_v27 = vpop.eup %2535  ;;  %2539 = vpow2.f32 %v1202_v24  ;;  %v1197_v29 = vsub.f32 %v1181_v11, %v1193_v26 }
 0x765   : > { %v1206_v32 = vsel %vm677_vm4, %v2536_v27, 0.0 }
 0x766   : > { %v2538_v34 = vpop.eup %2537  ;;  %v1204_v35 = vmul.f32 1.442695, %v1197_v29  ;;  %1207 = vadd.xlane.f32.xlu1 %v1206_v32 }
 0x767   : > { %v1209_v36 = vsel %vm677_vm4, %v2538_v34, 0.0 }
 0x768   : > { %2541 = vpow2.f32 %v1204_v35  ;;  %1210 = vadd.xlane.f32.xlu0 %v1209_v36 }
 0x76e   : > { %v2540_v37 = vpop.eup %2539 }
 0x76f   : > { %v1212_v39 = vsel %vm677_vm4, %v2540_v37, 0.0 }
 0x770   : > { %1213 = vadd.xlane.f32.xlu1 %v1212_v39 }
 0x772   : > { %v2542_v41 = vpop.eup %2541 }
 0x773   : > { %v1215_v42 = vsel %vm677_vm4, %v2542_v41, 0.0 }
 0x774   : > { %1216 = vadd.xlane.f32.xlu0 %v1215_v42 }
 0x781   : > { %1326 = vrot.lane.b32.xlu1 %v2956_v19, %s2729_s15 }
 0x785   : > { %1377 = vrot.lane.b32.xlu1 %v2954_v18, %s2729_s15  ;;  %s3344_s15 = sld [smem:[#allocation17_spill]] }
 0x789   : > { %1375 = vrot.lane.b32.xlu1 %v2954_v18, %s2730_s14 }
 0x78a   : > { %1275 = vrot.lane.b32.xlu0 %v2954_v18, %s2728_s20 }
 0x78e   : > { %1324 = vrot.lane.b32.xlu0 %v2956_v19, %s2730_s14  ;;  %s3256_s14 = scalar_lea.hbm %s3344_s15, %s2215_s28 }
 0x7f3   : > { %v1208_v43 = vpop.xlane.xlu1 %1207 }
 0x7f4   : > { %2543 = vrcp.f32 %v1208_v43 }
 0x7f5   : > { %v1211_v44 = vpop.xlane.xlu0 %1210 }
 0x7f6   : > { %2545 = vrcp.f32 %v1211_v44 }
 0x7fd   : > { %v1214_v45 = vpop.xlane.xlu1 %1213 }
 0x7fe   : > { %v2544_v47 = vpop.eup %2543  ;;  %2547 = vrcp.f32 %v1214_v45 }
 0x7ff   : > { %v1219_v51 = vmul.f32 %v2544_v47, %v2536_v27 }
 0x800   : > { %v2546_v50 = vpop.eup %2545 }
 0x801   : > { %v1221_v52 = vmul.f32 %v2546_v50, %v2538_v34  ;;  %v1217_v53 = vpop.xlane.xlu0 %1216  ;;  %v1327_v55 = vpop.permute.xlu1 %1326 }
 0x802   : > { %2549 = vrcp.f32 %v1217_v53  ;;  %v1332_v57 = vsel %vm569_vm2, %v1327_v55, 0 }
 0x803   : > { %v1226_v56 = vpack.c.bf16 %v1221_v52, %v1219_v51 }
 0x805   : > { %2341 = vmatmul.mubr.msk.bf16.vlgmr.msra.gmra.mrb[16].mxu1 %vm677_vm4, %v1226_v56  ;;  %v1276_v58 = vpop.permute.xlu0 %1275  ;;  %v1378_v2 = vpop.permute.xlu1 %1377 }
 0x806   : > { %2351 = vmatpush3.bf16.xpose.msra.mxu1 %v1332_v57  ;;  %2345 = vmatpush3.bf16.msra.mxu0 %v1276_v58  ;;  %v1383_v4 = vsel %vm569_vm2, %v1378_v2, 0 }
 0x807   : > { %2352 = vmatprep.mubr.msk.bf16.mxu1 %vm2720_vm1, %v2719_v8  ;;  %2356 = vmatprep.subr.bf16.mxu0 %v2719_v8 }
 0x808   : > { %2362 = vmatprep.subr.bf16.mxu1 %v2719_v8  ;;  %v2548_v59 = vpop.eup %2547 }
 0x809   : > { %v1325_v63 = vpop.permute.xlu0 %1324  ;;  %v1223_v0 = vmul.f32 %v2548_v59, %v2540_v37  ;;  %v1376_v5 = vpop.permute.xlu1 %1375 }
 0x80c   : > { %v2550_v61 = vpop.eup %2549 }
 0x80d   : > { %v1225_v1 = vmul.f32 %v2550_v61, %v2542_v41  ;;  %2353 = vmatmul.mubr.msk.bf16.vlgmr.msra.gmra.mrb[20].mxu1 %vm569_vm2, %v1325_v63 }
 0x80e   : > { %2364 = vmatprep.mubr.msk.bf16.mxu1 %vm2720_vm1, %v2719_v8 }
 0x80f   : > { %v1227_v3 = vpack.c.bf16 %v1225_v1, %v1223_v0 }
 0x811   : > { %2347 = vmatmul.mubr.msk.bf16.vlgmr.msra.gmra.mrb[28].mxu0 %vm677_vm4, %v1227_v3 }
 0x812   : > { %2357 = vmatpush3.bf16.xpose.msra.mxu0 %v1383_v4  ;;  %2358 = vmatprep.mubr.msk.bf16.mxu0 %vm2720_vm1, %v2719_v8 }
 0x813   : > { %2368 = vmatprep.subr.bf16.mxu0 %v2719_v8 }
 0x819   : > { %2359 = vmatmul.mubr.msk.bf16.vlgmr.msra.gmra.mrb[32].mxu0 %vm569_vm2, %v1376_v5 }
 0x81a   : > { %2370 = vmatprep.mubr.msk.bf16.mxu0 %vm2720_vm1, %v2719_v8 }
 0x8d8   : > { %v3123_v6 = vpop.f32.mrb[16].mxu1 }
 0x8d9   : > { %v2342_v7 = vpop.f32.mrb[17].mxu1 }
 0x8da   : > { %v3125_v9 = vpop.f32.mrb[18].mxu1 }
 0x8db   : > { %v1322_v10 = vpack.c.bf16 %v3125_v9, %v3123_v6  ;;  %v2343_v11 = vpop.f32.mrb[19].mxu1 }
 0x8e0   : > { %v1368_v12 = vpop.f32.mrb[20].mxu1 }
 0x8e1   : > { %v1426_v13 = vmul.f32 0.35355338, %v1368_v12  ;;  %v2354_v14 = vpop.f32.mrb[21].mxu1 }
 0x8e2   : > { %v1371_v15 = vpop.f32.mrb[22].mxu1 }
 0x8e3   : > { %v1427_v16 = vmul.f32 0.35355338, %v1371_v15  ;;  %v2355_v17 = vpop.f32.mrb[23].mxu1  ;;  %v1430_v20 = vsel %vm565_vm3, %v1426_v13, -1e+30  ;;  %v2491_v15 = vld [vmem:[#allocation2] sm:$0xff]  }
 0x8e4   : > { %v1315_v21 = vpop.f32.mrb[28].mxu0  ;;  %v1434_v8 = vsel %vm677_vm4, %v1430_v20, -inf }
 0x8e5   : > { %1435 = vmax.xlane.f32.xlu0 %v1434_v8  ;;  %v2348_v22 = vpop.f32.mrb[29].mxu0  ;;  %v1431_v23 = vsel %vm565_vm3, %v1427_v16, -1e+30  ;;  %v2492_v16 = vld [vmem:[#allocation2 + $0x8] sm:$0xff]  }
 0x8e6   : > { %v1318_v24 = vpop.f32.mrb[30].mxu0  ;;  %v1437_v26 = vsel %vm677_vm4, %v1431_v23, -inf }
 0x8e7   : > { %v1323_v27 = vpack.c.bf16 %v1318_v24, %v1315_v21  ;;  %1438 = vmax.xlane.f32.xlu1 %v1437_v26  ;;  %v2349_v29 = vpop.f32.mrb[31].mxu0 }
 0x8ec   : > { %v1419_v32 = vpop.f32.mrb[32].mxu0 }
 0x8ed   : > { %v1428_v34 = vmul.f32 0.35355338, %v1419_v32  ;;  %v2360_v35 = vpop.f32.mrb[33].mxu0 }
 0x8ee   : > { %v1422_v36 = vpop.f32.mrb[34].mxu0 }
 0x8ef   : > { %v1429_v37 = vmul.f32 0.35355338, %v1422_v36  ;;  %v2361_v39 = vpop.f32.mrb[35].mxu0  ;;  %v1432_v41 = vsel %vm565_vm3, %v1428_v34, -1e+30 }
 0x8f0   : > { %v1440_v42 = vsel %vm677_vm4, %v1432_v41, -inf }
 0x8f1   : > { %1441 = vmax.xlane.f32.xlu0 %v1440_v42  ;;  %v1433_v43 = vsel %vm565_vm3, %v1429_v37, -1e+30 }
 0x8f2   : > { %v1443_v44 = vsel %vm677_vm4, %v1433_v43, -inf }
 0x8f5   : > { %1444 = vmax.xlane.f32.xlu0 %v1443_v44 }
 0x972   : > { %v1436_v45 = vpop.xlane.xlu0 %1435 }
 0x973   : > { %v1446_v47 = vsub.f32 %v1430_v20, %v1436_v45 }
 0x974   : > { %v1439_v50 = vpop.xlane.xlu1 %1438 }
 0x975   : > { %v1450_v51 = vmul.f32 1.442695, %v1446_v47  ;;  %v1447_v52 = vsub.f32 %v1431_v23, %v1439_v50 }
 0x977   : > { %2551 = vpow2.f32 %v1450_v51  ;;  %v1452_v53 = vmul.f32 1.442695, %v1447_v52  ;;  %v2583_v52 = vld [vmem:[%s2931_s27] sm:$0xff] }
 0x979   : > { %2553 = vpow2.f32 %v1452_v53 }
 0x97e   : > { %v1442_v55 = vpop.xlane.xlu0 %1441 }
 0x97f   : > { %v1448_v56 = vsub.f32 %v1432_v41, %v1442_v55 }
 0x981   : > { %v2552_v57 = vpop.eup %2551  ;;  %v1454_v58 = vmul.f32 1.442695, %v1448_v56 }
 0x982   : > { %v1445_v59 = vpop.xlane.xlu0 %1444  ;;  %v1458_v61 = vsel %vm677_vm4, %v2552_v57, 0.0 }
 0x983   : > { %v2554_v25 = vpop.eup %2553  ;;  %2555 = vpow2.f32 %v1454_v58  ;;  %v1449_v63 = vsub.f32 %v1433_v43, %v1445_v59  ;;  %1459 = vadd.xlane.f32.xlu1 %v1458_v61  ;;  %v2585_v59 = vld [vmem:[%s2931_s27 + $0x10] sm:$0xff] }
 0x984   : > { %v1461_v0 = vsel %vm677_vm4, %v2554_v25, 0.0 }
 0x985   : > { %v1456_v1 = vmul.f32 1.442695, %v1449_v63  ;;  %1462 = vadd.xlane.f32.xlu0 %v1461_v0  ;;  %v2586_v0 = vld [vmem:[%s2931_s27 + $0x18] sm:$0xff] }
 0x987   : > { %2557 = vpow2.f32 %v1456_v1 }
 0x98d   : > { %v2556_v2 = vpop.eup %2555 }
 0x98e   : > { %v1464_v3 = vsel %vm677_vm4, %v2556_v2, 0.0 }
 0x98f   : > { %1465 = vadd.xlane.f32.xlu1 %v1464_v3 }
 0x991   : > { %v2558_v4 = vpop.eup %2557 }
 0x992   : > { %v1467_v5 = vsel %vm677_vm4, %v2558_v4, 0.0 }
 0x993   : > { %1468 = vadd.xlane.f32.xlu0 %v1467_v5 }
 0x9a0   : > { %1480 = vrot.lane.b32.xlu1 %v2956_v19, %s2731_s17 }
 0x9a4   : > { %1578 = vrot.lane.b32.xlu1 %v1070_v49, %s2732_s19 }
 0x9a8   : > { %1580 = vrot.lane.b32.xlu1 %v1071_v62, %s2732_s19 }
 0x9a9   : > { %1527 = vrot.lane.b32.xlu0 %v2954_v18, %s2731_s17 }
 0x9ac   : > { %1586 = vrot.lane.b32.xlu1 %v1323_v27, %s2733_s16 }
 0x9ad   : > { %1584 = vrot.lane.b32.xlu0 %v1322_v10, %s2733_s16  ;;  %s464_s16 = sand.u32 1, %s2705_s26  }
 0x9ae   : > { %s2159_s22 = sshll.u32 %s464_s16, 5  ;;  %s3262_s29 = scalar_lea.sflag [#allocation4], %s464_s16 }
 0x9af   : > { %s466_s25 = scalar_lea.vmem [#allocation7], %s2159_s22 }
 0x9b0   : > { %s2067_s23 = sshll.u32 %s466_s25, 4  ;;  %s3259_s23 = int_to_ptr.vmem [resolvable:$true] %s2067_s23 }
 0x9b1   : > { %s2643_s17 = scalar_lea.vmem %s3259_s23, 512 }
 0x9b2   : > { %p2644_p12 = scmp.ne.s32.totalorder %s3259_s23, %s2643_s17 }
 0x9b4   : > { %p2645_p2 = pnand %p2644_p12, %p3345_p1 }
 0x9b6   : > { %p2646_p3 = pneg %p2645_p2 }
 0xa10   : > { %v1460_v19 = vpop.xlane.xlu1 %1459 }
 0xa11   : > { %2559 = vrcp.f32 %v1460_v19 }
 0xa12   : > { %v1463_v7 = vpop.xlane.xlu0 %1462 }
 0xa13   : > { %2561 = vrcp.f32 %v1463_v7 }
 0xa1b   : > { %v2560_v11 = vpop.eup %2559 }
 0xa1c   : > { %v1466_v46 = vpop.xlane.xlu1 %1465  ;;  %v1471_v12 = vmul.f32 %v2560_v11, %v2552_v57  ;;  %v2584_v57 = vld [vmem:[%s2931_s27 + $0x8] sm:$0xff] }
 0xa1d   : > { %v2562_v48 = vpop.eup %2561  ;;  %2563 = vrcp.f32 %v1466_v46 }
 0xa1e   : > { %v1473_v49 = vmul.f32 %v2562_v48, %v2554_v25 }
 0xa20   : > { %v1481_v54 = vpop.permute.xlu1 %1480  ;;  %v1469_v60 = vpop.xlane.xlu0 %1468  ;;  %v1478_v18 = vpack.c.bf16 %v1473_v49, %v1471_v12 }
 0xa21   : > { %2565 = vrcp.f32 %v1469_v60  ;;  %2363 = vmatpush3.bf16.msra.mxu1 %v1481_v54 }
 0xa22   : > { %2374 = vmatprep.subr.bf16.mxu1 %v2491_v15 }
 0xa24   : > { %2365 = vmatmul.mubr.msk.bf16.vlgmr.msra.gmra.mrb[24].mxu1 %vm677_vm4, %v1478_v18  ;;  %v1528_v62 = vpop.permute.xlu0 %1527  ;;  %v1579_v32 = vpop.permute.xlu1 %1578 }
 0xa25   : > { %2369 = vmatpush3.bf16.msra.mxu0 %v1528_v62  ;;  %2375 = vmatpush3.bf16.msra.mxu1 %v2491_v15  ;;  %v1596_v35 = vsel %vm569_vm2, %v818_v31, %v1579_v32  ;;  %v2184_v31 = vld [vmem:[%s3308_s4] ss:$0 sm:$0xff] }
 0xa26   : > { %2376 = vmatprep.subr.bf16.mxu1 %v2492_v16 }
 0xa27   : > { %v2564_v6 = vpop.eup %2563 }
 0xa28   : > { %v1475_v10 = vmul.f32 %v2564_v6, %v2556_v2  ;;  %v1585_v34 = vpop.permute.xlu0 %1584  ;;  %v1581_v41 = vpop.permute.xlu1 %1580 }
 0xa29   : > { %2377 = vmatpush3.bf16.msra.mxu1 %v2492_v16  ;;  %v1601_v36 = vsel %vm677_vm4, %v1596_v35, %v1585_v34  ;;  %v1599_v43 = vsel %vm569_vm2, %v819_v40, %v1581_v41  ;;  %v2493_v16 = vld [vmem:[#allocation5] sm:$0xff]  }
 0xa2a   : > { %2382 = vmatprep.subr.bf16.mxu0 %v2493_v16 }
 0xa2b   : > { %v2566_v9 = vpop.eup %2565 }
 0xa2c   : > { %v1477_v13 = vmul.f32 %v2566_v9, %v2558_v4  ;;  %v1587_v42 = vpop.permute.xlu1 %1586 }
 0xa2d   : > { %v1603_v44 = vsel %vm677_vm4, %v1599_v43, %v1587_v42 }
 0xa2e   : > { %v1479_v14 = vpack.c.bf16 %v1477_v13, %v1475_v10 }
 0xa30   : > { %2371 = vmatmul.mubr.msk.bf16.vlgmr.msra.gmra.mrb[36].mxu0 %vm677_vm4, %v1479_v14 }
 0xa31   : > { %2383 = vmatpush3.bf16.msra.mxu0 %v2493_v16 }
 0xaf7   : > { %v1520_v17 = vpop.f32.mrb[24].mxu1 }
 0xaf8   : > { %v2366_v20 = vpop.f32.mrb[25].mxu1 }
 0xaf9   : > { %v1523_v21 = vpop.f32.mrb[26].mxu1  ;;  %v2495_v20 = vld [vmem:[%s3311_s7] sm:$0xff]  }
 0xafa   : > { %v1574_v8 = vpack.c.bf16 %v1523_v21, %v1520_v17  ;;  %v2367_v22 = vpop.f32.mrb[27].mxu1  ;;  %v2494_v17 = vld [vmem:[#allocation5 + $0x8] sm:$0xff]   ;;  %v2496_v21 = vld [vmem:[%s3311_s7 + $0x8] sm:$0xff]   ;;  %2390 = vmatprep.subr.bf16.mxu1 %v2495_v20 }
 0xafb   : > { %2384 = vmatprep.subr.bf16.mxu0 %v2494_v17  ;;  %v2498_v22 = vld [vmem:[%s3311_s7 + $0x18] sm:$0xff]  }
 0xafc   : > { %1590 = vrot.lane.b32.xlu0 %v1574_v8, %s2734_s21  ;;  %2385 = vmatpush3.bf16.msra.mxu0 %v2494_v17  ;;  %v2497_v8 = vld [vmem:[%s3311_s7 + $0x10] sm:$0xff]  }
 0xb03   : > { %v1567_v23 = vpop.f32.mrb[36].mxu0 }
 0xb04   : > { %v2372_v24 = vpop.f32.mrb[37].mxu0 }
 0xb05   : > { %v1570_v26 = vpop.f32.mrb[38].mxu0  ;;  %v2500_v24 = vld [vmem:[%s3311_s7 + $0x28] sm:$0xff]  }
 0xb06   : > { %v1575_v27 = vpack.c.bf16 %v1570_v26, %v1567_v23  ;;  %v2373_v29 = vpop.f32.mrb[39].mxu0  ;;  %v2499_v23 = vld [vmem:[%s3311_s7 + $0x20] sm:$0xff]  }
 0xb08   : > { %1592 = vrot.lane.b32.xlu1 %v1575_v27, %s2734_s21  ;;  %s2735_s21 = smov [#allocation7]  }
 0xb09   : > { %s2647_s24 = sshll.u32 %s2735_s21, 4  ;;  %s2648_s24 = int_to_ptr.vmem [resolvable:$false] %s2647_s24 }
 0xb0a   : > { %s2649_s22 = scalar_lea.vmem %s2648_s24, 1024  ;;  %p2650_p4 = scmp.lt.s32.totalorder %s3259_s23, %s2648_s24 }
 0xb0b   : > { %p2651_p7 = scmp.lt.s32.totalorder %s2649_s22, %s2643_s17 }
 0xb0d   : > { %p2652_p8 = por %p2651_p7, %p2650_p4 }
 0xb0f   : > { %p2653_p11 = pnand %p2652_p8, %p2646_p3 }
 0xb6e   : > { %v1591_v37 = vpop.permute.xlu0 %1590 }
 0xb6f   : > { %v1606_v39 = vsel %vm1604_vm5, %v1601_v36, %v1591_v37 }
 0xb70   : > { %2378 = vmatprep.mubr.msk.bf16.mxu1 %vm505_vm0, %v1606_v39 }
 0xb7a   : > { %v1593_v28 = vpop.permute.xlu1 %1592 }
 0xb7b   : > { %v1608_v30 = vsel %vm1604_vm5, %v1603_v44, %v1593_v28  ;;  %v2189_v28 = vld [vmem:[%s3313_s9] ss:$0 sm:$0xff] }
 0xb7c   : > { %2379 = vmatmul.mubr.msk.bf16.vlgmr.msra.gmra.mrb[28].mxu1 %vm505_vm0, %v1608_v30 }
 0xb7d   : > { %2391 = vmatpush3.bf16.msra.mxu1 %v2495_v20 }
 0xb7e   : > { %2392 = vmatprep.subr.bf16.mxu1 %v2496_v21 }
 0xb81   : > { %2393 = vmatpush3.bf16.msra.mxu1 %v2496_v21 }
 0xb82   : > { %2394 = vmatprep.subr.bf16.mxu1 %v2497_v8 }
 0xb85   : > { %2395 = vmatpush3.bf16.msra.mxu1 %v2497_v8 }
 0xb86   : > { %2396 = vmatprep.subr.bf16.mxu1 %v2498_v22 }
 0xb89   : > { %2397 = vmatpush3.bf16.msra.mxu1 %v2498_v22 }
 0xb8a   : > { %2398 = vmatprep.subr.bf16.mxu1 %v2499_v23 }
 0xb8d   : > { %2399 = vmatpush3.bf16.msra.mxu1 %v2499_v23 }
 0xb8e   : > { %2400 = vmatprep.subr.bf16.mxu1 %v2500_v24 }
 0xb91   : > { %2401 = vmatpush3.bf16.msra.mxu1 %v2500_v24 }
 0xc4f   : > { %v2380_v45 = vpop.f32.mrb[28].mxu1 }
 0xc50   : > { %v1670_v47 = vpop.f32.mrb[29].mxu1  ;;  %v1679_v50 = vadd.f32 %v2380_v45, %v2184_v31 }
 0xc51   : > { %v1671_v51 = vadd.f32 %v2184_v31, %v1670_v47  ;;  %v2381_v33 = vpop.f32.mrb[30].mxu1 }
 0xc52   : > { %v1673_v38 = vpop.f32.mrb[31].mxu1  ;;  %v1682_v55 = vadd.f32 %v2381_v33, %v2184_v31  ;;  %v1687_v61 = vadd.f32 %v2585_v59, %v1679_v50 }
 0xc53   : > { %v1674_v40 = vadd.f32 %v2184_v31, %v1673_v38  ;;  %v1685_v53 = vadd.f32 %v2583_v52, %v1671_v51  ;;  %v2190_v51 = vld [vmem:[%s3314_s10] ss:$0 sm:$0xff] }
 0xc54   : > { %v1695_v63 = vsel %vm505_vm0, %v1687_v61, 0.0  ;;  %v1688_v1 = vadd.f32 %v2586_v0, %v1682_v55  ;;  %v2502_v0 = vld [vmem:[%s3311_s7 + $0x38] sm:$0xff]  }
 0xc55   : > { %v1689_v56 = vsel %vm505_vm0, %v1685_v53, 0.0  ;;  %v1686_v58 = vadd.f32 %v2584_v57, %v1674_v40 }
 0xc56   : > { %1690 = vadd.xlane.f32.xlu0 %v1689_v56  ;;  %v1698_v2 = vsel %vm505_vm0, %v1688_v1, 0.0 }
 0xc57   : > { %v1692_v25 = vsel %vm505_vm0, %v1686_v58, 0.0 }
 0xc58   : > { %1693 = vadd.xlane.f32.xlu1 %v1692_v25 }
 0xc5a   : > { %1696 = vadd.xlane.f32.xlu0 %v1695_v63  ;;  %v2501_v63 = vld [vmem:[%s3311_s7 + $0x30] sm:$0xff]  }
 0xc5b   : > { %2402 = vmatprep.subr.bf16.mxu1 %v2501_v63 }
 0xc5c   : > { %2403 = vmatpush3.bf16.msra.mxu1 %v2501_v63 }
 0xc5d   : > { %2404 = vmatprep.subr.bf16.mxu1 %v2502_v0 }
 0xc5e   : > { %1699 = vadd.xlane.f32.xlu0 %v1698_v2 }
 0xc60   : > { %2405 = vmatpush3.bf16.msra.mxu1 %v2502_v0 }
 0xce3   : > { %v1691_v3 = vpop.xlane.xlu0 %1690 }
 0xce4   : > { %v1702_v4 = vmul.f32 0.03125, %v1691_v3 }
 0xce5   : > { %v1694_v5 = vpop.xlane.xlu1 %1693 }
 0xce6   : > { %v3183_v19 = vsub.f32 %v1685_v53, %v1702_v4  ;;  %v1703_v7 = vmul.f32 0.03125, %v1694_v5 }
 0xce7   : > { %v1697_v11 = vpop.xlane.xlu0 %1696 }
 0xce8   : > { %v1707_v46 = vsub.f32 %v1686_v58, %v1703_v7  ;;  %v1704_v48 = vmul.f32 0.03125, %v1697_v11  ;;  %v1710_v49 = vmul.f32 %v3183_v19, %v3183_v19 }
 0xcea   : > { %v3187_v12 = vsub.f32 %v1687_v61, %v1704_v48  ;;  %v1714_v54 = vsel %vm505_vm0, %v1710_v49, 0.0  ;;  %v1711_v60 = vmul.f32 %v1707_v46, %v1707_v46 }
 0xceb   : > { %1715 = vadd.xlane.f32.xlu1 %v1714_v54  ;;  %v1700_v18 = vpop.xlane.xlu0 %1699 }
 0xcec   : > { %v1705_v62 = vmul.f32 0.03125, %v1700_v18  ;;  %v1717_v6 = vsel %vm505_vm0, %v1711_v60, 0.0  ;;  %v1712_v9 = vmul.f32 %v3187_v12, %v3187_v12 }
 0xced   : > { %1718 = vadd.xlane.f32.xlu0 %v1717_v6 }
 0xcee   : > { %v1709_v10 = vsub.f32 %v1688_v1, %v1705_v62  ;;  %v1720_v13 = vsel %vm505_vm0, %v1712_v9, 0.0  ;;  %v2191_v1 = vld [vmem:[%s3310_s6] ss:$0 sm:$0xff] }
 0xcef   : > { %1721 = vadd.xlane.f32.xlu1 %v1720_v13  ;;  %v2196_v62 = vld [vmem:[%s3312_s8] ss:$0 sm:$0xff] }
 0xcf0   : > { %v1713_v14 = vmul.f32 %v1709_v10, %v1709_v10 }
 0xcf2   : > { %v1723_v15 = vsel %vm505_vm0, %v1713_v14, 0.0 }
 0xcf3   : > { %1724 = vadd.xlane.f32.xlu0 %v1723_v15 }
 0xd78   : > { %v1716_v26 = vpop.xlane.xlu1 %1715 }
 0xd79   : > { %v1726_v27 = vmul.f32 0.03125, %v1716_v26 }
 0xd7a   : > { %v1719_v29 = vpop.xlane.xlu0 %1718 }
 0xd7b   : > { %v1730_v32 = vadd.f32 1e-05, %v1726_v27  ;;  %v1727_v34 = vmul.f32 0.03125, %v1719_v29 }
 0xd7c   : > { %v1722_v35 = vpop.xlane.xlu1 %1721 }
 0xd7d   : > { %2567 = vrsqrt.f32 %v1730_v32  ;;  %v1731_v36 = vadd.f32 1e-05, %v1727_v34  ;;  %v1728_v37 = vmul.f32 0.03125, %v1722_v35 }
 0xd7f   : > { %2569 = vrsqrt.f32 %v1731_v36  ;;  %v1732_v39 = vadd.f32 1e-05, %v1728_v37 }
 0xd80   : > { %v1725_v41 = vpop.xlane.xlu0 %1724 }
 0xd81   : > { %2571 = vrsqrt.f32 %v1732_v39  ;;  %v1729_v42 = vmul.f32 0.03125, %v1725_v41 }
 0xd83   : > { %v1733_v43 = vadd.f32 1e-05, %v1729_v42 }
 0xd85   : > { %2573 = vrsqrt.f32 %v1733_v43 }
 0xd87   : > { %v2568_v44 = vpop.eup %2567 }
 0xd88   : > { %v1738_v30 = vmul.f32 %v2568_v44, %v3183_v19 }
 0xd89   : > { %v2570_v31 = vpop.eup %2569 }
 0xd8a   : > { %v1739_v45 = vmul.f32 %v2570_v31, %v1707_v46  ;;  %v1749_v47 = vmul.f32 %v2189_v28, %v1738_v30 }
 0xd8b   : > { %v2572_v50 = vpop.eup %2571 }
 0xd8c   : > { %v1740_v33 = vmul.f32 %v2572_v50, %v3187_v12  ;;  %v1750_v38 = vmul.f32 %v2189_v28, %v1739_v45  ;;  %v1760_v40 = vadd.f32 %v2190_v51, %v1749_v47 }
 0xd8e   : > { %v1761_v52 = vadd.f32 %v2190_v51, %v1750_v38  ;;  %v1751_v55 = vmul.f32 %v2189_v28, %v1740_v33 }
 0xd8f   : > { %v2574_v53 = vpop.eup %2573 }
 0xd90   : > { %v1741_v56 = vmul.f32 %v2574_v53, %v1709_v10  ;;  %v1764_v57 = vpack.c.bf16 %v1761_v52, %v1760_v40  ;;  %v1762_v59 = vadd.f32 %v2190_v51, %v1751_v55 }
 0xd92   : > { %v1752_v58 = vmul.f32 %v2189_v28, %v1741_v56  ;;  %2386 = vmatprep.mubr.msk.bf16.mxu0 %vm505_vm0, %v1764_v57 }
 0xd94   : > { %v1763_v61 = vadd.f32 %v2190_v51, %v1752_v58 }
 0xd96   : > { %v1765_v25 = vpack.c.bf16 %v1763_v61, %v1762_v59 }
 0xd98   : > { %2387 = vmatmul.mubr.msk.bf16.vlgmr.msra.gmra.mrb[40].mxu0 %vm505_vm0, %v1765_v25 }
 0xe6b   : > { %v2388_v2 = vpop.f32.mrb[40].mxu0 }
 0xe6c   : > { %v1838_v3 = vadd.f32 %v2388_v2, %v2191_v1  ;;  %v1829_v4 = vpop.f32.mrb[41].mxu0  ;;  %v2205_v2 = vld [vmem:[%s3315_s11] ss:$0 sm:$0xff] }
 0xe6d   : > { %v1830_v5 = vadd.f32 %v2191_v1, %v1829_v4  ;;  %v2389_v19 = vpop.f32.mrb[42].mxu0 }
 0xe6e   : > { %v1841_v7 = vadd.f32 %v2389_v19, %v2191_v1  ;;  %v1832_v11 = vpop.f32.mrb[43].mxu0  ;;  %v1846_v48 = vmax.f32 %v1838_v3, 0.0 }
 0xe6f   : > { %v1833_v46 = vadd.f32 %v2191_v1, %v1832_v11  ;;  %v1844_v12 = vmax.f32 %v1830_v5, 0.0  ;;  %v2206_v5 = vld [vmem:[%s3316_s12] ss:$0 sm:$0xff] }
 0xe70   : > { %v1847_v49 = vmax.f32 %v1841_v7, 0.0 }
 0xe71   : > { %v1845_v54 = vmax.f32 %v1833_v46, 0.0 }
 0xe72   : > { %v1849_v60 = vpack.c.bf16 %v1847_v49, %v1846_v48 }
 0xe73   : > { %v1848_v18 = vpack.c.bf16 %v1845_v54, %v1844_v12 }
 0xe75   : > { %2406 = vmatprep.mubr.bf16.mxu1 %v1848_v18 }
 0xe76   : > { %2407 = vmatmul.mubr.bf16.vlgmr.msra.gmra.mrb[32].mxu1 %v1849_v60 }
 0xf49   : > { %v2408_v6 = vpop.f32.mrb[32].mxu1 }
 0xf4a   : > { %v1955_v9 = vpop.f32.mrb[33].mxu1  ;;  %v1964_v10 = vadd.f32 %v2408_v6, %v2196_v62 }
 0xf4b   : > { %v1956_v13 = vadd.f32 %v2196_v62, %v1955_v9  ;;  %v2409_v14 = vpop.f32.mrb[34].mxu1 }
 0xf4c   : > { %v1958_v15 = vpop.f32.mrb[35].mxu1  ;;  %v1967_v16 = vadd.f32 %v2409_v14, %v2196_v62  ;;  %v1972_v22 = vadd.f32 %v1964_v10, %v1762_v59 }
 0xf4d   : > { %v1959_v17 = vadd.f32 %v2196_v62, %v1958_v15  ;;  %v1970_v20 = vadd.f32 %v1956_v13, %v1760_v40 }
 0xf4e   : > { %v1973_v24 = vadd.f32 %v1967_v16, %v1763_v61  ;;  %v1980_v26 = vsel %vm505_vm0, %v1972_v22, 0.0 }
 0xf4f   : > { %v1974_v21 = vsel %vm505_vm0, %v1970_v20, 0.0  ;;  %v1971_v8 = vadd.f32 %v1959_v17, %v1761_v52 }
 0xf50   : > { %1975 = vadd.xlane.f32.xlu1 %v1974_v21  ;;  %v1983_v27 = vsel %vm505_vm0, %v1973_v24, 0.0 }
 0xf51   : > { %v1977_v23 = vsel %vm505_vm0, %v1971_v8, 0.0 }
 0xf52   : > { %1978 = vadd.xlane.f32.xlu0 %v1977_v23 }
 0xf54   : > { %1981 = vadd.xlane.f32.xlu1 %v1980_v26 }
 0xf56   : > { %1984 = vadd.xlane.f32.xlu0 %v1983_v27 }
 0xfdd   : > { %v1976_v29 = vpop.xlane.xlu1 %1975 }
 0xfde   : > { %v1986_v32 = vmul.f32 0.03125, %v1976_v29 }
 0xfdf   : > { %v1979_v34 = vpop.xlane.xlu0 %1978 }
 0xfe0   : > { %v1990_v35 = vsub.f32 %v1970_v20, %v1986_v32  ;;  %v1987_v36 = vmul.f32 0.03125, %v1979_v34 }
 0xfe1   : > { %v1982_v37 = vpop.xlane.xlu1 %1981 }
 0xfe2   : > { %v1991_v39 = vsub.f32 %v1971_v8, %v1987_v36  ;;  %v1988_v41 = vmul.f32 0.03125, %v1982_v37  ;;  %v1994_v42 = vmul.f32 %v1990_v35, %v1990_v35 }
 0xfe3   : > { %v1985_v43 = vpop.xlane.xlu0 %1984 }
 0xfe4   : > { %v1992_v44 = vsub.f32 %v1972_v22, %v1988_v41  ;;  %v1989_v28 = vmul.f32 0.03125, %v1985_v43  ;;  %v1998_v30 = vsel %vm505_vm0, %v1994_v42, 0.0  ;;  %v1995_v31 = vmul.f32 %v1991_v39, %v1991_v39 }
 0xfe5   : > { %1999 = vadd.xlane.f32.xlu1 %v1998_v30 }
 0xfe6   : > { %v1993_v45 = vsub.f32 %v1973_v24, %v1989_v28  ;;  %v2001_v47 = vsel %vm505_vm0, %v1995_v31, 0.0  ;;  %v1996_v50 = vmul.f32 %v1992_v44, %v1992_v44 }
 0xfe7   : > { %2002 = vadd.xlane.f32.xlu0 %v2001_v47 }
 0xfe8   : > { %v2004_v51 = vsel %vm505_vm0, %v1996_v50, 0.0  ;;  %v1997_v33 = vmul.f32 %v1993_v45, %v1993_v45 }
 0xfe9   : > { %2005 = vadd.xlane.f32.xlu1 %v2004_v51 }
 0xfea   : > { %v2007_v38 = vsel %vm505_vm0, %v1997_v33, 0.0 }
 0xfeb   : > { %2008 = vadd.xlane.f32.xlu0 %v2007_v38 }
0x1072   : > { %v2000_v40 = vpop.xlane.xlu1 %1999 }
0x1073   : > { %v2010_v52 = vmul.f32 0.03125, %v2000_v40 }
0x1074   : > { %v2003_v53 = vpop.xlane.xlu0 %2002 }
0x1075   : > { %v2014_v55 = vadd.f32 1e-05, %v2010_v52  ;;  %v2011_v56 = vmul.f32 0.03125, %v2003_v53 }
0x1076   : > { %v2006_v57 = vpop.xlane.xlu1 %2005 }
0x1077   : > { %2575 = vrsqrt.f32 %v2014_v55  ;;  %v2015_v58 = vadd.f32 1e-05, %v2011_v56  ;;  %v2012_v59 = vmul.f32 0.03125, %v2006_v57 }
0x1078   : > { %v2009_v61 = vpop.xlane.xlu0 %2008 }
0x1079   : > { %2577 = vrsqrt.f32 %v2015_v58  ;;  %v2016_v25 = vadd.f32 1e-05, %v2012_v59  ;;  %v2013_v63 = vmul.f32 0.03125, %v2009_v61 }
0x107b   : > { %2579 = vrsqrt.f32 %v2016_v25  ;;  %v2017_v0 = vadd.f32 1e-05, %v2013_v63 }
0x107d   : > { %2581 = vrsqrt.f32 %v2017_v0 }
0x1081   : > { %v2576_v1 = vpop.eup %2575 }
0x1082   : > { %v2022_v3 = vmul.f32 %v2576_v1, %v1990_v35 }
0x1083   : > { %v2578_v4 = vpop.eup %2577 }
0x1084   : > { %v2033_v19 = vmul.f32 %v2205_v2, %v2022_v3  ;;  %v2023_v7 = vmul.f32 %v2578_v4, %v1991_v39 }
0x1085   : > { %v2580_v11 = vpop.eup %2579 }
0x1086   : > { %v2044_v46 = vadd.f32 %v2206_v5, %v2033_v19  ;;  %v2034_v48 = vmul.f32 %v2205_v2, %v2023_v7  ;;  %v2024_v49 = vmul.f32 %v2580_v11, %v1992_v44 }
0x1087   : > { %v2582_v12 = vpop.eup %2581 }
0x1088   : > { %v2045_v54 = vadd.f32 %v2206_v5, %v2034_v48  ;;  %v2035_v60 = vmul.f32 %v2205_v2, %v2024_v49  ;;  %2048 = vst.msk [vmem:[%s466_s25] sm:$0xff] %vm505_vm0, %v2044_v46  ;;  %v2025_v18 = vmul.f32 %v2582_v12, %v1993_v45 }
0x108a   : > { %v2046_v62 = vadd.f32 %v2206_v5, %v2035_v60  ;;  %2049 = vst.msk [vmem:[%s466_s25 + $0x8] sm:$0xff] %vm505_vm0, %v2045_v54  ;;  %v2036_v6 = vmul.f32 %v2205_v2, %v2025_v18 }
0x108c   : > { %2050 = vst.msk [vmem:[%s466_s25 + $0x10] sm:$0xff] %vm505_vm0, %v2046_v62  ;;  %v2047_v9 = vadd.f32 %v2206_v5, %v2036_v6 }
0x108e   : > { %2051 = vst.msk [vmem:[%s466_s25 + $0x18] sm:$0xff] %vm505_vm0, %v2047_v9 }
0x108f   : > { %2656 = shalt.err (!%p2653_p11)
}
0x1090   : > { %s2657_s16 = scalar_lea.hbm %s3256_s14, 512  ;;  %s2661_s25 = scalar_lea.hbm %s3344_s15, 1024 }
0x1091   : > { %p2658_p13 = scmp.ne.s32.totalorder %s3256_s14, %s2657_s16  ;;  %p2662_p6 = scmp.lt.u32.totalorder %s3256_s14, %s3344_s15 }
0x1092   : > { %p2663_p9 = scmp.lt.u32.totalorder %s2661_s25, %s2657_s16  ;;  %p2665_p12 = scmp.lt.u32.totalorder %s2657_s16, %s3256_s14 }
0x1093   : > { %p2659_p5 = pnand %p2658_p13, %p3345_p1 }
0x1094   : > { %p2664_p10 = por %p2663_p9, %p2662_p6 }
0x1095   : > { %p2660_p0 = pneg %p2659_p5 }
0x1096   : > { %p2666_p2 = por %p2665_p12, %p2664_p10 }
0x1098   : > { %p2667_p3 = pnand %p2666_p2, %p2660_p0 }
0x109a   : > { %2670 = shalt.err (!%p2667_p3)
}
0x109b   : > { %s2736_s20 = smov 128  }
0x109c   : > { %2418 = dma.vmem_to_hbm [thread:$0]  (%p3345_p1), %s3259_s23, 512, %s3256_s14, %s3262_s29, %s2736_s20, %s2736_s20, %s2732_s19  }
0x109d PF: > { %s3346_s17 = sld [smem:[#allocation13_spill]]  ;;  %s3347_s21 = sld [smem:[#allocation11_spill]] }
0x109e   : > { %s3348_s24 = sld [smem:[#allocation16_spill]] }
0x10a3   : > { %p2435_p4 = scmp.ge.s32.totalorder %s3346_s17, 2  ;;  %s2082_s22 = sand.u32 1, %s3347_s21  }
0x10a4   : > { %p3349_p7 = scmp.ne.s32.totalorder %s3348_s24, 0  ;;  %s2083_s16 = scalar_lea.sflag [#allocation4], %s2082_s22 }
0x10a6   : > { %p2428_p8 = pnand %p2435_p4, %p3349_p7 }
0x10a8   : > { %2696 = dma.done.wait (!%p2428_p8), %s2083_s16, 512  }
0x10a9   : > { %2698 = vsyncadd (!%p2428_p8), %s2083_s16, 4294966784  ;;  %s3350_s28 = sld [smem:[#allocation14_spill]]  ;;  %s3351_s27 = sld [smem:[#allocation12_spill]] }
0x10aa   : > { %s3352_s18 = sld [smem:[#allocation15_spill]]  ;;  %s3353_s25 = smov %s2705_s26 }
0x10af   : > { %p25_p11 = scmp.ge.s32.totalorder %s3350_s28, 4   ;;  %s3354_s26 = smov %s3351_s27 }
0x10b0   : > { %s3355_s27 = smov %s3352_s18 }
0x10b1   :  { %27 = sbr.rel (!%p25_p11) target bundleno = 7 (0x7), region = 116 }
0x10b8   :  { %2088 = vsyncpa [#allocation3], 1 }
0x10b9   :  { %2090 = vsyncpa [#allocation3 + $0x1], 1 }
0x10ba   :  { %2091 = vsyncpa [#allocation6], 1 }
0x10bb   :  { %2092 = vsyncpa [#allocation4], 1 }
0x10bc   :  { %2094 = vsyncpa [#allocation4 + $0x1], 1 }

</bundles_post_ra>
